<compile_context>
chip_gen: v7x
topology: tpu7x:2x2x1
jax: 0.10.0
libtpu: 0.0.40
codegen_flags: <defaults>
</compile_context>

<pallas_src>
import math

import jax
import jax.numpy as jnp
from jax.experimental import pallas as pl
from jax.experimental.pallas import tpu as pltpu


def _round_up(n, m):
    return ((n + m - 1) // m) * m


def make_vqvae_kernel(k_pad: int, bias_slices):
    # bias_slices: 7 static (offset, width) pairs into the concatenated bias
    # row: b1, b2, b3, bd1, bd2, bd3, cb_sq.
    (b1_s, b2_s, b3_s, bd1_s, bd2_s, bd3_s, cbsq_s) = bias_slices

    def kernel(x_ref, w1_ref, w2_ref, w3_ref, cb_ref, cbt_ref,
               wd1_ref, wd2_ref, wd3_ref, bias_ref,
               xrec_ref, z_ref, idx_ref, sse_ref):

        def bias(sl):
            off, width = sl
            return bias_ref[:, off:off + width]            # (1, width) f32

        def dense(a, w_ref, sl):
            # MXU inputs in the weight dtype (bf16 by default -> native MXU
            # rate on v5e/v6e/v7x); f32 accumulation, f32 bias add.
            return jnp.dot(a.astype(w_ref.dtype), w_ref[...],
                           preferred_element_type=jnp.float32) + bias(sl)

        x = x_ref[...]                                     # (TB, D_in) f32

        # ---------------- Encoder (MXU) ----------------
        h = jnp.maximum(dense(x, w1_ref, b1_s), 0.0)
        h = jnp.maximum(dense(h, w2_ref, b2_s), 0.0)
        z = dense(h, w3_ref, b3_s)                         # (TB, Lp) f32
        z_ref[...] = z

        # ---------------- Vector quantization ----------------
        # ||z - c||^2 = ||z||^2 - 2 z.c + ||c||^2 ; the row-constant ||z||^2
        # term is dropped (does not change the argmin). Kept in f32 for
        # argmin stability. Padded codebook entries carry a huge norm.
        d = bias(cbsq_s) - 2.0 * jnp.dot(
            z, cbt_ref[...], preferred_element_type=jnp.float32)  # (TB, Kp)
        min_d = jnp.min(d, axis=1, keepdims=True)                 # (TB, 1)
        iota_k = jax.lax.broadcasted_iota(jnp.int32, d.shape, 1)  # (TB, Kp)
        # first index attaining the minimum (matches torch.argmin tie rule)
        idx = jnp.min(jnp.where(d == min_d, iota_k, k_pad), axis=1)  # (TB,)
        idx_ref[...] = idx[None, None, :]                  # lane-dense store

        # Codebook gather via one-hot matmul (exact selection, MXU-friendly).
        one_hot = (iota_k == idx[:, None]).astype(jnp.float32)    # (TB, Kp)
        z_q = jnp.dot(one_hot, cb_ref[...],
                      preferred_element_type=jnp.float32)         # (TB, Lp)

        # Per-row sum of squared error; wrapper finishes the global mean
        # (keeps the batch grid axis "parallel" — no shared accumulator).
        sse_ref[...] = jnp.sum((z_q - z) ** 2, axis=1)[None, None, :]

        # Straight-through z + (z_q - z).detach() == z_q in forward values.
        # ---------------- Decoder (MXU) ----------------
        g = jnp.maximum(dense(z_q, wd1_ref, bd1_s), 0.0)
        g = jnp.maximum(dense(g, wd2_ref, bd2_s), 0.0)
        g = dense(g, wd3_ref, bd3_s)
        xrec_ref[...] = jnp.tanh(g).astype(xrec_ref.dtype)  # (TB, D_in)

    return kernel


def vqvae_forward(x, params, commitment_cost=0.25, *, block_b=None,
                  use_bf16=True):
    """Returns (x_recon, z, encoding_indices, commitment_loss)."""
    (w1, b1, w2, b2, w3, b3, cb, wd1, bd1, wd2, bd2, wd3, bd3) = params
    B, d_in = x.shape
    K, L = cb.shape
    H1, H2 = w1.shape[1], w2.shape[1]
    DH1, DH2 = wd1.shape[1], wd2.shape[1]

    # Batch tile: 256 rows fills a full MXU push on v6e/v7x; guarantee >= 2
    # grid tiles when the batch allows so both v7x TensorCores get work.
    B8 = _round_up(B, 8)
    if block_b is None:
        block_b = min(256, B8)
        if block_b > 8 and -(-B8 // block_b) < 2:
            block_b = max(8, _round_up((B8 + 1) // 2, 8))
    B_pad = _round_up(B, block_b)
    n_tiles = B_pad // block_b
    if B_pad != B:
        x = jnp.pad(x, ((0, B_pad - B), (0, 0)))

    # Lane-pad latent dim and codebook-entry count to multiples of 128 so
    # z / distances / one-hot / gather all use full vregs & unmasked stores.
    L_pad = _round_up(max(L, 128), 128)
    K_pad = _round_up(max(K, 128), 128)

    cb_f32 = cb.astype(jnp.float32)
    cb_pad = jnp.pad(cb_f32, ((0, K_pad - K), (0, L_pad - L)))      # (Kp, Lp)
    cbt_pad = cb_pad.T                                              # (Lp, Kp)
    cb_sq = jnp.pad(jnp.sum(cb_f32 * cb_f32, axis=1), (0, K_pad - K),
                    constant_values=jnp.float32(1e30))              # (Kp,)

    # bf16 weights: full MXU rate on every generation, half the weight
    # HBM traffic / resident VMEM. Accumulation stays f32 in the kernel.
    wdt = jnp.bfloat16 if use_bf16 else jnp.float32
    w3_p = jnp.pad(w3, ((0, 0), (0, L_pad - L))).astype(wdt)        # (H2, Lp)
    b3_p = jnp.pad(b3, (0, L_pad - L))                              # (Lp,)
    wd1_p = jnp.pad(wd1, ((0, L_pad - L), (0, 0))).astype(wdt)      # (Lp, DH1)

    # One resident bias row: 128-aligned segments, static slices in kernel.
    segs = [(b1, H1), (b2, H2), (b3_p, L_pad), (bd1, DH1), (bd2, DH2),
            (bd3, d_in), (cb_sq, K_pad)]
    bias_parts, bias_slices, off = [], [], 0
    for vec, width in segs:
        slot = _round_up(max(width, 128), 128)
        bias_parts.append(jnp.pad(vec.astype(jnp.float32), (0, slot - width)))
        bias_slices.append((off, width))
        off += slot
    bias_all = jnp.concatenate(bias_parts)[None, :]                 # (1, tot)

    args = (x,
            w1.astype(wdt), w2.astype(wdt), w3_p,
            cb_pad, cbt_pad,
            wd1_p, wd2.astype(wdt), wd3.astype(wdt),
            bias_all)

    def batch_spec(last_dim):
        return pl.BlockSpec((block_b, last_dim), lambda i: (i, 0))

    def small_out_spec():
        # Lane-dense (1, 1, block_b) tiles: unmasked stores vs width-1 cols.
        return pl.BlockSpec((1, 1, block_b), lambda i: (i, 0, 0))

    def resident_spec(shape, single_buffer):
        # Constant index_map: block never changes -> fetched once, VMEM-resident.
        imap = lambda i: (0,) * len(shape)
        if single_buffer:
            # Single-buffer the never-changing parameters (no re-DMA => the
            # default double buffer is pure VMEM waste).
            return pl.BlockSpec(shape, imap, pipeline_mode=pl.Buffered(1))
        return pl.BlockSpec(shape, imap)

    out_shape = (
        jax.ShapeDtypeStruct((B_pad, d_in), jnp.float32),          # x_recon
        jax.ShapeDtypeStruct((B_pad, L_pad), jnp.float32),         # z (padded)
        jax.ShapeDtypeStruct((n_tiles, 1, block_b), jnp.int32),    # indices
        jax.ShapeDtypeStruct((n_tiles, 1, block_b), jnp.float32),  # per-row SSE
    )
    out_specs = (batch_spec(d_in), batch_spec(L_pad),
                 small_out_spec(), small_out_spec())

    matmul_cols = (d_in * H1 + H1 * H2 + H2 * L_pad + 2 * L_pad * K_pad
                   + L_pad * DH1 + DH1 * DH2 + DH2 * d_in)
    cost = pl.CostEstimate(
        flops=2 * B_pad * matmul_cols,
        transcendentals=B_pad * d_in,                               # tanh
        bytes_accessed=int(sum(a.size * a.dtype.itemsize for a in args)
                           + sum(math.prod(s.shape) * 4 for s in out_shape)))

    kernel = make_vqvae_kernel(K_pad, tuple(bias_slices))

    def build(single_buffer):
        in_specs = ([batch_spec(d_in)]
                    + [resident_spec(a.shape, single_buffer) for a in args[1:]])
        return pl.pallas_call(
            kernel,
            grid=(n_tiles,),
            in_specs=in_specs,
            out_specs=out_specs,
            out_shape=out_shape,
            compiler_params=pltpu.CompilerParams(
                dimension_semantics=("parallel",)),    # megacore / 2-TC shard
            cost_estimate=cost,
        )

    try:
        x_recon, z, idx, sse = build(True)(*args)
    except Exception:
        # Fallback if pipeline_mode=pl.Buffered(1) is rejected by this JAX
        # version; identical kernel with default (double) buffering.
        x_recon, z, idx, sse = build(False)(*args)

    idx = idx.reshape(B_pad)[:B]
    sse = sse.reshape(B_pad)[:B]
    # Global mean over the true batch only (padding rows excluded).
    loss = (jnp.float32(commitment_cost)
            * jnp.sum(sse) / jnp.float32(B * L))
    return x_recon[:B], z[:B, :L], idx, loss


def init_params(key, input_dim, latent_dim, num_embeddings, embedding_dim):
    """Deterministic init mimicking PyTorch defaults (uniform +-1/sqrt(fan_in))."""
    keys = jax.random.split(key, 7)

    def linear(k, fin, fout):
        kw, kb = jax.random.split(k)
        bound = 1.0 / math.sqrt(fin)
        w = jax.random.uniform(kw, (fin, fout), jnp.float32, -bound, bound)
        b = jax.random.uniform(kb, (fout,), jnp.float32, -bound, bound)
        return w, b

    w1, b1 = linear(keys[0], input_dim, 512)
    w2, b2 = linear(keys[1], 512, 256)
    w3, b3 = linear(keys[2], 256, latent_dim)
    cb = jax.random.uniform(keys[3], (num_embeddings, embedding_dim),
                            jnp.float32, -1.0 / num_embeddings,
                            1.0 / num_embeddings)
    wd1, bd1 = linear(keys[4], embedding_dim, 256)
    wd2, bd2 = linear(keys[5], 256, 512)
    wd3, bd3 = linear(keys[6], 512, input_dim)
    return (w1, b1, w2, b2, w3, b3, cb, wd1, bd1, wd2, bd2, wd3, bd3)


if __name__ == "__main__":
    # Small shapes consistent with the module's forward.
    B = 16
    INPUT_DIM = 64
    LATENT_DIM = EMBEDDING_DIM = 16   # must match for z - codebook distances
    NUM_EMBEDDINGS = 32

    key = jax.random.PRNGKey(0)
    k_params, k_x = jax.random.split(key)
    params = init_params(k_params, INPUT_DIM, LATENT_DIM, NUM_EMBEDDINGS,
                         EMBEDDING_DIM)
    x = jax.random.normal(k_x, (B, INPUT_DIM), jnp.float32)

    # Default tiling: picks block_b=8 here -> 2 grid tiles even at this size.
    x_recon, z, idx, loss = vqvae_forward(x, params, commitment_cost=0.25)
    jax.block_until_ready((x_recon, z, idx, loss))

    assert x_recon.shape == (B, INPUT_DIM)
    assert z.shape == (B, LATENT_DIM)
    assert idx.shape == (B,)
    assert loss.shape == ()
    assert bool(jnp.all(jnp.isfinite(x_recon)))
    assert bool(jnp.all(jnp.abs(x_recon) <= 1.0))          # tanh range
    assert bool(jnp.all((idx >= 0) & (idx < NUM_EMBEDDINGS)))
    assert bool(jnp.isfinite(loss))
    print("KERNEL_OK")
</pallas_src>

<mosaic_0001>
module attributes {stable_mosaic.version = 11 : i64} {
  func.func @kernel(%arg0: i32, %arg1: memref<8x64xf32, #tpu.memory_space<vmem>>, %arg2: memref<64x512xbf16, #tpu.memory_space<vmem>>, %arg3: memref<512x256xbf16, #tpu.memory_space<vmem>>, %arg4: memref<256x128xbf16, #tpu.memory_space<vmem>>, %arg5: memref<128x128xf32, #tpu.memory_space<vmem>>, %arg6: memref<128x128xf32, #tpu.memory_space<vmem>>, %arg7: memref<128x256xbf16, #tpu.memory_space<vmem>>, %arg8: memref<256x512xbf16, #tpu.memory_space<vmem>>, %arg9: memref<512x64xbf16, #tpu.memory_space<vmem>>, %arg10: memref<1x1920xf32, #tpu.memory_space<vmem>>, %arg11: memref<8x64xf32, #tpu.memory_space<vmem>>, %arg12: memref<8x128xf32, #tpu.memory_space<vmem>>, %arg13: memref<1x1x8xi32, #tpu.memory_space<vmem>>, %arg14: memref<1x1x8xf32, #tpu.memory_space<vmem>>) attributes {dimension_semantics = [#tpu.dimension_semantics<parallel>], iteration_bounds = array<i64: 2>, scalar_prefetch = 0 : i64, scratch_operands = 0 : i64, tpu.core_type = #tpu.core_type<tc>, window_params = [{transform_indices = @transform_0, window_bounds = array<i64: 8, 64>}, {pipeline_mode = #tpu.pipeline_mode<synchronous>, transform_indices = @transform_1, window_bounds = array<i64: 64, 512>}, {pipeline_mode = #tpu.pipeline_mode<synchronous>, transform_indices = @transform_2, window_bounds = array<i64: 512, 256>}, {pipeline_mode = #tpu.pipeline_mode<synchronous>, transform_indices = @transform_3, window_bounds = array<i64: 256, 128>}, {pipeline_mode = #tpu.pipeline_mode<synchronous>, transform_indices = @transform_4, window_bounds = array<i64: 128, 128>}, {pipeline_mode = #tpu.pipeline_mode<synchronous>, transform_indices = @transform_5, window_bounds = array<i64: 128, 128>}, {pipeline_mode = #tpu.pipeline_mode<synchronous>, transform_indices = @transform_6, window_bounds = array<i64: 128, 256>}, {pipeline_mode = #tpu.pipeline_mode<synchronous>, transform_indices = @transform_7, window_bounds = array<i64: 256, 512>}, {pipeline_mode = #tpu.pipeline_mode<synchronous>, transform_indices = @transform_8, window_bounds = array<i64: 512, 64>}, {pipeline_mode = #tpu.pipeline_mode<synchronous>, transform_indices = @transform_9, window_bounds = array<i64: 1, 1920>}, {transform_indices = @transform_10, window_bounds = array<i64: 8, 64>}, {transform_indices = @transform_11, window_bounds = array<i64: 8, 128>}, {transform_indices = @transform_12, window_bounds = array<i64: 1, 1, 8>}, {transform_indices = @transform_13, window_bounds = array<i64: 1, 1, 8>}]} {
    %c0 = arith.constant 0 : index
    %c0_0 = arith.constant 0 : index
    %0 = vector.load %arg1[%c0, %c0_0] : memref<8x64xf32, #tpu.memory_space<vmem>>, vector<8x64xf32>
    %1 = arith.truncf %0 : vector<8x64xf32> to vector<8x64xbf16>
    %c0_1 = arith.constant 0 : index
    %c0_2 = arith.constant 0 : index
    %2 = vector.load %arg2[%c0_1, %c0_2] : memref<64x512xbf16, #tpu.memory_space<vmem>>, vector<64x512xbf16>
    %cst = arith.constant dense<0.000000e+00> : vector<8x512xf32>
    %3 = tpu.matmul %1, %2, %cst {dimension_numbers = #tpu.dot_dimension_numbers<[1], [0], [0], [1], [0, 0, 1, 1], [], []>} : vector<8x64xbf16>, vector<64x512xbf16>, vector<8x512xf32> -> vector<8x512xf32>
    %c0_3 = arith.constant 0 : index
    %c0_4 = arith.constant 0 : index
    %4 = vector.load %arg10[%c0_3, %c0_4] : memref<1x1920xf32, #tpu.memory_space<vmem>>, vector<1x512xf32>
    %5 = vector.broadcast %4 : vector<1x512xf32> to vector<8x512xf32>
    %6 = arith.addf %3, %5 : vector<8x512xf32>
    %cst_5 = arith.constant 0.000000e+00 : f32
    %7 = vector.broadcast %cst_5 : f32 to vector<8x512xf32>
    %8 = arith.maximumf %6, %7 : vector<8x512xf32>
    %9 = arith.truncf %8 : vector<8x512xf32> to vector<8x512xbf16>
    %c0_6 = arith.constant 0 : index
    %c0_7 = arith.constant 0 : index
    %10 = vector.load %arg3[%c0_6, %c0_7] : memref<512x256xbf16, #tpu.memory_space<vmem>>, vector<512x256xbf16>
    %cst_8 = arith.constant dense<0.000000e+00> : vector<8x256xf32>
    %11 = tpu.matmul %9, %10, %cst_8 {dimension_numbers = #tpu.dot_dimension_numbers<[1], [0], [0], [1], [0, 0, 1, 1], [], []>} : vector<8x512xbf16>, vector<512x256xbf16>, vector<8x256xf32> -> vector<8x256xf32>
    %c0_9 = arith.constant 0 : index
    %c512 = arith.constant 512 : index
    %12 = vector.load %arg10[%c0_9, %c512] : memref<1x1920xf32, #tpu.memory_space<vmem>>, vector<1x256xf32>
    %13 = vector.broadcast %12 : vector<1x256xf32> to vector<8x256xf32>
    %14 = arith.addf %11, %13 : vector<8x256xf32>
    %cst_10 = arith.constant 0.000000e+00 : f32
    %15 = vector.broadcast %cst_10 : f32 to vector<8x256xf32>
    %16 = arith.maximumf %14, %15 : vector<8x256xf32>
    %17 = arith.truncf %16 : vector<8x256xf32> to vector<8x256xbf16>
    %c0_11 = arith.constant 0 : index
    %c0_12 = arith.constant 0 : index
    %18 = vector.load %arg4[%c0_11, %c0_12] : memref<256x128xbf16, #tpu.memory_space<vmem>>, vector<256x128xbf16>
    %cst_13 = arith.constant dense<0.000000e+00> : vector<8x128xf32>
    %19 = tpu.matmul %17, %18, %cst_13 {dimension_numbers = #tpu.dot_dimension_numbers<[1], [0], [0], [1], [0, 0, 1, 1], [], []>} : vector<8x256xbf16>, vector<256x128xbf16>, vector<8x128xf32> -> vector<8x128xf32>
    %c0_14 = arith.constant 0 : index
    %c768 = arith.constant 768 : index
    %20 = vector.load %arg10[%c0_14, %c768] : memref<1x1920xf32, #tpu.memory_space<vmem>>, vector<1x128xf32>
    %21 = vector.broadcast %20 : vector<1x128xf32> to vector<8x128xf32>
    %22 = arith.addf %19, %21 : vector<8x128xf32>
    %c0_15 = arith.constant 0 : index
    %c0_16 = arith.constant 0 : index
    %23 = vector.load %arg12[%c0_15, %c0_16] : memref<8x128xf32, #tpu.memory_space<vmem>>, vector<8x128xf32>
    tpu.vector_store %arg12[%c0_15, %c0_16], %22 {strides = array<i32>} : memref<8x128xf32, #tpu.memory_space<vmem>>, vector<8x128xf32>,
    %c0_17 = arith.constant 0 : index
    %c1792 = arith.constant 1792 : index
    %24 = vector.load %arg10[%c0_17, %c1792] : memref<1x1920xf32, #tpu.memory_space<vmem>>, vector<1x128xf32>
    %c0_18 = arith.constant 0 : index
    %c0_19 = arith.constant 0 : index
    %25 = vector.load %arg6[%c0_18, %c0_19] : memref<128x128xf32, #tpu.memory_space<vmem>>, vector<128x128xf32>
    %cst_20 = arith.constant dense<0.000000e+00> : vector<8x128xf32>
    %26 = tpu.matmul %22, %25, %cst_20 {dimension_numbers = #tpu.dot_dimension_numbers<[1], [0], [0], [1], [0, 0, 1, 1], [], []>} : vector<8x128xf32>, vector<128x128xf32>, vector<8x128xf32> -> vector<8x128xf32>
    %cst_21 = arith.constant 2.000000e+00 : f32
    %27 = vector.broadcast %cst_21 : f32 to vector<8x128xf32>
    %28 = arith.mulf %27, %26 : vector<8x128xf32>
    %29 = vector.broadcast %24 : vector<1x128xf32> to vector<8x128xf32>
    %30 = arith.subf %29, %28 : vector<8x128xf32>
    %cst_22 = arith.constant dense<0x7F800000> : vector<8xf32>
    %31 = vector.multi_reduction <minimumf>, %30, %cst_22 [1] : vector<8x128xf32> to vector<8xf32>
    %32 = vector.shape_cast %31 : vector<8xf32> to vector<8x1xf32>
    %33 = tpu.iota {dimensions = array<i32: 1>} : vector<8x128xi32>
    %34 = vector.broadcast %32 : vector<8x1xf32> to vector<8x128xf32>
    %35 = arith.cmpf oeq, %30, %34 : vector<8x128xf32>
    %c128_i32 = arith.constant 128 : i32
    %36 = vector.broadcast %c128_i32 : i32 to vector<8x128xi32>
    %37 = arith.select %35, %33, %36 : vector<8x128xi1>, vector<8x128xi32>
    %cst_23 = arith.constant dense<2147483647> : vector<8xi32>
    %38 = vector.multi_reduction <minsi>, %37, %cst_23 [1] : vector<8x128xi32> to vector<8xi32>
    %39 = vector.shape_cast %38 : vector<8xi32> to vector<1x1x8xi32>
    %c0_24 = arith.constant 0 : index
    %c0_25 = arith.constant 0 : index
    %c0_26 = arith.constant 0 : index
    %40 = vector.load %arg13[%c0_24, %c0_25, %c0_26] : memref<1x1x8xi32, #tpu.memory_space<vmem>>, vector<1x1x8xi32>
    tpu.vector_store %arg13[%c0_24, %c0_25, %c0_26], %39 {strides = array<i32>} : memref<1x1x8xi32, #tpu.memory_space<vmem>>, vector<1x1x8xi32>,
    %41 = vector.shape_cast %38 : vector<8xi32> to vector<8x1xi32>
    %42 = vector.broadcast %41 : vector<8x1xi32> to vector<8x128xi32>
    %43 = arith.cmpi eq, %33, %42 : vector<8x128xi32>
    %44 = arith.extui %43 : vector<8x128xi1> to vector<8x128xi32>
    %45 = arith.sitofp %44 : vector<8x128xi32> to vector<8x128xf32>
    %c0_27 = arith.constant 0 : index
    %c0_28 = arith.constant 0 : index
    %46 = vector.load %arg5[%c0_27, %c0_28] : memref<128x128xf32, #tpu.memory_space<vmem>>, vector<128x128xf32>
    %cst_29 = arith.constant dense<0.000000e+00> : vector<8x128xf32>
    %47 = tpu.matmul %45, %46, %cst_29 {dimension_numbers = #tpu.dot_dimension_numbers<[1], [0], [0], [1], [0, 0, 1, 1], [], []>} : vector<8x128xf32>, vector<128x128xf32>, vector<8x128xf32> -> vector<8x128xf32>
    %48 = arith.subf %47, %22 : vector<8x128xf32>
    %49 = arith.mulf %48, %48 : vector<8x128xf32>
    %cst_30 = arith.constant dense<0.000000e+00> : vector<8xf32>
    %50 = vector.multi_reduction <add>, %49, %cst_30 [1] : vector<8x128xf32> to vector<8xf32>
    %51 = vector.shape_cast %50 : vector<8xf32> to vector<1x1x8xf32>
    %c0_31 = arith.constant 0 : index
    %c0_32 = arith.constant 0 : index
    %c0_33 = arith.constant 0 : index
    %52 = vector.load %arg14[%c0_31, %c0_32, %c0_33] : memref<1x1x8xf32, #tpu.memory_space<vmem>>, vector<1x1x8xf32>
    tpu.vector_store %arg14[%c0_31, %c0_32, %c0_33], %51 {strides = array<i32>} : memref<1x1x8xf32, #tpu.memory_space<vmem>>, vector<1x1x8xf32>,
    %53 = arith.truncf %47 : vector<8x128xf32> to vector<8x128xbf16>
    %c0_34 = arith.constant 0 : index
    %c0_35 = arith.constant 0 : index
    %54 = vector.load %arg7[%c0_34, %c0_35] : memref<128x256xbf16, #tpu.memory_space<vmem>>, vector<128x256xbf16>
    %cst_36 = arith.constant dense<0.000000e+00> : vector<8x256xf32>
    %55 = tpu.matmul %53, %54, %cst_36 {dimension_numbers = #tpu.dot_dimension_numbers<[1], [0], [0], [1], [0, 0, 1, 1], [], []>} : vector<8x128xbf16>, vector<128x256xbf16>, vector<8x256xf32> -> vector<8x256xf32>
    %c0_37 = arith.constant 0 : index
    %c896 = arith.constant 896 : index
    %56 = vector.load %arg10[%c0_37, %c896] : memref<1x1920xf32, #tpu.memory_space<vmem>>, vector<1x256xf32>
    %57 = vector.broadcast %56 : vector<1x256xf32> to vector<8x256xf32>
    %58 = arith.addf %55, %57 : vector<8x256xf32>
    %cst_38 = arith.constant 0.000000e+00 : f32
    %59 = vector.broadcast %cst_38 : f32 to vector<8x256xf32>
    %60 = arith.maximumf %58, %59 : vector<8x256xf32>
    %61 = arith.truncf %60 : vector<8x256xf32> to vector<8x256xbf16>
    %c0_39 = arith.constant 0 : index
    %c0_40 = arith.constant 0 : index
    %62 = vector.load %arg8[%c0_39, %c0_40] : memref<256x512xbf16, #tpu.memory_space<vmem>>, vector<256x512xbf16>
    %cst_41 = arith.constant dense<0.000000e+00> : vector<8x512xf32>
    %63 = tpu.matmul %61, %62, %cst_41 {dimension_numbers = #tpu.dot_dimension_numbers<[1], [0], [0], [1], [0, 0, 1, 1], [], []>} : vector<8x256xbf16>, vector<256x512xbf16>, vector<8x512xf32> -> vector<8x512xf32>
    %c0_42 = arith.constant 0 : index
    %c1152 = arith.constant 1152 : index
    %64 = vector.load %arg10[%c0_42, %c1152] : memref<1x1920xf32, #tpu.memory_space<vmem>>, vector<1x512xf32>
    %65 = vector.broadcast %64 : vector<1x512xf32> to vector<8x512xf32>
    %66 = arith.addf %63, %65 : vector<8x512xf32>
    %cst_43 = arith.constant 0.000000e+00 : f32
    %67 = vector.broadcast %cst_43 : f32 to vector<8x512xf32>
    %68 = arith.maximumf %66, %67 : vector<8x512xf32>
    %69 = arith.truncf %68 : vector<8x512xf32> to vector<8x512xbf16>
    %c0_44 = arith.constant 0 : index
    %c0_45 = arith.constant 0 : index
    %70 = vector.load %arg9[%c0_44, %c0_45] : memref<512x64xbf16, #tpu.memory_space<vmem>>, vector<512x64xbf16>
    %cst_46 = arith.constant dense<0.000000e+00> : vector<8x64xf32>
    %71 = tpu.matmul %69, %70, %cst_46 {dimension_numbers = #tpu.dot_dimension_numbers<[1], [0], [0], [1], [0, 0, 1, 1], [], []>} : vector<8x512xbf16>, vector<512x64xbf16>, vector<8x64xf32> -> vector<8x64xf32>
    %c0_47 = arith.constant 0 : index
    %c1664 = arith.constant 1664 : index
    %72 = vector.load %arg10[%c0_47, %c1664] : memref<1x1920xf32, #tpu.memory_space<vmem>>, vector<1x64xf32>
    %73 = vector.broadcast %72 : vector<1x64xf32> to vector<8x64xf32>
    %74 = arith.addf %71, %73 : vector<8x64xf32>
    %75 = math.tanh %74 : vector<8x64xf32>
    %c0_48 = arith.constant 0 : index
    %c0_49 = arith.constant 0 : index
    %76 = vector.load %arg11[%c0_48, %c0_49] : memref<8x64xf32, #tpu.memory_space<vmem>>, vector<8x64xf32>
    tpu.vector_store %arg11[%c0_48, %c0_49], %75 {strides = array<i32>} : memref<8x64xf32, #tpu.memory_space<vmem>>, vector<8x64xf32>,
    return
  }
  func.func @transform_0(%arg0: i32) -> (i32, i32) {
    %c0_i32 = arith.constant 0 : i32
    %c0_i32_0 = arith.constant 0 : i32
    return %arg0, %c0_i32 : i32, i32
  }
  func.func @transform_1(%arg0: i32) -> (i32, i32) {
    %c0_i32 = arith.constant 0 : i32
    %c0_i32_0 = arith.constant 0 : i32
    %c0_i32_1 = arith.constant 0 : i32
    return %c0_i32, %c0_i32_0 : i32, i32
  }
  func.func @transform_2(%arg0: i32) -> (i32, i32) {
    %c0_i32 = arith.constant 0 : i32
    %c0_i32_0 = arith.constant 0 : i32
    %c0_i32_1 = arith.constant 0 : i32
    return %c0_i32, %c0_i32_0 : i32, i32
  }
  func.func @transform_3(%arg0: i32) -> (i32, i32) {
    %c0_i32 = arith.constant 0 : i32
    %c0_i32_0 = arith.constant 0 : i32
    %c0_i32_1 = arith.constant 0 : i32
    return %c0_i32, %c0_i32_0 : i32, i32
  }
  func.func @transform_4(%arg0: i32) -> (i32, i32) {
    %c0_i32 = arith.constant 0 : i32
    %c0_i32_0 = arith.constant 0 : i32
    %c0_i32_1 = arith.constant 0 : i32
    return %c0_i32, %c0_i32_0 : i32, i32
  }
  func.func @transform_5(%arg0: i32) -> (i32, i32) {
    %c0_i32 = arith.constant 0 : i32
    %c0_i32_0 = arith.constant 0 : i32
    %c0_i32_1 = arith.constant 0 : i32
    return %c0_i32, %c0_i32_0 : i32, i32
  }
  func.func @transform_6(%arg0: i32) -> (i32, i32) {
    %c0_i32 = arith.constant 0 : i32
    %c0_i32_0 = arith.constant 0 : i32
    %c0_i32_1 = arith.constant 0 : i32
    return %c0_i32, %c0_i32_0 : i32, i32
  }
  func.func @transform_7(%arg0: i32) -> (i32, i32) {
    %c0_i32 = arith.constant 0 : i32
    %c0_i32_0 = arith.constant 0 : i32
    %c0_i32_1 = arith.constant 0 : i32
    return %c0_i32, %c0_i32_0 : i32, i32
  }
  func.func @transform_8(%arg0: i32) -> (i32, i32) {
    %c0_i32 = arith.constant 0 : i32
    %c0_i32_0 = arith.constant 0 : i32
    %c0_i32_1 = arith.constant 0 : i32
    return %c0_i32, %c0_i32_0 : i32, i32
  }
  func.func @transform_9(%arg0: i32) -> (i32, i32) {
    %c0_i32 = arith.constant 0 : i32
    %c0_i32_0 = arith.constant 0 : i32
    %c0_i32_1 = arith.constant 0 : i32
    return %c0_i32, %c0_i32_0 : i32, i32
  }
  func.func @transform_10(%arg0: i32) -> (i32, i32) {
    %c0_i32 = arith.constant 0 : i32
    %c0_i32_0 = arith.constant 0 : i32
    return %arg0, %c0_i32 : i32, i32
  }
  func.func @transform_11(%arg0: i32) -> (i32, i32) {
    %c0_i32 = arith.constant 0 : i32
    %c0_i32_0 = arith.constant 0 : i32
    return %arg0, %c0_i32 : i32, i32
  }
  func.func @transform_12(%arg0: i32) -> (i32, i32, i32) {
    %c0_i32 = arith.constant 0 : i32
    %c0_i32_0 = arith.constant 0 : i32
    %c0_i32_1 = arith.constant 0 : i32
    return %arg0, %c0_i32, %c0_i32_0 : i32, i32, i32
  }
  func.func @transform_13(%arg0: i32) -> (i32, i32, i32) {
    %c0_i32 = arith.constant 0 : i32
    %c0_i32_0 = arith.constant 0 : i32
    %c0_i32_1 = arith.constant 0 : i32
    return %arg0, %c0_i32, %c0_i32_0 : i32, i32, i32
  }
}

module attributes {stable_mosaic.version = 11 : i64} {
  func.func @kernel(%arg0: i32, %arg1: memref<8x64xf32, #tpu.memory_space<vmem>>, %arg2: memref<64x512xbf16, #tpu.memory_space<vmem>>, %arg3: memref<512x256xbf16, #tpu.memory_space<vmem>>, %arg4: memref<256x128xbf16, #tpu.memory_space<vmem>>, %arg5: memref<128x128xf32, #tpu.memory_space<vmem>>, %arg6: memref<128x128xf32, #tpu.memory_space<vmem>>, %arg7: memref<128x256xbf16, #tpu.memory_space<vmem>>, %arg8: memref<256x512xbf16, #tpu.memory_space<vmem>>, %arg9: memref<512x64xbf16, #tpu.memory_space<vmem>>, %arg10: memref<1x1920xf32, #tpu.memory_space<vmem>>, %arg11: memref<8x64xf32, #tpu.memory_space<vmem>>, %arg12: memref<8x128xf32, #tpu.memory_space<vmem>>, %arg13: memref<1x1x8xi32, #tpu.memory_space<vmem>>, %arg14: memref<1x1x8xf32, #tpu.memory_space<vmem>>) attributes {dimension_semantics = [#tpu.dimension_semantics<parallel>], iteration_bounds = array<i64: 2>, scalar_prefetch = 0 : i64, scratch_operands = 0 : i64, tpu.core_type = #tpu.core_type<tc>, window_params = [{transform_indices = @transform_0, window_bounds = array<i64: 8, 64>}, {pipeline_mode = #tpu.pipeline_mode<synchronous>, transform_indices = @transform_1, window_bounds = array<i64: 64, 512>}, {pipeline_mode = #tpu.pipeline_mode<synchronous>, transform_indices = @transform_2, window_bounds = array<i64: 512, 256>}, {pipeline_mode = #tpu.pipeline_mode<synchronous>, transform_indices = @transform_3, window_bounds = array<i64: 256, 128>}, {pipeline_mode = #tpu.pipeline_mode<synchronous>, transform_indices = @transform_4, window_bounds = array<i64: 128, 128>}, {pipeline_mode = #tpu.pipeline_mode<synchronous>, transform_indices = @transform_5, window_bounds = array<i64: 128, 128>}, {pipeline_mode = #tpu.pipeline_mode<synchronous>, transform_indices = @transform_6, window_bounds = array<i64: 128, 256>}, {pipeline_mode = #tpu.pipeline_mode<synchronous>, transform_indices = @transform_7, window_bounds = array<i64: 256, 512>}, {pipeline_mode = #tpu.pipeline_mode<synchronous>, transform_indices = @transform_8, window_bounds = array<i64: 512, 64>}, {pipeline_mode = #tpu.pipeline_mode<synchronous>, transform_indices = @transform_9, window_bounds = array<i64: 1, 1920>}, {transform_indices = @transform_10, window_bounds = array<i64: 8, 64>}, {transform_indices = @transform_11, window_bounds = array<i64: 8, 128>}, {transform_indices = @transform_12, window_bounds = array<i64: 1, 1, 8>}, {transform_indices = @transform_13, window_bounds = array<i64: 1, 1, 8>}]} {
    %c0 = arith.constant 0 : index
    %c0_0 = arith.constant 0 : index
    %0 = vector.load %arg1[%c0, %c0_0] : memref<8x64xf32, #tpu.memory_space<vmem>>, vector<8x64xf32>
    %1 = arith.truncf %0 : vector<8x64xf32> to vector<8x64xbf16>
    %c0_1 = arith.constant 0 : index
    %c0_2 = arith.constant 0 : index
    %2 = vector.load %arg2[%c0_1, %c0_2] : memref<64x512xbf16, #tpu.memory_space<vmem>>, vector<64x512xbf16>
    %cst = arith.constant dense<0.000000e+00> : vector<8x512xf32>
    %3 = tpu.matmul %1, %2, %cst {dimension_numbers = #tpu.dot_dimension_numbers<[1], [0], [0], [1], [0, 0, 1, 1], [], []>} : vector<8x64xbf16>, vector<64x512xbf16>, vector<8x512xf32> -> vector<8x512xf32>
    %c0_3 = arith.constant 0 : index
    %c0_4 = arith.constant 0 : index
    %4 = vector.load %arg10[%c0_3, %c0_4] : memref<1x1920xf32, #tpu.memory_space<vmem>>, vector<1x512xf32>
    %5 = vector.broadcast %4 : vector<1x512xf32> to vector<8x512xf32>
    %6 = arith.addf %3, %5 : vector<8x512xf32>
    %cst_5 = arith.constant 0.000000e+00 : f32
    %7 = vector.broadcast %cst_5 : f32 to vector<8x512xf32>
    %8 = arith.maximumf %6, %7 : vector<8x512xf32>
    %9 = arith.truncf %8 : vector<8x512xf32> to vector<8x512xbf16>
    %c0_6 = arith.constant 0 : index
    %c0_7 = arith.constant 0 : index
    %10 = vector.load %arg3[%c0_6, %c0_7] : memref<512x256xbf16, #tpu.memory_space<vmem>>, vector<512x256xbf16>
    %cst_8 = arith.constant dense<0.000000e+00> : vector<8x256xf32>
    %11 = tpu.matmul %9, %10, %cst_8 {dimension_numbers = #tpu.dot_dimension_numbers<[1], [0], [0], [1], [0, 0, 1, 1], [], []>} : vector<8x512xbf16>, vector<512x256xbf16>, vector<8x256xf32> -> vector<8x256xf32>
    %c0_9 = arith.constant 0 : index
    %c512 = arith.constant 512 : index
    %12 = vector.load %arg10[%c0_9, %c512] : memref<1x1920xf32, #tpu.memory_space<vmem>>, vector<1x256xf32>
    %13 = vector.broadcast %12 : vector<1x256xf32> to vector<8x256xf32>
    %14 = arith.addf %11, %13 : vector<8x256xf32>
    %cst_10 = arith.constant 0.000000e+00 : f32
    %15 = vector.broadcast %cst_10 : f32 to vector<8x256xf32>
    %16 = arith.maximumf %14, %15 : vector<8x256xf32>
    %17 = arith.truncf %16 : vector<8x256xf32> to vector<8x256xbf16>
    %c0_11 = arith.constant 0 : index
    %c0_12 = arith.constant 0 : index
    %18 = vector.load %arg4[%c0_11, %c0_12] : memref<256x128xbf16, #tpu.memory_space<vmem>>, vector<256x128xbf16>
    %cst_13 = arith.constant dense<0.000000e+00> : vector<8x128xf32>
    %19 = tpu.matmul %17, %18, %cst_13 {dimension_numbers = #tpu.dot_dimension_numbers<[1], [0], [0], [1], [0, 0, 1, 1], [], []>} : vector<8x256xbf16>, vector<256x128xbf16>, vector<8x128xf32> -> vector<8x128xf32>
    %c0_14 = arith.constant 0 : index
    %c768 = arith.constant 768 : index
    %20 = vector.load %arg10[%c0_14, %c768] : memref<1x1920xf32, #tpu.memory_space<vmem>>, vector<1x128xf32>
    %21 = vector.broadcast %20 : vector<1x128xf32> to vector<8x128xf32>
    %22 = arith.addf %19, %21 : vector<8x128xf32>
    %c0_15 = arith.constant 0 : index
    %c0_16 = arith.constant 0 : index
    %23 = vector.load %arg12[%c0_15, %c0_16] : memref<8x128xf32, #tpu.memory_space<vmem>>, vector<8x128xf32>
    tpu.vector_store %arg12[%c0_15, %c0_16], %22 {strides = array<i32>} : memref<8x128xf32, #tpu.memory_space<vmem>>, vector<8x128xf32>,
    %c0_17 = arith.constant 0 : index
    %c1792 = arith.constant 1792 : index
    %24 = vector.load %arg10[%c0_17, %c1792] : memref<1x1920xf32, #tpu.memory_space<vmem>>, vector<1x128xf32>
    %c0_18 = arith.constant 0 : index
    %c0_19 = arith.constant 0 : index
    %25 = vector.load %arg6[%c0_18, %c0_19] : memref<128x128xf32, #tpu.memory_space<vmem>>, vector<128x128xf32>
    %cst_20 = arith.constant dense<0.000000e+00> : vector<8x128xf32>
    %26 = tpu.matmul %22, %25, %cst_20 {dimension_numbers = #tpu.dot_dimension_numbers<[1], [0], [0], [1], [0, 0, 1, 1], [], []>} : vector<8x128xf32>, vector<128x128xf32>, vector<8x128xf32> -> vector<8x128xf32>
    %cst_21 = arith.constant 2.000000e+00 : f32
    %27 = vector.broadcast %cst_21 : f32 to vector<8x128xf32>
    %28 = arith.mulf %27, %26 : vector<8x128xf32>
    %29 = vector.broadcast %24 : vector<1x128xf32> to vector<8x128xf32>
    %30 = arith.subf %29, %28 : vector<8x128xf32>
    %cst_22 = arith.constant dense<0x7F800000> : vector<8xf32>
    %31 = vector.multi_reduction <minimumf>, %30, %cst_22 [1] : vector<8x128xf32> to vector<8xf32>
    %32 = vector.shape_cast %31 : vector<8xf32> to vector<8x1xf32>
    %33 = tpu.iota {dimensions = array<i32: 1>} : vector<8x128xi32>
    %34 = vector.broadcast %32 : vector<8x1xf32> to vector<8x128xf32>
    %35 = arith.cmpf oeq, %30, %34 : vector<8x128xf32>
    %c128_i32 = arith.constant 128 : i32
    %36 = vector.broadcast %c128_i32 : i32 to vector<8x128xi32>
    %37 = arith.select %35, %33, %36 : vector<8x128xi1>, vector<8x128xi32>
    %cst_23 = arith.constant dense<2147483647> : vector<8xi32>
    %38 = vector.multi_reduction <minsi>, %37, %cst_23 [1] : vector<8x128xi32> to vector<8xi32>
    %39 = vector.shape_cast %38 : vector<8xi32> to vector<1x1x8xi32>
    %c0_24 = arith.constant 0 : index
    %c0_25 = arith.constant 0 : index
    %c0_26 = arith.constant 0 : index
    %40 = vector.load %arg13[%c0_24, %c0_25, %c0_26] : memref<1x1x8xi32, #tpu.memory_space<vmem>>, vector<1x1x8xi32>
    tpu.vector_store %arg13[%c0_24, %c0_25, %c0_26], %39 {strides = array<i32>} : memref<1x1x8xi32, #tpu.memory_space<vmem>>, vector<1x1x8xi32>,
    %41 = vector.shape_cast %38 : vector<8xi32> to vector<8x1xi32>
    %42 = vector.broadcast %41 : vector<8x1xi32> to vector<8x128xi32>
    %43 = arith.cmpi eq, %33, %42 : vector<8x128xi32>
    %44 = arith.extui %43 : vector<8x128xi1> to vector<8x128xi32>
    %45 = arith.sitofp %44 : vector<8x128xi32> to vector<8x128xf32>
    %c0_27 = arith.constant 0 : index
    %c0_28 = arith.constant 0 : index
    %46 = vector.load %arg5[%c0_27, %c0_28] : memref<128x128xf32, #tpu.memory_space<vmem>>, vector<128x128xf32>
    %cst_29 = arith.constant dense<0.000000e+00> : vector<8x128xf32>
    %47 = tpu.matmul %45, %46, %cst_29 {dimension_numbers = #tpu.dot_dimension_numbers<[1], [0], [0], [1], [0, 0, 1, 1], [], []>} : vector<8x128xf32>, vector<128x128xf32>, vector<8x128xf32> -> vector<8x128xf32>
    %48 = arith.subf %47, %22 : vector<8x128xf32>
    %49 = arith.mulf %48, %48 : vector<8x128xf32>
    %cst_30 = arith.constant dense<0.000000e+00> : vector<8xf32>
    %50 = vector.multi_reduction <add>, %49, %cst_30 [1] : vector<8x128xf32> to vector<8xf32>
    %51 = vector.shape_cast %50 : vector<8xf32> to vector<1x1x8xf32>
    %c0_31 = arith.constant 0 : index
    %c0_32 = arith.constant 0 : index
    %c0_33 = arith.constant 0 : index
    %52 = vector.load %arg14[%c0_31, %c0_32, %c0_33] : memref<1x1x8xf32, #tpu.memory_space<vmem>>, vector<1x1x8xf32>
    tpu.vector_store %arg14[%c0_31, %c0_32, %c0_33], %51 {strides = array<i32>} : memref<1x1x8xf32, #tpu.memory_space<vmem>>, vector<1x1x8xf32>,
    %53 = arith.truncf %47 : vector<8x128xf32> to vector<8x128xbf16>
    %c0_34 = arith.constant 0 : index
    %c0_35 = arith.constant 0 : index
    %54 = vector.load %arg7[%c0_34, %c0_35] : memref<128x256xbf16, #tpu.memory_space<vmem>>, vector<128x256xbf16>
    %cst_36 = arith.constant dense<0.000000e+00> : vector<8x256xf32>
    %55 = tpu.matmul %53, %54, %cst_36 {dimension_numbers = #tpu.dot_dimension_numbers<[1], [0], [0], [1], [0, 0, 1, 1], [], []>} : vector<8x128xbf16>, vector<128x256xbf16>, vector<8x256xf32> -> vector<8x256xf32>
    %c0_37 = arith.constant 0 : index
    %c896 = arith.constant 896 : index
    %56 = vector.load %arg10[%c0_37, %c896] : memref<1x1920xf32, #tpu.memory_space<vmem>>, vector<1x256xf32>
    %57 = vector.broadcast %56 : vector<1x256xf32> to vector<8x256xf32>
    %58 = arith.addf %55, %57 : vector<8x256xf32>
    %cst_38 = arith.constant 0.000000e+00 : f32
    %59 = vector.broadcast %cst_38 : f32 to vector<8x256xf32>
    %60 = arith.maximumf %58, %59 : vector<8x256xf32>
    %61 = arith.truncf %60 : vector<8x256xf32> to vector<8x256xbf16>
    %c0_39 = arith.constant 0 : index
    %c0_40 = arith.constant 0 : index
    %62 = vector.load %arg8[%c0_39, %c0_40] : memref<256x512xbf16, #tpu.memory_space<vmem>>, vector<256x512xbf16>
    %cst_41 = arith.constant dense<0.000000e+00> : vector<8x512xf32>
    %63 = tpu.matmul %61, %62, %cst_41 {dimension_numbers = #tpu.dot_dimension_numbers<[1], [0], [0], [1], [0, 0, 1, 1], [], []>} : vector<8x256xbf16>, vector<256x512xbf16>, vector<8x512xf32> -> vector<8x512xf32>
    %c0_42 = arith.constant 0 : index
    %c1152 = arith.constant 1152 : index
    %64 = vector.load %arg10[%c0_42, %c1152] : memref<1x1920xf32, #tpu.memory_space<vmem>>, vector<1x512xf32>
    %65 = vector.broadcast %64 : vector<1x512xf32> to vector<8x512xf32>
    %66 = arith.addf %63, %65 : vector<8x512xf32>
    %cst_43 = arith.constant 0.000000e+00 : f32
    %67 = vector.broadcast %cst_43 : f32 to vector<8x512xf32>
    %68 = arith.maximumf %66, %67 : vector<8x512xf32>
    %69 = arith.truncf %68 : vector<8x512xf32> to vector<8x512xbf16>
    %c0_44 = arith.constant 0 : index
    %c0_45 = arith.constant 0 : index
    %70 = vector.load %arg9[%c0_44, %c0_45] : memref<512x64xbf16, #tpu.memory_space<vmem>>, vector<512x64xbf16>
    %cst_46 = arith.constant dense<0.000000e+00> : vector<8x64xf32>
    %71 = tpu.matmul %69, %70, %cst_46 {dimension_numbers = #tpu.dot_dimension_numbers<[1], [0], [0], [1], [0, 0, 1, 1], [], []>} : vector<8x512xbf16>, vector<512x64xbf16>, vector<8x64xf32> -> vector<8x64xf32>
    %c0_47 = arith.constant 0 : index
    %c1664 = arith.constant 1664 : index
    %72 = vector.load %arg10[%c0_47, %c1664] : memref<1x1920xf32, #tpu.memory_space<vmem>>, vector<1x64xf32>
    %73 = vector.broadcast %72 : vector<1x64xf32> to vector<8x64xf32>
    %74 = arith.addf %71, %73 : vector<8x64xf32>
    %75 = math.tanh %74 : vector<8x64xf32>
    %c0_48 = arith.constant 0 : index
    %c0_49 = arith.constant 0 : index
    %76 = vector.load %arg11[%c0_48, %c0_49] : memref<8x64xf32, #tpu.memory_space<vmem>>, vector<8x64xf32>
    tpu.vector_store %arg11[%c0_48, %c0_49], %75 {strides = array<i32>} : memref<8x64xf32, #tpu.memory_space<vmem>>, vector<8x64xf32>,
    return
  }
  func.func @transform_0(%arg0: i32) -> (i32, i32) {
    %c0_i32 = arith.constant 0 : i32
    %c0_i32_0 = arith.constant 0 : i32
    return %arg0, %c0_i32 : i32, i32
  }
  func.func @transform_1(%arg0: i32) -> (i32, i32) {
    %c0_i32 = arith.constant 0 : i32
    %c0_i32_0 = arith.constant 0 : i32
    %c0_i32_1 = arith.constant 0 : i32
    return %c0_i32, %c0_i32_0 : i32, i32
  }
  func.func @transform_2(%arg0: i32) -> (i32, i32) {
    %c0_i32 = arith.constant 0 : i32
    %c0_i32_0 = arith.constant 0 : i32
    %c0_i32_1 = arith.constant 0 : i32
    return %c0_i32, %c0_i32_0 : i32, i32
  }
  func.func @transform_3(%arg0: i32) -> (i32, i32) {
    %c0_i32 = arith.constant 0 : i32
    %c0_i32_0 = arith.constant 0 : i32
    %c0_i32_1 = arith.constant 0 : i32
    return %c0_i32, %c0_i32_0 : i32, i32
  }
  func.func @transform_4(%arg0: i32) -> (i32, i32) {
    %c0_i32 = arith.constant 0 : i32
    %c0_i32_0 = arith.constant 0 : i32
    %c0_i32_1 = arith.constant 0 : i32
    return %c0_i32, %c0_i32_0 : i32, i32
  }
  func.func @transform_5(%arg0: i32) -> (i32, i32) {
    %c0_i32 = arith.constant 0 : i32
    %c0_i32_0 = arith.constant 0 : i32
    %c0_i32_1 = arith.constant 0 : i32
    return %c0_i32, %c0_i32_0 : i32, i32
  }
  func.func @transform_6(%arg0: i32) -> (i32, i32) {
    %c0_i32 = arith.constant 0 : i32
    %c0_i32_0 = arith.constant 0 : i32
    %c0_i32_1 = arith.constant 0 : i32
    return %c0_i32, %c0_i32_0 : i32, i32
  }
  func.func @transform_7(%arg0: i32) -> (i32, i32) {
    %c0_i32 = arith.constant 0 : i32
    %c0_i32_0 = arith.constant 0 : i32
    %c0_i32_1 = arith.constant 0 : i32
    return %c0_i32, %c0_i32_0 : i32, i32
  }
  func.func @transform_8(%arg0: i32) -> (i32, i32) {
    %c0_i32 = arith.constant 0 : i32
    %c0_i32_0 = arith.constant 0 : i32
    %c0_i32_1 = arith.constant 0 : i32
    return %c0_i32, %c0_i32_0 : i32, i32
  }
  func.func @transform_9(%arg0: i32) -> (i32, i32) {
    %c0_i32 = arith.constant 0 : i32
    %c0_i32_0 = arith.constant 0 : i32
    %c0_i32_1 = arith.constant 0 : i32
    return %c0_i32, %c0_i32_0 : i32, i32
  }
  func.func @transform_10(%arg0: i32) -> (i32, i32) {
    %c0_i32 = arith.constant 0 : i32
    %c0_i32_0 = arith.constant 0 : i32
    return %arg0, %c0_i32 : i32, i32
  }
  func.func @transform_11(%arg0: i32) -> (i32, i32) {
    %c0_i32 = arith.constant 0 : i32
    %c0_i32_0 = arith.constant 0 : i32
    return %arg0, %c0_i32 : i32, i32
  }
  func.func @transform_12(%arg0: i32) -> (i32, i32, i32) {
    %c0_i32 = arith.constant 0 : i32
    %c0_i32_0 = arith.constant 0 : i32
    %c0_i32_1 = arith.constant 0 : i32
    return %arg0, %c0_i32, %c0_i32_0 : i32, i32, i32
  }
  func.func @transform_13(%arg0: i32) -> (i32, i32, i32) {
    %c0_i32 = arith.constant 0 : i32
    %c0_i32_0 = arith.constant 0 : i32
    %c0_i32_1 = arith.constant 0 : i32
    return %arg0, %c0_i32, %c0_i32_0 : i32, i32, i32
  }
}

</mosaic_0001>

<bundles_post_ra>
// kernel: tpu_custom_call.1
= control target key start
LH: loop header
LB: loop body
LE: loop exit
PB: predicated region body
PF: predicated region fallthrough
CT: control target
= control target key end

     0   :  { %s4879_s0 = inlined_call_operand.hbm [shape: f32[16,64], index: 0, kind: input, shape index: {}]   ;;  %s4880_s1 = inlined_call_operand.vmem [shape: bf16[64,512], index: 1, kind: input, shape index: {}]   ;;  %s4881_s2 = inlined_call_operand.hbm [shape: bf16[512,256], index: 2, kind: input, shape index: {}]   ;;  %s4882_s3 = inlined_call_operand.vmem [shape: bf16[256,128], index: 3, kind: input, shape index: {}]   ;;  %s4883_s4 = inlined_call_operand.vmem [shape: f32[128,128], index: 4, kind: input, shape index: {}]   ;;  %s4884_s5 = inlined_call_operand.hbm [shape: f32[128,128], index: 5, kind: input, shape index: {}]   ;;  %s4885_s6 = inlined_call_operand.hbm [shape: bf16[128,256], index: 6, kind: input, shape index: {}]   ;;  %s4886_s7 = inlined_call_operand.hbm [shape: bf16[256,512], index: 7, kind: input, shape index: {}]   ;;  %s4887_s8 = inlined_call_operand.vmem [shape: bf16[512,64], index: 8, kind: input, shape index: {}]   ;;  %s4888_s9 = inlined_call_operand.vmem [shape: f32[1,1920], index: 9, kind: input, shape index: {}]   ;;  %s4889_s10 = inlined_call_operand.hbm [shape: f32[16,64], index: 10, kind: output, shape index: {0}]   ;;  %s4890_s11 = inlined_call_operand.hbm [shape: f32[16,128], index: 11, kind: output, shape index: {1}]   ;;  %s4891_s12 = inlined_call_operand.hbm [shape: s32[2,1,8], index: 12, kind: output, shape index: {2}]   ;;  %s4892_s13 = inlined_call_operand.hbm [shape: f32[2,1,8], index: 13, kind: output, shape index: {3}]  }
   0x1   :  { %4905 = sst [smem:[#allocation23_spill]] %s4879_s0 }
   0x2   :  { %4906 = sst [smem:[#allocation24_spill]] %s4880_s1 }
   0x3   :  { %4907 = sst [smem:[#allocation25_spill]] %s4881_s2 }
   0x4   :  { %4908 = sst [smem:[#allocation26_spill]] %s4882_s3 }
   0x5   :  { %4909 = sst [smem:[#allocation27_spill]] %s4883_s4 }
   0x6   :  { %4910 = sst [smem:[#allocation28_spill]] %s4884_s5 }
   0x7   :  { %4911 = sst [smem:[#allocation29_spill]] %s4885_s6 }
   0x8   :  { %4912 = sst [smem:[#allocation30_spill]] %s4887_s8 }
   0x9   :  { %4913 = sst [smem:[#allocation31_spill]] %s4889_s10 }
   0xa   :  { %4914 = sst [smem:[#allocation32_spill]] %s4890_s11 }
   0xb   :  { %4915 = sst [smem:[#allocation33_spill]] %s4891_s12 }
   0xc   :  { %4916 = sst [smem:[#allocation34_spill]] %s4892_s13 }
   0xd   :  { %19 = vsyncpa [#allocation3], 0 }
   0xe   :  { %21 = vsyncpa [#allocation3 + $0x1], 0 }
   0xf   :  { %22 = vsyncpa [#allocation6], 0 }
  0x10   :  { %23 = vsyncpa [#allocation9], 0 }
  0x11   :  { %24 = vsyncpa [#allocation4], 0 }
  0x12   :  { %26 = vsyncpa [#allocation4 + $0x1], 0 }
  0x13   :  { %27 = vsyncpa [#allocation13], 0 }
  0x14   :  { %29 = vsyncpa [#allocation13 + $0x1], 0 }
  0x15   :  { %30 = vsyncpa [#allocation16], 0 }
  0x16   :  { %32 = vsyncpa [#allocation16 + $0x1], 0  ;;  %s4151_s25 = smov 0   ;;  %s4153_s26 = smov 0  }
  0x17   :  { %s4155_s27 = smov 0   ;;  %s4157_s28 = smov 0  }
  0x18 LB: > { %s4063_s29 = smov [#allocation5]   ;;  %s4172_s14 = sadd.s32 4294967295, %s4061_s28   ;;  %s4061_s28 = sphi %s4157_s28, %s4953_s28   ;;  %s4057_s27 = sphi %s4155_s27, %s4952_s27   ;;  %s4053_s26 = sphi %s4153_s26, %s4951_s26   ;;  %s4049_s25 = sphi %s4151_s25, %s4950_s25  }
  0x19   : > { %s377_s30 = sshll.u32 %s4063_s29, 4  ;;  %p2889_p0 = scmp.ge.s32.totalorder %s4061_s28, 1  ;;  %s4177_s30 = int_to_ptr.vmem [resolvable:$true] %s377_s30 }
  0x1a   : > { %p4898_p1 = scmp.eq.s32.totalorder %s4172_s14, 0  ;;  %p362_p2 = scmp.lt.s32.totalorder %s4061_s28, 3 }
  0x1b   : > { %s4064_s16 = smov [#allocation8]   ;;  %s4065_s19 = smov [#allocation7]  }
  0x1c   : > { %p4179_p3 = pnand %p2889_p0, %p362_p2  ;;  %s409_s17 = sshll.u32 %s4064_s16, 4  ;;  %s4192_s17 = int_to_ptr.vmem [resolvable:$true] %s409_s17 }
  0x1d   : > { %s396_s20 = sshll.u32 %s4065_s19, 4  ;;  %s4919_s2 = sld [smem:[#allocation25_spill]]  ;;  %s4194_s20 = int_to_ptr.vmem [resolvable:$true] %s396_s20 }
  0x1e   : > { %s4917_s15 = scalar_select %p4179_p3, 1, 0 }
  0x1f   : > { %p3378_p5 = pneg %p4179_p3 }
  0x21   : > { %p4188_p6 = pnand %p3378_p5, %p4898_p1 }
  0x23   : > { %s3753_s23 = scalar_lea.hbm %s4919_s2, 8192  ;;  %p4204_p8 = pneg %p4188_p6 }
  0x24   : > { %p3754_p7 = scmp.ne.s32.totalorder %s4919_s2, %s3753_s23  ;;  %p3760_p11 = scmp.lt.u32.totalorder %s3753_s23, %s4919_s2 }
  0x26   : > { %p3756_p9 = pnand %p4204_p8, %p3754_p7 }
  0x28   : > { %p3757_p10 = pneg %p3756_p9 }
  0x2a   : > { %p3762_p12 = pnand %p3760_p11, %p3757_p10 }
  0x2c   : > { %3765 = shalt.err (!%p3762_p12)
}
  0x2d   : > { %s3766_s21 = scalar_lea.vmem %s4177_s30, 8192  ;;  %p3774_p5 = scmp.lt.s32.totalorder %s4177_s30, %s4177_s30 }
  0x2e   : > { %p3767_p13 = scmp.ne.s32.totalorder %s4177_s30, %s3766_s21  ;;  %p3775_p4 = scmp.lt.s32.totalorder %s3766_s21, %s3766_s21 }
  0x30   : > { %p3769_p0 = pnand %p3767_p13, %p4204_p8  ;;  %p3776_p7 = por %p3775_p4, %p3774_p5 }
  0x32   : > { %p3770_p2 = pneg %p3769_p0 }
  0x34   : > { %p3777_p9 = pnand %p3776_p7, %p3770_p2 }
  0x36   : > { %3780 = shalt.err (!%p3777_p9)
}
  0x37   : > { %s4066_s22 = smov 128   ;;  %s4067_s10 = smov 8  }
  0x38   : > { %3381 = dma.hbm_to_vmem [thread:$0]  (!%p4188_p6), %s4919_s2, 8192, %s4177_s30, [#allocation6], %s4066_s22, %s4066_s22, %s4067_s10  }
  0x39   : > { %s4921_s6 = sld [smem:[#allocation29_spill]] }
  0x3f   : > { %s3781_s21 = scalar_lea.hbm %s4921_s6, 2048 }
  0x40   : > { %p3782_p4 = scmp.ne.s32.totalorder %s4921_s6, %s3781_s21  ;;  %p3788_p12 = scmp.lt.u32.totalorder %s3781_s21, %s4921_s6 }
  0x42   : > { %p3784_p10 = pnand %p3782_p4, %p4204_p8 }
  0x44   : > { %p3785_p11 = pneg %p3784_p10 }
  0x46   : > { %p3790_p13 = pnand %p3788_p12, %p3785_p11 }
  0x48   : > { %3793 = shalt.err (!%p3790_p13)
}
  0x49   : > { %s3794_s30 = scalar_lea.vmem %s4192_s17, 2048  ;;  %p3802_p7 = scmp.lt.s32.totalorder %s4192_s17, %s4192_s17 }
  0x4a   : > { %p3795_p0 = scmp.ne.s32.totalorder %s4192_s17, %s3794_s30  ;;  %p3803_p9 = scmp.lt.s32.totalorder %s3794_s30, %s3794_s30 }
  0x4c   : > { %p3797_p2 = pnand %p3795_p0, %p4204_p8  ;;  %p3804_p4 = por %p3803_p9, %p3802_p7 }
  0x4e   : > { %p3798_p5 = pneg %p3797_p2 }
  0x50   : > { %p3805_p10 = pnand %p3804_p4, %p3798_p5 }
  0x52   : > { %3808 = shalt.err (!%p3805_p10)
}
  0x53   : > { %3387 = dma.hbm_to_vmem [thread:$0]  (!%p4188_p6), %s4921_s6, 2048, %s4192_s17, [#allocation9], %s4066_s22, %s4066_s22, %s4067_s10  }
  0x54   : > { %s4922_s5 = sld [smem:[#allocation28_spill]] }
  0x5a   : > { %s3809_s23 = scalar_lea.hbm %s4922_s5, 2048 }
  0x5b   : > { %p3810_p11 = scmp.ne.s32.totalorder %s4922_s5, %s3809_s23  ;;  %p3816_p0 = scmp.lt.u32.totalorder %s3809_s23, %s4922_s5 }
  0x5d   : > { %p3812_p12 = pnand %p3810_p11, %p4204_p8 }
  0x5f   : > { %p3813_p13 = pneg %p3812_p12 }
  0x61   : > { %p3818_p2 = pnand %p3816_p0, %p3813_p13 }
  0x63   : > { %3821 = shalt.err (!%p3818_p2)
}
  0x64   : > { %s3822_s17 = scalar_lea.vmem %s4194_s20, 2048  ;;  %p3830_p4 = scmp.lt.s32.totalorder %s4194_s20, %s4194_s20 }
  0x65   : > { %p3823_p5 = scmp.ne.s32.totalorder %s4194_s20, %s3822_s17  ;;  %p3831_p10 = scmp.lt.s32.totalorder %s3822_s17, %s3822_s17 }
  0x67   : > { %p3825_p7 = pnand %p3823_p5, %p4204_p8  ;;  %p3832_p11 = por %p3831_p10, %p3830_p4 }
  0x69   : > { %p3826_p9 = pneg %p3825_p7 }
  0x6b   : > { %p3833_p12 = pnand %p3832_p11, %p3826_p9 }
  0x6d   : > { %3836 = shalt.err (!%p3833_p12)
}
  0x6e   : > { %3384 = dma.hbm_to_vmem [thread:$0]  (!%p4188_p6), %s4922_s5, 2048, %s4194_s20, [#allocation6], %s4066_s22, %s4066_s22, %s4067_s10  }
  0x6f   : > { %s4068_s11 = smov [#allocation10]   ;;  %s3837_s24 = scalar_lea.hbm %s4886_s7, 8192 }
  0x70   : > { %s422_s12 = sshll.u32 %s4068_s11, 4  ;;  %p3838_p13 = scmp.ne.s32.totalorder %s4886_s7, %s3837_s24  ;;  %s423_s12 = int_to_ptr.vmem [resolvable:$true] %s422_s12 }
  0x71   : > { %p3844_p5 = scmp.lt.u32.totalorder %s3837_s24, %s4886_s7 }
  0x72   : > { %p3840_p0 = pnand %p3838_p13, %p4204_p8 }
  0x74   : > { %p3841_p2 = pneg %p3840_p0 }
  0x76   : > { %p3846_p7 = pnand %p3844_p5, %p3841_p2 }
  0x78   : > { %3849 = shalt.err (!%p3846_p7)
}
  0x79   : > { %s3850_s20 = scalar_lea.vmem %s423_s12, 8192  ;;  %p3858_p11 = scmp.lt.s32.totalorder %s423_s12, %s423_s12 }
  0x7a   : > { %p3851_p9 = scmp.ne.s32.totalorder %s423_s12, %s3850_s20  ;;  %p3859_p12 = scmp.lt.s32.totalorder %s3850_s20, %s3850_s20 }
  0x7c   : > { %p3853_p4 = pnand %p3851_p9, %p4204_p8  ;;  %p3860_p1 = por %p3859_p12, %p3858_p11 }
  0x7e   : > { %p3854_p10 = pneg %p3853_p4 }
  0x80   : > { %p3861_p3 = pnand %p3860_p1, %p3854_p10 }
  0x82   : > { %3864 = shalt.err (!%p3861_p3)
}
  0x83   : > { %s4069_s22 = smov 256   ;;  %s4070_s16 = smov 16  }
  0x84   : > { %3390 = dma.hbm_to_vmem [thread:$0]  (!%p4188_p6), %s4886_s7, 8192, %s423_s12, [#allocation9], %s4069_s22, %s4069_s22, %s4070_s16  }
  0x85   : > { %s4900_s8 = sadd.s32 4294967294, %s4061_s28   ;;  %s4300_s11 = sadd.s32 1, %s4061_s28  }
  0x86   : > { %s42_s13 = ssub.s32 %s4061_s28, %s4300_s11  ;;  %s45_s23 = sadd.s32 1, %s4057_s27 }
  0x87   : > { %p43_p1 = scmp.eq.s32.totalorder %s42_s13, 0  ;;  %p52_p3 = scmp.ne.s32.totalorder %s4057_s27, %s4053_s26 }
  0x88   : > { %p53_p8 = scmp.eq.s32.totalorder %s4061_s28, 0  ;;  %p58_p13 = scmp.ne.s32.totalorder %s4053_s26, %s4049_s25 }
  0x89   : > { %s4311_s24 = scalar_select %p43_p1, %s4057_s27, %s45_s23  }
  0x8a   : > { %p4313_p0 = por %p53_p8, %p52_p3  ;;  %p4924_p2 = scmp.eq.s32.totalorder %s4172_s14, 0 }
  0x8b   : > { %p271_p5 = scmp.eq.s32.totalorder %s4172_s14, 1  ;;  %p277_p7 = scmp.eq.s32.totalorder %s4900_s8, 1 }
  0x8c   : > { %p4319_p6 = por %p4924_p2, %p58_p13  ;;  %p3412_p9 = scmp.lt.s32.totalorder %s4061_s28, 2 }
  0x8d   : > { %s442_s29 = sand.u32 1, %s4057_s27   ;;  %p4328_p4 = por %p271_p5, %p52_p3 }
  0x8e   : > { %p4332_p10 = por %p277_p7, %p58_p13  ;;  %s2895_s17 = sshll.u32 %s442_s29, 3 }
  0x8f   : > { %s4926_s19 = scalar_select %p4328_p4, 1, 0 }
  0x90   : > { %s4927_s21 = scalar_select %p4332_p10, 1, 0 }
  0x91   : > { %s2896_s20 = sshll.u32 %s4061_s28, 7  ;;  %s4928_s0 = sld [smem:[#allocation23_spill]] }
  0x92   : > { %s446_s30 = scalar_lea.vmem [#allocation2], %s2895_s17  ;;  %p4346_p11 = pnand %p3412_p9, %p4313_p0 }
  0x93   : > { %s453_s13 = sshll.u32 %s446_s30, 4  ;;  %s443_s8 = scalar_lea.sflag [#allocation3], %s442_s29  ;;  %s4342_s13 = int_to_ptr.vmem [resolvable:$true] %s453_s13 }
  0x94   : > { %p3867_p1 = pneg %p4346_p11 }
  0x97   : > { %s4340_s10 = scalar_lea.hbm %s4928_s0, %s2896_s20  ;;  %s3870_s22 = scalar_lea.hbm %s4928_s0, 256 }
  0x98   : > { %s3865_s2 = scalar_lea.hbm %s4340_s10, 128  ;;  %p3871_p13 = scmp.lt.u32.totalorder %s4340_s10, %s4928_s0 }
  0x99   : > { %p3866_p12 = scmp.ne.s32.totalorder %s4340_s10, %s3865_s2  ;;  %p3872_p0 = scmp.lt.u32.totalorder %s3870_s22, %s3865_s2 }
  0x9a   : > { %p3874_p5 = scmp.lt.u32.totalorder %s3865_s2, %s4340_s10 }
  0x9b   : > { %p3868_p3 = pnand %p3867_p1, %p3866_p12  ;;  %p3873_p2 = por %p3872_p0, %p3871_p13 }
  0x9d   : > { %p3869_p8 = pneg %p3868_p3  ;;  %p3875_p7 = por %p3874_p5, %p3873_p2 }
  0x9f   : > { %p3876_p9 = pnand %p3875_p7, %p3869_p8 }
  0xa1   : > { %3879 = shalt.err (!%p3876_p9)
}
  0xa2   : > { %s3880_s29 = scalar_lea.vmem %s4342_s13, 128  ;;  %s4071_s30 = smov [#allocation2]  }
  0xa3   : > { %p3881_p12 = scmp.ne.s32.totalorder %s4342_s13, %s3880_s29  ;;  %s3885_s17 = sshll.u32 %s4071_s30, 4  ;;  %s3886_s17 = int_to_ptr.vmem [resolvable:$false] %s3885_s17 }
  0xa4   : > { %s3887_s20 = scalar_lea.vmem %s3886_s17, 256  ;;  %p3888_p4 = scmp.lt.s32.totalorder %s4342_s13, %s3886_s17 }
  0xa5   : > { %p3883_p3 = pnand %p3881_p12, %p3867_p1  ;;  %p3889_p13 = scmp.lt.s32.totalorder %s3887_s20, %s3880_s29 }
  0xa7   : > { %p3884_p10 = pneg %p3883_p3  ;;  %p3890_p0 = por %p3889_p13, %p3888_p4 }
  0xa9   : > { %p3891_p2 = pnand %p3890_p0, %p3884_p10 }
  0xab   : > { %3894 = shalt.err (!%p3891_p2)
}
  0xac   : > { %3394 = dma.hbm_to_vmem [thread:$0]  (!%p4346_p11), %s4340_s10, 128, %s4342_s13, %s443_s8  }
  0xad   : > { %p4930_p8 = scmp.ne.s32.totalorder %s4917_s15, 0 }
  0xae   : > { %s4378_s2 = sand.u32 (!%p4930_p8), 1, %s4053_s26  }
  0xaf   : > { %462 = sbr.rel (%p4930_p8) target bundleno = 2486 (0x9b6), region = 60  ;;  %s4381_s22 = sshll.u32 (!%p4930_p8), %s4378_s2, 3 }
  0xb0   : > { %s465_s18 = scalar_lea.sflag (!%p4930_p8), [#allocation3], %s4378_s2  ;;  %s468_s16 = scalar_lea.vmem (!%p4930_p8), [#allocation2], %s4381_s22 }
  0xb6   : > { %4024 = dma.done.wait (%p4319_p6), %s465_s18, 128  }
  0xb7   : > { %4026 = vsyncadd (%p4319_p6), %s465_s18, 4294967168  ;;  %p4931_p4 = scmp.eq.s32.totalorder %s4172_s14, 0 }
  0xb9   : > { %4028 = dma.done.wait (%p4931_p4), [#allocation6], 10240   ;;  %p4932_p10 = pmov %p4931_p4 }
  0xba   : > { %p4933_p11 = pmov %p4931_p4 }
  0xbb   : > { %4030 = vsyncadd (%p4932_p10), [#allocation6], 4294957056 }
  0xbc   : > { %4032 = dma.done.wait (%p4933_p11), [#allocation9], 10240   ;;  %p4934_p1 = pmov %p4931_p4 }
  0xbd   : > { %v4072_v0 = vmov 0   ;;  %s4935_s1 = sld [smem:[#allocation24_spill]]  ;;  %v541_v14 = vld [vmem:[%s468_s16] sm:$0xff]  ;;  %v3489_v15 = vld [vmem:[#allocation5 + $0x4] ss:$8 sps:$4 sm:$0xff]   ;;  %vm661_vm0 = vcmask 523264  }
  0xbe   : > { %4034 = vsyncadd (%p4934_p1), [#allocation9], 4294957056  ;;  %697 = vmatprep.mubr.bf16.mxu0 %v4072_v0  ;;  %738 = vmatprep.mubr.bf16.mxu1 %v4072_v0  ;;  %v542_v17 = vpack.c.bf16 %v541_v14, %v541_v14  ;;  %v3487_v19 = vld [vmem:[#allocation5] ss:$8 sps:$4 sm:$0xff]   ;;  %v3492_v20 = vld [vmem:[#allocation5 + $0x14] ss:$8 sps:$4 sm:$0xff]  }
  0xbf   : > { %v3490_v22 = vld [vmem:[#allocation5 + $0x10] ss:$8 sps:$4 sm:$0xff]   ;;  %v3495_v23 = vld [vmem:[#allocation5 + $0x24] ss:$8 sps:$4 sm:$0xff]   ;;  %v3493_v24 = vld [vmem:[#allocation5 + $0x20] ss:$8 sps:$4 sm:$0xff]  }
  0xc0   : > { %v3498_v25 = vld [vmem:[#allocation5 + $0x34] ss:$8 sps:$4 sm:$0xff]   ;;  %v3496_v26 = vld [vmem:[#allocation5 + $0x30] ss:$8 sps:$4 sm:$0xff]   ;;  %v3501_v27 = vld [vmem:[#allocation5 + $0x44] ss:$8 sps:$4 sm:$0xff]  }
  0xc1   : > { %v3499_v28 = vld [vmem:[#allocation5 + $0x40] ss:$8 sps:$4 sm:$0xff]   ;;  %v3504_v29 = vld [vmem:[#allocation5 + $0x54] ss:$8 sps:$4 sm:$0xff]   ;;  %v3502_v30 = vld [vmem:[#allocation5 + $0x50] ss:$8 sps:$4 sm:$0xff]  }
  0xc2   : > { %v3507_v31 = vld [vmem:[#allocation5 + $0x64] ss:$8 sps:$4 sm:$0xff]   ;;  %v3505_v32 = vld [vmem:[#allocation5 + $0x60] ss:$8 sps:$4 sm:$0xff]   ;;  %v3510_v33 = vld [vmem:[#allocation5 + $0x74] ss:$8 sps:$4 sm:$0xff]  }
  0xc3   : > { %v3463_v1 = vld [vmem:[%s4935_s1 + $0x4] ss:$16 sps:$4 sm:$0xff]   ;;  %v3465_v2 = vld [vmem:[%s4935_s1] ss:$16 sps:$4 sm:$0xff]   ;;  %v3475_v7 = vld [vmem:[%s4935_s1 + $0xc] ss:$16 sps:$4 sm:$0xff]  }
  0xc4   : > { %665 = vmatprep.subr.bf16.mxu0 %v3463_v1  ;;  %v3466_v3 = vld [vmem:[%s4935_s1 + $0x24] ss:$16 sps:$4 sm:$0xff]   ;;  %v3468_v4 = vld [vmem:[%s4935_s1 + $0x20] ss:$16 sps:$4 sm:$0xff]   ;;  %v3477_v8 = vld [vmem:[%s4935_s1 + $0x8] ss:$16 sps:$4 sm:$0xff]   ;;  %706 = vmatprep.subr.bf16.mxu1 %v3475_v7  ;;  %v561_v1 = vlaneseq }
  0xc5   : > { %666 = vmatpush1.bf16.msra.mxu0 %v3465_v2  ;;  %v3469_v5 = vld [vmem:[%s4935_s1 + $0x44] ss:$16 sps:$4 sm:$0xff]   ;;  %v3471_v6 = vld [vmem:[%s4935_s1 + $0x40] ss:$16 sps:$4 sm:$0xff]   ;;  %v3478_v9 = vld [vmem:[%s4935_s1 + $0x2c] ss:$16 sps:$4 sm:$0xff]   ;;  %707 = vmatpush1.bf16.msra.mxu1 %v3477_v8 }
  0xc6   : > { %667 = vmatprep.subr.bf16.mxu0 %v3466_v3  ;;  %v3472_v10 = vld [vmem:[%s4935_s1 + $0x64] ss:$16 sps:$4 sm:$0xff]   ;;  %v3480_v11 = vld [vmem:[%s4935_s1 + $0x28] ss:$16 sps:$4 sm:$0xff]   ;;  %v3474_v12 = vld [vmem:[%s4935_s1 + $0x60] ss:$16 sps:$4 sm:$0xff]   ;;  %708 = vmatprep.subr.bf16.mxu1 %v3478_v9 }
  0xc7   : > { %v3481_v13 = vld [vmem:[%s4935_s1 + $0x4c] ss:$16 sps:$4 sm:$0xff]   ;;  %v3483_v16 = vld [vmem:[%s4935_s1 + $0x48] ss:$16 sps:$4 sm:$0xff]   ;;  %s4936_s3 = sld [smem:[#allocation26_spill]]  ;;  %v4488_v2 = vshrl.u32 %v561_v1, 7 }
  0xc8   : > { %v3484_v18 = vld [vmem:[%s4935_s1 + $0x6c] ss:$16 sps:$4 sm:$0xff]   ;;  %v3486_v21 = vld [vmem:[%s4935_s1 + $0x68] ss:$16 sps:$4 sm:$0xff]   ;;  %vm4074_vm1 = vmmov 0   ;;  %s527_s15 = scalar_lea.vmem [#allocation12], %s4381_s22 }
  0xc9   : > { %668 = vmatpush1.bf16.msra.mxu0 %v3468_v4  ;;  %709 = vmatpush1.bf16.msra.mxu1 %v3480_v11  ;;  %v3508_v34 = vld [vmem:[#allocation5 + $0x70] ss:$8 sps:$4 sm:$0xff]   ;;  %v3513_v35 = vld [vmem:[#allocation5 + $0x84] ss:$8 sps:$4 sm:$0xff]   ;;  %v3511_v36 = vld [vmem:[#allocation5 + $0x80] ss:$8 sps:$4 sm:$0xff]  }
  0xca   : > { %669 = vmatprep.subr.bf16.mxu0 %v3469_v5  ;;  %710 = vmatprep.subr.bf16.mxu1 %v3481_v13  ;;  %v3516_v37 = vld [vmem:[#allocation5 + $0x94] ss:$8 sps:$4 sm:$0xff]   ;;  %v3514_v38 = vld [vmem:[#allocation5 + $0x90] ss:$8 sps:$4 sm:$0xff]   ;;  %v3519_v39 = vld [vmem:[#allocation5 + $0xa4] ss:$8 sps:$4 sm:$0xff]  }
  0xcb   : > { %v3517_v40 = vld [vmem:[#allocation5 + $0xa0] ss:$8 sps:$4 sm:$0xff]   ;;  %v3522_v41 = vld [vmem:[#allocation5 + $0xb4] ss:$8 sps:$4 sm:$0xff]   ;;  %v3520_v42 = vld [vmem:[#allocation5 + $0xb0] ss:$8 sps:$4 sm:$0xff]  }
  0xcc   : > { %v3525_v43 = vld [vmem:[#allocation5 + $0xc4] ss:$8 sps:$4 sm:$0xff]   ;;  %v3523_v44 = vld [vmem:[#allocation5 + $0xc0] ss:$8 sps:$4 sm:$0xff]   ;;  %v3528_v45 = vld [vmem:[#allocation5 + $0xd4] ss:$8 sps:$4 sm:$0xff]  }
  0xcd   : > { %670 = vmatpush1.bf16.msra.mxu0 %v3471_v6  ;;  %711 = vmatpush1.bf16.msra.mxu1 %v3483_v16  ;;  %v3526_v46 = vld [vmem:[#allocation5 + $0xd0] ss:$8 sps:$4 sm:$0xff]   ;;  %v3531_v47 = vld [vmem:[#allocation5 + $0xe4] ss:$8 sps:$4 sm:$0xff]   ;;  %v3529_v48 = vld [vmem:[#allocation5 + $0xe0] ss:$8 sps:$4 sm:$0xff]  }
  0xce   : > { %671 = vmatprep.subr.bf16.mxu0 %v3472_v10  ;;  %712 = vmatprep.subr.bf16.mxu1 %v3484_v18  ;;  %v3534_v49 = vld [vmem:[#allocation5 + $0xf4] ss:$8 sps:$4 sm:$0xff]   ;;  %v3532_v50 = vld [vmem:[#allocation5 + $0xf0] ss:$8 sps:$4 sm:$0xff]   ;;  %v3537_v51 = vld [vmem:[#allocation5 + $0x104] ss:$8 sps:$4 sm:$0xff]  }
  0xcf   : > { %v3583_v52 = vld [vmem:[%s4936_s3 + $0x40] sm:$0xff]   ;;  %v3585_v54 = vld [vmem:[%s4936_s3 + $0x48] sm:$0xff]   ;;  %v3587_v56 = vld [vmem:[%s4936_s3 + $0x50] sm:$0xff]   ;;  %v4491_v3 = vsub.s32 0, %v4488_v2  ;;  %v4499_v5 = vsub.s32 1, %v4488_v2  ;;  %v575_v9 = vsub.s32 3, %v4488_v2 }
  0xd0   : > { %v3584_v53 = vld [vmem:[%s4936_s3] sm:$0xff]   ;;  %v3586_v55 = vld [vmem:[%s4936_s3 + $0x8] sm:$0xff]   ;;  %v3588_v57 = vld [vmem:[%s4936_s3 + $0x10] sm:$0xff]   ;;  %s4937_s4 = sld [smem:[#allocation27_spill]]  ;;  %vm1532_vm4 = vcmask 57344   ;;  %s4903_s12 = scalar_lea.vmem [#allocation14], %s4378_s2 }
  0xd1   : > { %672 = vmatpush1.bf16.msra.mxu0 %v3474_v12  ;;  %713 = vmatpush1.bf16.msra.mxu1 %v3486_v21  ;;  %v3589_v58 = vld [vmem:[%s4936_s3 + $0x58] sm:$0xff]   ;;  %v3591_v60 = vld [vmem:[%s4936_s3 + $0x60] sm:$0xff]   ;;  %v3593_v62 = vld [vmem:[%s4936_s3 + $0x68] sm:$0xff]   ;;  %s4938_s23 = sld [smem:[#allocation30_spill]]  ;;  %s4902_s16 = scalar_lea.vmem [#allocation15], %s4378_s2 }
  0xd2   : > { %1151 = vmatprep.subr.bf16.mxu0 %v3489_v15  ;;  %3128 = vmatprep.subr.bf16.mxu1 %v3583_v52  ;;  %v3590_v59 = vld [vmem:[%s4936_s3 + $0x18] sm:$0xff]   ;;  %v3592_v61 = vld [vmem:[%s4936_s3 + $0x20] sm:$0xff]   ;;  %v3594_v63 = vld [vmem:[%s4936_s3 + $0x28] sm:$0xff]   ;;  %v571_v52 = vsub.s32 2, %v4488_v2  ;;  %s2634_s29 = sand.u32 1, %s4172_s14   ;;  %s4904_s30 = sshll.u32 %s4172_s14, 7 }
  0xd3   : > { %v4496_v4 = vld [vmem:[%s4888_s9] sm:$0xf]  ;;  %s2669_s18 = sshll.u32 %s527_s15, 4  ;;  %s4752_s8 = scalar_lea.sflag [#allocation13], %s2634_s29  ;;  %s2670_s18 = int_to_ptr.vmem [resolvable:$true] %s2669_s18 }
  0xd4   : > { %2921 = vmatmul.mubr.msk.bf16.vlgmr.msra.gmra.mrb[0].mxu0 %vm661_vm0, %v542_v17  ;;  %2922 = vmatmul.mubr.msk.bf16.vlgmr.msra.gmra.mrb[0].mxu1 %vm661_vm0, %v542_v17  ;;  %v564_v6 = vrot.slane %v4496_v4, %v4491_v3  ;;  %v568_v7 = vrot.slane %v4496_v4, %v4499_v5  ;;  %v576_v17 = vrot.slane %v4496_v4, %v575_v9  ;;  %s3895_s10 = scalar_lea.vmem %s2670_s18, 128  ;;  %p4940_p5 = scmp.ne.s32.totalorder %s4926_s19, 0 }
  0xd5   : > { %1152 = vmatpush1.bf16.msra.mxu0 %v3487_v19  ;;  %3129 = vmatpush3.bf16.msra.mxu1 %v3584_v53  ;;  %v3535_v19 = vld [vmem:[#allocation5 + $0x100] ss:$8 sps:$4 sm:$0xff]   ;;  %v3576_v53 = vld [vmem:[#allocation5 + $0x1d4] ss:$8 sps:$4 sm:$0xff]   ;;  %p3896_p6 = scmp.ne.s32.totalorder %s2670_s18, %s3895_s10  ;;  %s4077_s13 = smov [#allocation12]  }
  0xd6   : > { %1153 = vmatprep.subr.bf16.mxu0 %v3492_v20  ;;  %3130 = vmatprep.subr.bf16.mxu1 %v3585_v54  ;;  %v3574_v54 = vld [vmem:[#allocation5 + $0x1d0] ss:$8 sps:$4 sm:$0xff]   ;;  %s3899_s0 = sshll.u32 %s4077_s13, 4  ;;  %s3900_s0 = int_to_ptr.vmem [resolvable:$false] %s3899_s0 }
  0xd7   : > { %p3897_p7 = pnand %p3896_p6, %p4940_p5  ;;  %s3901_s1 = scalar_lea.vmem %s3900_s0, 256 }
  0xd8   : > { %p3902_p12 = scmp.lt.s32.totalorder %s2670_s18, %s3900_s0  ;;  %p3903_p3 = scmp.lt.s32.totalorder %s3901_s1, %s3895_s10 }
  0xd9   : > { %1154 = vmatpush1.bf16.msra.mxu0 %v3490_v22  ;;  %3131 = vmatpush3.bf16.msra.mxu1 %v3586_v55  ;;  %v3540_v22 = vld [vmem:[#allocation5 + $0x114] ss:$8 sps:$4 sm:$0xff]   ;;  %v572_v55 = vrot.slane %v4496_v4, %v571_v52  ;;  %v3596_v4 = vld [vmem:[%s4936_s3 + $0x30] sm:$0xff]   ;;  %p3898_p9 = pneg %p3897_p7 }
  0xda   : > { %1155 = vmatprep.subr.bf16.mxu0 %v3495_v23  ;;  %3132 = vmatprep.subr.bf16.mxu1 %v3587_v56  ;;  %v3579_v56 = vld [vmem:[#allocation5 + $0x1e4] ss:$8 sps:$4 sm:$0xff]   ;;  %p3904_p13 = por %p3903_p3, %p3902_p12 }
  0xdc   : > { %p3905_p0 = pnand %p3904_p13, %p3898_p9 }
  0xdd   : > { %1156 = vmatpush1.bf16.msra.mxu0 %v3493_v24  ;;  %3133 = vmatpush3.bf16.msra.mxu1 %v3588_v57  ;;  %v3577_v57 = vld [vmem:[#allocation5 + $0x1e0] ss:$8 sps:$4 sm:$0xff]  }
  0xde   : > { %1157 = vmatprep.subr.bf16.mxu0 %v3498_v25  ;;  %3134 = vmatprep.subr.bf16.mxu1 %v3589_v58 }
  0xe1   : > { %1158 = vmatpush1.bf16.msra.mxu0 %v3496_v26  ;;  %3135 = vmatpush3.bf16.msra.mxu1 %v3590_v59  ;;  %v3582_v59 = vld [vmem:[#allocation5 + $0x1f4] ss:$8 sps:$4 sm:$0xff]  }
  0xe2   : > { %1159 = vmatprep.subr.bf16.mxu0 %v3501_v27  ;;  %3136 = vmatprep.subr.bf16.mxu1 %v3591_v60  ;;  %v3538_v27 = vld [vmem:[#allocation5 + $0x110] ss:$8 sps:$4 sm:$0xff]  }
  0xe3   : > { %v3580_v60 = vld [vmem:[#allocation5 + $0x1f0] ss:$8 sps:$4 sm:$0xff]  }
  0xe5   : > { %1160 = vmatpush1.bf16.msra.mxu0 %v3499_v28  ;;  %3137 = vmatpush3.bf16.msra.mxu1 %v3592_v61 }
  0xe6   : > { %1161 = vmatprep.subr.bf16.mxu0 %v3504_v29  ;;  %3138 = vmatprep.subr.bf16.mxu1 %v3593_v62  ;;  %v3543_v29 = vld [vmem:[#allocation5 + $0x124] ss:$8 sps:$4 sm:$0xff]  }
  0xe9   : > { %1162 = vmatpush1.bf16.msra.mxu0 %v3502_v30  ;;  %3139 = vmatpush3.bf16.msra.mxu1 %v3594_v63  ;;  %v3595_v63 = vld [vmem:[%s4936_s3 + $0x70] sm:$0xff]  }
  0xea   : > { %1163 = vmatprep.subr.bf16.mxu0 %v3507_v31  ;;  %v3541_v31 = vld [vmem:[#allocation5 + $0x120] ss:$8 sps:$4 sm:$0xff]   ;;  %3140 = vmatprep.subr.bf16.mxu1 %v3595_v63 }
  0xed   : > { %1164 = vmatpush1.bf16.msra.mxu0 %v3505_v32  ;;  %v3546_v32 = vld [vmem:[#allocation5 + $0x134] ss:$8 sps:$4 sm:$0xff]   ;;  %3141 = vmatpush3.bf16.msra.mxu1 %v3596_v4 }
  0xee   : > { %1165 = vmatprep.subr.bf16.mxu0 %v3510_v33  ;;  %v3544_v33 = vld [vmem:[#allocation5 + $0x130] ss:$8 sps:$4 sm:$0xff]  }
  0xf1   : > { %1166 = vmatpush1.bf16.msra.mxu0 %v3508_v34  ;;  %v3549_v34 = vld [vmem:[#allocation5 + $0x144] ss:$8 sps:$4 sm:$0xff]  }
  0xf2   : > { %1167 = vmatprep.subr.bf16.mxu0 %v3513_v35  ;;  %v3547_v35 = vld [vmem:[#allocation5 + $0x140] ss:$8 sps:$4 sm:$0xff]  }
  0xf5   : > { %1168 = vmatpush1.bf16.msra.mxu0 %v3511_v36  ;;  %v3552_v36 = vld [vmem:[#allocation5 + $0x154] ss:$8 sps:$4 sm:$0xff]  }
  0xf6   : > { %1169 = vmatprep.subr.bf16.mxu0 %v3516_v37  ;;  %v3550_v37 = vld [vmem:[#allocation5 + $0x150] ss:$8 sps:$4 sm:$0xff]  }
  0xf9   : > { %1170 = vmatpush1.bf16.msra.mxu0 %v3514_v38  ;;  %v3555_v38 = vld [vmem:[#allocation5 + $0x164] ss:$8 sps:$4 sm:$0xff]  }
  0xfa   : > { %1171 = vmatprep.subr.bf16.mxu0 %v3519_v39  ;;  %v3553_v39 = vld [vmem:[#allocation5 + $0x160] ss:$8 sps:$4 sm:$0xff]  }
  0xfd   : > { %1172 = vmatpush1.bf16.msra.mxu0 %v3517_v40  ;;  %v3558_v40 = vld [vmem:[#allocation5 + $0x174] ss:$8 sps:$4 sm:$0xff]  }
  0xfe   : > { %1173 = vmatprep.subr.bf16.mxu0 %v3522_v41  ;;  %v3556_v41 = vld [vmem:[#allocation5 + $0x170] ss:$8 sps:$4 sm:$0xff]  }
 0x101   : > { %1174 = vmatpush1.bf16.msra.mxu0 %v3520_v42  ;;  %v3561_v42 = vld [vmem:[#allocation5 + $0x184] ss:$8 sps:$4 sm:$0xff]  }
 0x102   : > { %1175 = vmatprep.subr.bf16.mxu0 %v3525_v43  ;;  %v3559_v43 = vld [vmem:[#allocation5 + $0x180] ss:$8 sps:$4 sm:$0xff]  }
 0x105   : > { %1176 = vmatpush1.bf16.msra.mxu0 %v3523_v44  ;;  %v3564_v44 = vld [vmem:[#allocation5 + $0x194] ss:$8 sps:$4 sm:$0xff]  }
 0x106   : > { %1177 = vmatprep.subr.bf16.mxu0 %v3528_v45  ;;  %v3562_v45 = vld [vmem:[#allocation5 + $0x190] ss:$8 sps:$4 sm:$0xff]  }
 0x109   : > { %1178 = vmatpush1.bf16.msra.mxu0 %v3526_v46  ;;  %v3567_v46 = vld [vmem:[#allocation5 + $0x1a4] ss:$8 sps:$4 sm:$0xff]  }
 0x10a   : > { %1179 = vmatprep.subr.bf16.mxu0 %v3531_v47  ;;  %v3565_v47 = vld [vmem:[#allocation5 + $0x1a0] ss:$8 sps:$4 sm:$0xff]  }
 0x10d   : > { %1180 = vmatpush1.bf16.msra.mxu0 %v3529_v48  ;;  %v3570_v48 = vld [vmem:[#allocation5 + $0x1b4] ss:$8 sps:$4 sm:$0xff]  }
 0x10e   : > { %1181 = vmatprep.subr.bf16.mxu0 %v3534_v49  ;;  %v3568_v49 = vld [vmem:[#allocation5 + $0x1b0] ss:$8 sps:$4 sm:$0xff]  }
 0x111   : > { %1182 = vmatpush1.bf16.msra.mxu0 %v3532_v50  ;;  %v3573_v50 = vld [vmem:[#allocation5 + $0x1c4] ss:$8 sps:$4 sm:$0xff]  }
 0x112   : > { %1192 = vmatprep.subr.bf16.mxu0 %v3537_v51  ;;  %v3571_v51 = vld [vmem:[#allocation5 + $0x1c0] ss:$8 sps:$4 sm:$0xff]  }
 0x1a7   : > { %v699_v8 = vpop.f32.mrb[0].mxu0  ;;  %v4509_v20 = vpop.f32.mrb[0].mxu1 }
 0x1a8   : > { %v700_v10 = vadd.f32 %v699_v8, %v564_v6  ;;  %v701_v11 = vpop.f32.mrb[1].mxu0  ;;  %v742_v23 = vpop.f32.mrb[1].mxu1  ;;  %v741_v58 = vadd.f32 %v4509_v20, %v572_v55  ;;  %v3597_v6 = vld [vmem:[%s4936_s3 + $0x78] sm:$0xff]   ;;  %v4073_v8 = vmov 0.0|0.0   ;;  %v1414_v20 = vld [vmem:[#allocation7] sm:$0xff] }
 0x1a9   : > { %v702_v12 = vadd.f32 %v701_v11, %v568_v7  ;;  %v703_v13 = vpop.f32.mrb[2].mxu0  ;;  %v743_v24 = vadd.f32 %v742_v23, %v576_v17  ;;  %v744_v25 = vpop.f32.mrb[2].mxu1  ;;  %v3598_v7 = vld [vmem:[%s4936_s3 + $0x38] sm:$0xff]   ;;  %3142 = vmatprep.subr.bf16.mxu1 %v3597_v6 }
 0x1aa   : > { %v747_v14 = vmax.f32 %v700_v10, 0.0  ;;  %v704_v15 = vpop.f32.mrb[3].mxu0  ;;  %v745_v26 = vpop.f32.mrb[3].mxu1  ;;  %v749_v61 = vmax.f32 %v741_v58, 0.0  ;;  %3143 = vmatpush3.bf16.msra.mxu1 %v3598_v7  ;;  %v819_v10 = vld [vmem:[%s4888_s9 + $0x4] sm:$0x3] }
 0x1ab   : > { %v748_v16 = vmax.f32 %v702_v12, 0.0  ;;  %v750_v28 = vmax.f32 %v743_v24, 0.0  ;;  %3298 = vmatprep.subr.bf16.mxu1 %v4073_v8  ;;  %v824_v11 = vrot.slane %v819_v10, %v4491_v3  ;;  %v828_v12 = vrot.slane %v819_v10, %v4499_v5  ;;  %v1416_v26 = vld [vmem:[#allocation7 + $0x10] sm:$0xff]  ;;  %v1538_v10 = vld [vmem:[%s4937_s4 + $0x8] sm:$0xff] }
 0x1ac   : > { %v751_v21 = vpack.c.bf16 %v747_v14, %v747_v14  ;;  %v753_v62 = vpack.c.bf16 %v749_v61, %v749_v61  ;;  %v4556_v61 = vand.u32 127, %v561_v1  ;;  %v1537_v7 = vld [vmem:[%s4937_s4] sm:$0xff]  ;;  %v1539_v1 = vld [vmem:[%s4937_s4 + $0x10] sm:$0xff] }
 0x1ad   : > { %v752_v18 = vpack.c.bf16 %v748_v16, %v748_v16  ;;  %v754_v30 = vpack.c.bf16 %v750_v28, %v750_v28 }
 0x1af   : > { %1183 = vmatprep.mubr.bf16.mxu0 %v752_v18 }
 0x1b0   : > { %1184 = vmatmul.mubr.bf16.vlgmr.msra.gmra.mrb[4].mxu0 %v751_v21  ;;  %v1415_v21 = vld [vmem:[#allocation7 + $0x8] sm:$0xff] }
 0x1b1   : > { %1193 = vmatpush1.bf16.msra.mxu0 %v3535_v19  ;;  %1224 = vmatprep.mubr.bf16.mxu0 %v754_v30  ;;  %v3299_v24 = vpack.c.bf16 %v1415_v21, %v1414_v20  ;;  %v1419_v30 = vld [vmem:[#allocation7 + $0x28] sm:$0xff]  ;;  %v1545_v20 = vld [vmem:[%s4937_s4 + $0x40] sm:$0xff]  ;;  %v1546_v21 = vld [vmem:[%s4937_s4 + $0x48] sm:$0xff] }
 0x1b2   : > { %1194 = vmatprep.subr.bf16.mxu0 %v3540_v22 }
 0x1b5   : > { %1195 = vmatpush1.bf16.msra.mxu0 %v3538_v27  ;;  %v1417_v27 = vld [vmem:[#allocation7 + $0x18] sm:$0xff] }
 0x1b6   : > { %1196 = vmatprep.subr.bf16.mxu0 %v3543_v29  ;;  %v3302_v28 = vpack.c.bf16 %v1417_v27, %v1416_v26  ;;  %v1418_v29 = vld [vmem:[#allocation7 + $0x20] sm:$0xff]  ;;  %v1549_v26 = vld [vmem:[%s4937_s4 + $0x60] sm:$0xff]  ;;  %v1550_v27 = vld [vmem:[%s4937_s4 + $0x68] sm:$0xff] }
 0x1b9   : > { %1197 = vmatpush1.bf16.msra.mxu0 %v3541_v31  ;;  %v3305_v31 = vpack.c.bf16 %v1419_v30, %v1418_v29 }
 0x1ba   : > { %1198 = vmatprep.subr.bf16.mxu0 %v3546_v32  ;;  %v1420_v32 = vld [vmem:[#allocation7 + $0x30] sm:$0xff] }
 0x1bd   : > { %1199 = vmatpush1.bf16.msra.mxu0 %v3544_v33  ;;  %v1421_v33 = vld [vmem:[#allocation7 + $0x38] sm:$0xff] }
 0x1be   : > { %1200 = vmatprep.subr.bf16.mxu0 %v3549_v34  ;;  %v3308_v34 = vpack.c.bf16 %v1421_v33, %v1420_v32  ;;  %v1551_v33 = vld [vmem:[%s4937_s4 + $0x70] sm:$0xff] }
 0x1c1   : > { %1201 = vmatpush1.bf16.msra.mxu0 %v3547_v35  ;;  %v1422_v35 = vld [vmem:[#allocation7 + $0x40] sm:$0xff] }
 0x1c2   : > { %1202 = vmatprep.subr.bf16.mxu0 %v3552_v36  ;;  %v1423_v36 = vld [vmem:[#allocation7 + $0x48] sm:$0xff] }
 0x1c5   : > { %1203 = vmatpush1.bf16.msra.mxu0 %v3550_v37  ;;  %v3311_v37 = vpack.c.bf16 %v1423_v36, %v1422_v35  ;;  %v3601_v36 = vld [vmem:[#allocation8 + $0x4] ss:$8 sps:$4 sm:$0xff]  }
 0x1c6   : > { %1204 = vmatprep.subr.bf16.mxu0 %v3555_v38  ;;  %v1424_v38 = vld [vmem:[#allocation7 + $0x50] sm:$0xff] }
 0x1c9   : > { %1205 = vmatpush1.bf16.msra.mxu0 %v3553_v39  ;;  %v1425_v39 = vld [vmem:[#allocation7 + $0x58] sm:$0xff] }
 0x1ca   : > { %1206 = vmatprep.subr.bf16.mxu0 %v3558_v40  ;;  %v3314_v40 = vpack.c.bf16 %v1425_v39, %v1424_v38 }
 0x1cd   : > { %1207 = vmatpush1.bf16.msra.mxu0 %v3556_v41  ;;  %v1426_v41 = vld [vmem:[#allocation7 + $0x60] sm:$0xff] }
 0x1ce   : > { %1208 = vmatprep.subr.bf16.mxu0 %v3561_v42  ;;  %v1427_v42 = vld [vmem:[#allocation7 + $0x68] sm:$0xff] }
 0x1d1   : > { %1209 = vmatpush1.bf16.msra.mxu0 %v3559_v43  ;;  %v3317_v43 = vpack.c.bf16 %v1427_v42, %v1426_v41  ;;  %v3599_v42 = vld [vmem:[#allocation8] ss:$8 sps:$4 sm:$0xff]  }
 0x1d2   : > { %1210 = vmatprep.subr.bf16.mxu0 %v3564_v44  ;;  %v1428_v44 = vld [vmem:[#allocation7 + $0x70] sm:$0xff] }
 0x1d5   : > { %1211 = vmatpush1.bf16.msra.mxu0 %v3562_v45  ;;  %v1429_v45 = vld [vmem:[#allocation7 + $0x78] sm:$0xff] }
 0x1d6   : > { %1212 = vmatprep.subr.bf16.mxu0 %v3567_v46  ;;  %v3320_v46 = vpack.c.bf16 %v1429_v45, %v1428_v44  ;;  %v4076_v45 = vmov 1.0  }
 0x1d9   : > { %1213 = vmatpush1.bf16.msra.mxu0 %v3565_v47  ;;  %v4075_v47 = vmov 0.0  }
 0x1da   : > { %1214 = vmatprep.subr.bf16.mxu0 %v3570_v48 }
 0x1dd   : > { %1215 = vmatpush1.bf16.msra.mxu0 %v3568_v49  ;;  %v2987_v49 = vld [vmem:[%s4888_s9 + $0x6] ss:$0 sm:$0xff] }
 0x1de   : > { %1216 = vmatprep.subr.bf16.mxu0 %v3573_v50 }
 0x1e1   : > { %1217 = vmatpush1.bf16.msra.mxu0 %v3571_v51 }
 0x1e2   : > { %1218 = vmatprep.subr.bf16.mxu0 %v3576_v53 }
 0x1e5   : > { %1219 = vmatpush1.bf16.msra.mxu0 %v3574_v54 }
 0x1e6   : > { %1220 = vmatprep.subr.bf16.mxu0 %v3579_v56 }
 0x1e9   : > { %1221 = vmatpush1.bf16.msra.mxu0 %v3577_v57  ;;  %v3004_v57 = vld [vmem:[%s4888_s9 + $0xe] ss:$0 sm:$0xff] }
 0x1ea   : > { %1222 = vmatprep.subr.bf16.mxu0 %v3582_v59 }
 0x1ed   : > { %1223 = vmatpush1.bf16.msra.mxu0 %v3580_v60 }
 0x1f0   : > { %1225 = vmatmul.mubr.bf16.vlgmr.msra.gmra.mrb[4].mxu0 %v753_v62 }
 0x2c3   : > { %v1226_v13 = vpop.f32.mrb[4].mxu0 }
 0x2c4   : > { %v3346_v14 = vadd.f32 %v1226_v13, %v824_v11  ;;  %v1228_v15 = vpop.f32.mrb[5].mxu0  ;;  %v3323_v11 = vpack.c.bf16 %v1538_v10, %v1537_v7  ;;  %v3625_v7 = vld [vmem:[#allocation10 + $0x4] ss:$16 sps:$4 sm:$0xff]   ;;  %v3626_v10 = vld [vmem:[#allocation10 + $0x8] ss:$16 sps:$4 sm:$0xff]  }
 0x2c5   : > { %v3347_v16 = vadd.f32 %v1228_v15, %v828_v12  ;;  %v1230_v17 = vpop.f32.mrb[6].mxu0  ;;  %v1540_v12 = vld [vmem:[%s4937_s4 + $0x18] sm:$0xff]  ;;  %v1542_v15 = vld [vmem:[%s4937_s4 + $0x28] sm:$0xff]  ;;  %2194 = vmatprep.subr.bf16.mxu0 %v3625_v7 }
 0x2c6   : > { %v1233_v18 = vmax.f32 %v3346_v14, 0.0  ;;  %v1231_v19 = vpop.f32.mrb[7].mxu0  ;;  %v3326_v13 = vpack.c.bf16 %v1540_v12, %v1539_v1  ;;  %v1541_v14 = vld [vmem:[%s4937_s4 + $0x20] sm:$0xff]  ;;  %v1543_v17 = vld [vmem:[%s4937_s4 + $0x30] sm:$0xff]  ;;  %v3628_v1 = vld [vmem:[#allocation10 + $0xc] ss:$16 sps:$4 sm:$0xff]  }
 0x2c7   : > { %v1234_v22 = vmax.f32 %v3347_v16, 0.0  ;;  %v3329_v16 = vpack.c.bf16 %v1542_v15, %v1541_v14  ;;  %v3634_v12 = vld [vmem:[#allocation10 + $0x2c] ss:$16 sps:$4 sm:$0xff]   ;;  %v3632_v14 = vld [vmem:[#allocation10 + $0x28] ss:$16 sps:$4 sm:$0xff]  }
 0x2c8   : > { %v1235_v25 = vpack.c.bf16 %v1233_v18, %v1233_v18  ;;  %v1544_v18 = vld [vmem:[%s4937_s4 + $0x38] sm:$0xff]  ;;  %v3637_v15 = vld [vmem:[#allocation10 + $0x44] ss:$16 sps:$4 sm:$0xff]  }
 0x2c9   : > { %v1236_v23 = vpack.c.bf16 %v1234_v22, %v1234_v22  ;;  %v3332_v19 = vpack.c.bf16 %v1544_v18, %v1543_v17  ;;  %v3335_v22 = vpack.c.bf16 %v1546_v21, %v1545_v20  ;;  %v3638_v17 = vld [vmem:[#allocation10 + $0x48] ss:$16 sps:$4 sm:$0xff]   ;;  %v3643_v18 = vld [vmem:[#allocation10 + $0x64] ss:$16 sps:$4 sm:$0xff]   ;;  %v3641_v20 = vld [vmem:[#allocation10 + $0x60] ss:$16 sps:$4 sm:$0xff]  }
 0x2ca   : > { %v3644_v21 = vld [vmem:[#allocation10 + $0x68] ss:$16 sps:$4 sm:$0xff]  }
 0x2cb   : > { %1404 = vmatprep.mubr.bf16.mxu1 %v1236_v23  ;;  %v1547_v23 = vld [vmem:[%s4937_s4 + $0x50] sm:$0xff]  ;;  %v3710_v7 = vld [vmem:[#allocation10 + $0x1c8] ss:$16 sps:$4 sm:$0xff]  }
 0x2cc   : > { %1405 = vmatmul.mubr.bf16.vlgmr.msra.gmra.mrb[4].mxu1 %v1235_v25 }
 0x2cd   : > { %3300 = vmatpush3.bf16.msra.mxu1 %v3299_v24  ;;  %3260 = vmatprep.mubr.msk.f32.mxu1 %vm4074_vm1, %v4075_v47  ;;  %v1548_v24 = vld [vmem:[%s4937_s4 + $0x58] sm:$0xff] }
 0x2ce   : > { %3301 = vmatprep.subr.bf16.mxu1 %v4073_v8  ;;  %v3338_v25 = vpack.c.bf16 %v1548_v24, %v1547_v23  ;;  %v3652_v23 = vld [vmem:[#allocation10 + $0x8c] ss:$16 sps:$4 sm:$0xff]   ;;  %v3647_v24 = vld [vmem:[#allocation10 + $0x80] ss:$16 sps:$4 sm:$0xff]  }
 0x2d1   : > { %3303 = vmatpush3.bf16.msra.mxu1 %v3302_v28  ;;  %v3341_v28 = vpack.c.bf16 %v1550_v27, %v1549_v26  ;;  %v3655_v26 = vld [vmem:[#allocation10 + $0xa4] ss:$16 sps:$4 sm:$0xff]   ;;  %v3658_v27 = vld [vmem:[#allocation10 + $0xac] ss:$16 sps:$4 sm:$0xff]  }
 0x2d2   : > { %3304 = vmatprep.subr.bf16.mxu1 %v4073_v8 }
 0x2d5   : > { %3306 = vmatpush3.bf16.msra.mxu1 %v3305_v31 }
 0x2d6   : > { %3307 = vmatprep.subr.bf16.mxu1 %v4073_v8 }
 0x2d9   : > { %3309 = vmatpush3.bf16.msra.mxu1 %v3308_v34  ;;  %v1552_v34 = vld [vmem:[%s4937_s4 + $0x78] sm:$0xff] }
 0x2da   : > { %3310 = vmatprep.subr.bf16.mxu1 %v4073_v8  ;;  %v3344_v35 = vpack.c.bf16 %v1552_v34, %v1551_v33  ;;  %v3662_v33 = vld [vmem:[#allocation10 + $0xc8] ss:$16 sps:$4 sm:$0xff]   ;;  %v3667_v34 = vld [vmem:[#allocation10 + $0xe4] ss:$16 sps:$4 sm:$0xff]  }
 0x2dd   : > { %3312 = vmatpush3.bf16.msra.mxu1 %v3311_v37 }
 0x2de   : > { %3313 = vmatprep.subr.bf16.mxu1 %v4073_v8 }
 0x2e1   : > { %3315 = vmatpush3.bf16.msra.mxu1 %v3314_v40  ;;  %v4616_v40 = vsub.s32 %v4556_v61, %v4488_v2 }
 0x2e2   : > { %3316 = vmatprep.subr.bf16.mxu1 %v4073_v8 }
 0x2e5   : > { %3318 = vmatpush3.bf16.msra.mxu1 %v3317_v43  ;;  %v3604_v43 = vld [vmem:[#allocation8 + $0x14] ss:$8 sps:$4 sm:$0xff]  }
 0x2e6   : > { %3319 = vmatprep.subr.bf16.mxu1 %v4073_v8 }
 0x2e9   : > { %3321 = vmatpush3.bf16.msra.mxu1 %v3320_v46  ;;  %v3602_v46 = vld [vmem:[#allocation8 + $0x10] ss:$8 sps:$4 sm:$0xff]  }
 0x2ea   : > { %3322 = vmatprep.subr.bf16.mxu1 %v4073_v8 }
 0x39f   : > { %v3144_v48 = vpop.f32.mrb[4].mxu1 }
 0x3a0   : > { %v3145_v50 = vpop.f32.mrb[5].mxu1 }
 0x3a1   : > { %v3146_v51 = vadd.f32 %v3145_v50, %v3144_v48  ;;  %v3147_v53 = vpop.f32.mrb[6].mxu1  ;;  %v3605_v48 = vld [vmem:[#allocation8 + $0x20] ss:$8 sps:$4 sm:$0xff]   ;;  %v3608_v50 = vld [vmem:[#allocation8 + $0x30] ss:$8 sps:$4 sm:$0xff]  }
 0x3a2   : > { %v3148_v54 = vpop.f32.mrb[7].mxu1  ;;  %v3611_v53 = vld [vmem:[#allocation8 + $0x40] ss:$8 sps:$4 sm:$0xff]  }
 0x3a3   : > { %v4545_v55 = vadd.f32 %v3146_v51, %v2987_v49  ;;  %v3610_v49 = vld [vmem:[#allocation8 + $0x34] ss:$8 sps:$4 sm:$0xff]   ;;  %v3613_v51 = vld [vmem:[#allocation8 + $0x44] ss:$8 sps:$4 sm:$0xff]  }
 0x3a4   : > { %v3616_v54 = vld [vmem:[#allocation8 + $0x54] ss:$8 sps:$4 sm:$0xff]  }
 0x3a5   : > { %3261 = vmatmul.mubr.f32.vlgmr.msra.gmra.mrb[8].mxu1 %v4545_v55  ;;  %1412 = vst [vmem:[%s527_s15] sm:$0xff] %v4545_v55 }
 0x3a6   : > { %3295 = vmatprep.mubr.msk.f32.mxu1 %vm4074_vm1, %v4075_v47  ;;  %3324 = vmatpush3.bf16.msra.mxu1 %v3323_v11  ;;  %v3607_v47 = vld [vmem:[#allocation8 + $0x24] ss:$8 sps:$4 sm:$0xff]  }
 0x3a7   : > { %3325 = vmatprep.subr.bf16.mxu1 %v4073_v8  ;;  %v3631_v11 = vld [vmem:[#allocation10 + $0x24] ss:$16 sps:$4 sm:$0xff]  }
 0x3aa   : > { %3327 = vmatpush3.bf16.msra.mxu1 %v3326_v13  ;;  %v3629_v13 = vld [vmem:[#allocation10 + $0x20] ss:$16 sps:$4 sm:$0xff]  }
 0x3ab   : > { %3328 = vmatprep.subr.bf16.mxu1 %v4073_v8 }
 0x3ae   : > { %3330 = vmatpush3.bf16.msra.mxu1 %v3329_v16  ;;  %v3635_v16 = vld [vmem:[#allocation10 + $0x40] ss:$16 sps:$4 sm:$0xff]  }
 0x3af   : > { %3331 = vmatprep.subr.bf16.mxu1 %v4073_v8 }
 0x3b2   : > { %3333 = vmatpush3.bf16.msra.mxu1 %v3332_v19  ;;  %v3646_v19 = vld [vmem:[#allocation10 + $0x6c] ss:$16 sps:$4 sm:$0xff]  }
 0x3b3   : > { %3334 = vmatprep.subr.bf16.mxu1 %v4073_v8 }
 0x3b6   : > { %3336 = vmatpush3.bf16.msra.mxu1 %v3335_v22  ;;  %v3649_v22 = vld [vmem:[#allocation10 + $0x84] ss:$16 sps:$4 sm:$0xff]  }
 0x3b7   : > { %3337 = vmatprep.subr.bf16.mxu1 %v4073_v8 }
 0x3ba   : > { %3339 = vmatpush3.bf16.msra.mxu1 %v3338_v25  ;;  %v3650_v25 = vld [vmem:[#allocation10 + $0x88] ss:$16 sps:$4 sm:$0xff]  }
 0x3bb   : > { %3340 = vmatprep.subr.bf16.mxu1 %v4073_v8 }
 0x3be   : > { %3342 = vmatpush3.bf16.msra.mxu1 %v3341_v28  ;;  %v3653_v28 = vld [vmem:[#allocation10 + $0xa0] ss:$16 sps:$4 sm:$0xff]  }
 0x3bf   : > { %3343 = vmatprep.subr.bf16.mxu1 %v4073_v8 }
 0x3c2   : > { %3345 = vmatpush3.bf16.msra.mxu1 %v3344_v35  ;;  %v3670_v35 = vld [vmem:[#allocation10 + $0xec] ss:$16 sps:$4 sm:$0xff]  }
 0x3c3   : > { %1743 = vmatprep.subr.bf16.mxu1 %v3601_v36  ;;  %v3665_v36 = vld [vmem:[#allocation10 + $0xe0] ss:$16 sps:$4 sm:$0xff]  }
 0x478   : > { %v1496_v56 = vpop.f32.mrb[8].mxu1 }
 0x479   : > { %v1500_v58 = vmul.f32 2.0, %v1496_v56  ;;  %v3262_v59 = vpop.f32.mrb[9].mxu1  ;;  %v3619_v56 = vld [vmem:[#allocation8 + $0x64] ss:$8 sps:$4 sm:$0xff]  }
 0x47a   : > { %v3620_v59 = vld [vmem:[#allocation8 + $0x70] ss:$8 sps:$4 sm:$0xff]  }
 0x47b   : > { %v1507_v60 = vsub.f32 %v3004_v57, %v1500_v58  ;;  %v3617_v57 = vld [vmem:[#allocation8 + $0x60] ss:$8 sps:$4 sm:$0xff]   ;;  %v3622_v58 = vld [vmem:[#allocation8 + $0x74] ss:$8 sps:$4 sm:$0xff]  }
 0x47d   : > { %1508 = vmin.xlane.f32.xlu0 %v1507_v60 }
 0x50a   : > { %v1509_v62 = vpop.xlane.xlu0 %1508 }
 0x50b   : > { %vm1512_vm2 = vcmp.eq.f32.partialorder %v1507_v60, %v1509_v62 }
 0x50c   : > { %v1513_v63 = vsel %vm1512_vm2, %v4556_v61, 128 }
 0x50d   : > { %v1515_v4 = vshra.s32 %v1513_v63, 16  ;;  %v1514_v29 = vand.u32 65535, %v1513_v63 }
 0x50f   : > { %v1517_v6 = vcvt.s32.f32 %v1515_v4  ;;  %v1516_v31 = vcvt.s32.f32 %v1514_v29  ;;  %v3656_v29 = vld [vmem:[#allocation10 + $0xa8] ss:$16 sps:$4 sm:$0xff]  }
 0x511   : > { %1518 = vmin.xlane.f32.xlu0 %v1517_v6 }
 0x59e   : > { %v1519_v30 = vpop.xlane.xlu0 %1518 }
 0x59f   : > { %vm1520_vm3 = vcmp.eq.f32.partialorder %v1517_v6, %v1519_v30  ;;  %v1525_v37 = vcvt.f32.s32 %v1519_v30  ;;  %v3623_v6 = vld [vmem:[#allocation10] ss:$16 sps:$4 sm:$0xff]   ;;  %v3661_v30 = vld [vmem:[#allocation10 + $0xc4] ss:$16 sps:$4 sm:$0xff]  }
 0x5a0   : > { %v1521_v32 = vsel %vm1520_vm3, %v1516_v31, inf  ;;  %2195 = vmatpush1.bf16.msra.mxu0 %v3623_v6  ;;  %v3664_v31 = vld [vmem:[#allocation10 + $0xcc] ss:$16 sps:$4 sm:$0xff]   ;;  %v3707_v6 = vld [vmem:[#allocation10 + $0x1c0] ss:$16 sps:$4 sm:$0xff]  }
 0x5a1   : > { %1522 = vmin.xlane.f32.xlu1 %v1521_v32  ;;  %v1526_v38 = vshll.u32 %v1525_v37, 16  ;;  %2196 = vmatprep.subr.bf16.mxu0 %v3631_v11  ;;  %v3659_v32 = vld [vmem:[#allocation10 + $0xc0] ss:$16 sps:$4 sm:$0xff]   ;;  %v3668_v37 = vld [vmem:[#allocation10 + $0xe8] ss:$16 sps:$4 sm:$0xff]  }
 0x5a2   : > { %v3713_v11 = vld [vmem:[#allocation10 + $0x1e0] ss:$16 sps:$4 sm:$0xff]  }
 0x5a4   : > { %2197 = vmatpush1.bf16.msra.mxu0 %v3629_v13  ;;  %v3719_v13 = vld [vmem:[%s4938_s23 + $0x40] sm:$0xff]  }
 0x5a5   : > { %2198 = vmatprep.subr.bf16.mxu0 %v3637_v15 }
 0x5a8   : > { %2199 = vmatpush1.bf16.msra.mxu0 %v3635_v16  ;;  %v1651_v16 = vld [vmem:[%s4888_s9 + $0x7] sm:$0x3] }
 0x5a9   : > { %2200 = vmatprep.subr.bf16.mxu0 %v3643_v18  ;;  %v1660_v18 = vrot.slane %v1651_v16, %v4499_v5 }
 0x5ac   : > { %2201 = vmatpush1.bf16.msra.mxu0 %v3641_v20 }
 0x5ad   : > { %2202 = vmatprep.subr.bf16.mxu0 %v3649_v22 }
 0x5b0   : > { %2203 = vmatpush1.bf16.msra.mxu0 %v3647_v24 }
 0x5b1   : > { %2204 = vmatprep.subr.bf16.mxu0 %v3655_v26 }
 0x5b4   : > { %2205 = vmatpush1.bf16.msra.mxu0 %v3653_v28  ;;  %v3722_v28 = vld [vmem:[%s4938_s23 + $0x80] sm:$0xff]  }
 0x5b5   : > { %2206 = vmatprep.subr.bf16.mxu0 %v3661_v30  ;;  %v3723_v30 = vld [vmem:[%s4938_s23 + $0x48] sm:$0xff]  }
 0x5b8   : > { %2207 = vmatpush1.bf16.msra.mxu0 %v3659_v32  ;;  %v3725_v32 = vld [vmem:[%s4938_s23 + $0x8] sm:$0xff]  }
 0x5b9   : > { %2208 = vmatprep.subr.bf16.mxu0 %v3667_v34  ;;  %v3727_v34 = vld [vmem:[%s4938_s23 + $0x50] sm:$0xff]  }
 0x5bc   : > { %2209 = vmatpush1.bf16.msra.mxu0 %v3665_v36  ;;  %v3729_v36 = vld [vmem:[%s4938_s23 + $0x10] sm:$0xff]  }
 0x62e   : > { %v1523_v8 = vpop.xlane.xlu1 %1522 }
 0x62f   : > { %v1524_v39 = vcvt.f32.s32 %v1523_v8  ;;  %v3673_v8 = vld [vmem:[#allocation10 + $0x104] ss:$16 sps:$4 sm:$0xff]  }
 0x630   : > { %2210 = vmatprep.subr.bf16.mxu0 %v3673_v8  ;;  %v3731_v8 = vld [vmem:[%s4938_s23 + $0x58] sm:$0xff]  }
 0x631   : > { %v1527_v41 = vadd.s32 %v1526_v38, %v1524_v39  ;;  %v3676_v38 = vld [vmem:[#allocation10 + $0x10c] ss:$16 sps:$4 sm:$0xff]   ;;  %v3671_v39 = vld [vmem:[#allocation10 + $0x100] ss:$16 sps:$4 sm:$0xff]  }
 0x632   : > { %2211 = vmatpush1.bf16.msra.mxu0 %v3671_v39  ;;  %v3733_v39 = vld [vmem:[%s4938_s23 + $0x18] sm:$0xff]  }
 0x633   : > { %vm1534_vm5 = vcmp.eq.s32.totalorder %v4556_v61, %v1527_v41  ;;  %v1531_v44 = vrot.slane %v1527_v41, %v4616_v40  ;;  %v3674_v41 = vld [vmem:[#allocation10 + $0x108] ss:$16 sps:$4 sm:$0xff]  }
 0x634   : > { %3296 = vmatmul.mubr.msk.f32.vlgmr.msra.gmra.mrb[10].mxu1 %vm1534_vm5, %v4076_v45  ;;  %v3680_v45 = vld [vmem:[#allocation10 + $0x128] ss:$16 sps:$4 sm:$0xff]  }
 0x635   : > { %1744 = vmatpush1.bf16.msra.mxu1 %v3599_v42  ;;  %1775 = vmatprep.mubr.bf16.mxu1 %v4072_v0  ;;  %1533 = vst.msk [vmem:[%s4903_s12] sm:$0x1] %vm1532_vm4, %v1531_v44  ;;  %v3614_v0 = vld [vmem:[#allocation8 + $0x50] ss:$8 sps:$4 sm:$0xff]   ;;  %v3679_v42 = vld [vmem:[#allocation10 + $0x124] ss:$16 sps:$4 sm:$0xff]  }
 0x636   : > { %1745 = vmatprep.subr.bf16.mxu1 %v3604_v43  ;;  %v3682_v43 = vld [vmem:[#allocation10 + $0x12c] ss:$16 sps:$4 sm:$0xff]   ;;  %v3677_v44 = vld [vmem:[#allocation10 + $0x120] ss:$16 sps:$4 sm:$0xff]   ;;  %2212 = vmatprep.subr.bf16.mxu0 %v3679_v42  ;;  %s4939_s12 = sld [smem:[#allocation32_spill]] }
 0x637   : > { %2213 = vmatpush1.bf16.msra.mxu0 %v3677_v44  ;;  %v3735_v42 = vld [vmem:[%s4938_s23 + $0x60] sm:$0xff]  }
 0x638   : > { %v3737_v44 = vld [vmem:[%s4938_s23 + $0x20] sm:$0xff]  }
 0x639   : > { %1746 = vmatpush1.bf16.msra.mxu1 %v3602_v46  ;;  %v3685_v46 = vld [vmem:[#allocation10 + $0x144] ss:$16 sps:$4 sm:$0xff]  }
 0x63a   : > { %1747 = vmatprep.subr.bf16.mxu1 %v3607_v47  ;;  %v3688_v47 = vld [vmem:[#allocation10 + $0x14c] ss:$16 sps:$4 sm:$0xff]   ;;  %2214 = vmatprep.subr.bf16.mxu0 %v3685_v46 }
 0x63b   : > { %v3739_v46 = vld [vmem:[%s4938_s23 + $0x68] sm:$0xff]  }
 0x63d   : > { %1748 = vmatpush1.bf16.msra.mxu1 %v3605_v48  ;;  %v3683_v48 = vld [vmem:[#allocation10 + $0x140] ss:$16 sps:$4 sm:$0xff]  }
 0x63e   : > { %1749 = vmatprep.subr.bf16.mxu1 %v3610_v49  ;;  %v3686_v49 = vld [vmem:[#allocation10 + $0x148] ss:$16 sps:$4 sm:$0xff]   ;;  %2215 = vmatpush1.bf16.msra.mxu0 %v3683_v48 }
 0x63f   : > { %v3741_v48 = vld [vmem:[%s4938_s23 + $0x28] sm:$0xff]  }
 0x641   : > { %1750 = vmatpush1.bf16.msra.mxu1 %v3608_v50  ;;  %v3691_v50 = vld [vmem:[#allocation10 + $0x164] ss:$16 sps:$4 sm:$0xff]  }
 0x642   : > { %1751 = vmatprep.subr.bf16.mxu1 %v3613_v51  ;;  %v3694_v51 = vld [vmem:[#allocation10 + $0x16c] ss:$16 sps:$4 sm:$0xff]   ;;  %2216 = vmatprep.subr.bf16.mxu0 %v3691_v50  ;;  %v3743_v50 = vld [vmem:[%s4938_s23 + $0x70] sm:$0xff]  }
 0x645   : > { %1752 = vmatpush1.bf16.msra.mxu1 %v3611_v53  ;;  %v3689_v53 = vld [vmem:[#allocation10 + $0x160] ss:$16 sps:$4 sm:$0xff]  }
 0x646   : > { %1753 = vmatprep.subr.bf16.mxu1 %v3616_v54  ;;  %v3692_v54 = vld [vmem:[#allocation10 + $0x168] ss:$16 sps:$4 sm:$0xff]   ;;  %2217 = vmatpush1.bf16.msra.mxu0 %v3689_v53  ;;  %v3745_v53 = vld [vmem:[%s4938_s23 + $0x30] sm:$0xff]  }
 0x649   : > { %1754 = vmatpush1.bf16.msra.mxu1 %v3614_v0  ;;  %v3697_v0 = vld [vmem:[#allocation10 + $0x184] ss:$16 sps:$4 sm:$0xff]  }
 0x64a   : > { %1755 = vmatprep.subr.bf16.mxu1 %v3619_v56  ;;  %v3700_v56 = vld [vmem:[#allocation10 + $0x18c] ss:$16 sps:$4 sm:$0xff]   ;;  %2218 = vmatprep.subr.bf16.mxu0 %v3697_v0 }
 0x64b   : > { %v3747_v0 = vld [vmem:[%s4938_s23 + $0x78] sm:$0xff]  }
 0x64d   : > { %1756 = vmatpush1.bf16.msra.mxu1 %v3617_v57  ;;  %v3695_v57 = vld [vmem:[#allocation10 + $0x180] ss:$16 sps:$4 sm:$0xff]  }
 0x64e   : > { %1757 = vmatprep.subr.bf16.mxu1 %v3622_v58  ;;  %v3698_v58 = vld [vmem:[#allocation10 + $0x188] ss:$16 sps:$4 sm:$0xff]   ;;  %2219 = vmatpush1.bf16.msra.mxu0 %v3695_v57 }
 0x64f   : > { %v3749_v57 = vld [vmem:[%s4938_s23 + $0x38] sm:$0xff]  }
 0x651   : > { %1758 = vmatpush1.bf16.msra.mxu1 %v3620_v59  ;;  %v3703_v59 = vld [vmem:[#allocation10 + $0x1a4] ss:$16 sps:$4 sm:$0xff]  }
 0x652   : > { %2235 = vmatprep.subr.bf16.mxu1 %v3628_v1  ;;  %2220 = vmatprep.subr.bf16.mxu0 %v3703_v59  ;;  %v3718_v1 = vld [vmem:[#allocation10 + $0x1ec] ss:$16 sps:$4 sm:$0xff]  }
 0x653   : > { %v1852_v59 = vld [vmem:[%s4888_s9 + $0x9] sm:$0xf] }
 0x707   : > { %v1619_v60 = vpop.f32.mrb[10].mxu1 }
 0x708   : > { %v1623_v61 = vsub.f32 %v1619_v60, %v4545_v55  ;;  %v1634_v62 = vpack.c.bf16 %v1619_v60, %v1619_v60  ;;  %v3297_v63 = vpop.f32.mrb[11].mxu1  ;;  %v3640_v55 = vld [vmem:[#allocation10 + $0x4c] ss:$16 sps:$4 sm:$0xff]  }
 0x709   : > { %v3706_v60 = vld [vmem:[#allocation10 + $0x1ac] ss:$16 sps:$4 sm:$0xff]   ;;  %v3709_v63 = vld [vmem:[#allocation10 + $0x1c4] ss:$16 sps:$4 sm:$0xff]  }
 0x70a   : > { %1776 = vmatmul.mubr.bf16.vlgmr.msra.gmra.mrb[12].mxu1 %v1634_v62  ;;  %v1624_v4 = vmul.f32 %v1623_v61, %v1623_v61  ;;  %v3701_v61 = vld [vmem:[#allocation10 + $0x1a0] ss:$16 sps:$4 sm:$0xff]   ;;  %v3704_v62 = vld [vmem:[#allocation10 + $0x1a8] ss:$16 sps:$4 sm:$0xff]  }
 0x70b   : > { %2236 = vmatpush1.bf16.msra.mxu1 %v3626_v10  ;;  %2221 = vmatpush1.bf16.msra.mxu0 %v3701_v61  ;;  %v3715_v10 = vld [vmem:[#allocation10 + $0x1e4] ss:$16 sps:$4 sm:$0xff]   ;;  %v1865_v61 = vrot.slane %v1852_v59, %v571_v52 }
 0x70c   : > { %1625 = vadd.xlane.f32.xlu1 %v1624_v4  ;;  %2237 = vmatprep.subr.bf16.mxu1 %v3634_v12  ;;  %v3712_v4 = vld [vmem:[#allocation10 + $0x1cc] ss:$16 sps:$4 sm:$0xff]   ;;  %v3716_v12 = vld [vmem:[#allocation10 + $0x1e8] ss:$16 sps:$4 sm:$0xff]  }
 0x70d   : > { %2222 = vmatprep.subr.bf16.mxu0 %v3709_v63  ;;  %v1869_v63 = vrot.slane %v1852_v59, %v575_v9 }
 0x70f   : > { %2238 = vmatpush1.bf16.msra.mxu1 %v3632_v14  ;;  %2223 = vmatpush1.bf16.msra.mxu0 %v3707_v6  ;;  %v3720_v14 = vld [vmem:[%s4938_s23 + $0xc0] sm:$0xff]  }
 0x710   : > { %2239 = vmatprep.subr.bf16.mxu1 %v3640_v55  ;;  %2224 = vmatprep.subr.bf16.mxu0 %v3715_v10 }
 0x713   : > { %2240 = vmatpush1.bf16.msra.mxu1 %v3638_v17  ;;  %2225 = vmatpush1.bf16.msra.mxu0 %v3713_v11  ;;  %v1656_v17 = vrot.slane %v1651_v16, %v4491_v3 }
 0x714   : > { %2241 = vmatprep.subr.bf16.mxu1 %v3646_v19  ;;  %3184 = vmatprep.subr.bf16.mxu0 %v3719_v13 }
 0x717   : > { %2242 = vmatpush1.bf16.msra.mxu1 %v3644_v21 }
 0x718   : > { %2243 = vmatprep.subr.bf16.mxu1 %v3652_v23 }
 0x71b   : > { %2244 = vmatpush1.bf16.msra.mxu1 %v3650_v25 }
 0x71c   : > { %2245 = vmatprep.subr.bf16.mxu1 %v3658_v27  ;;  %v3721_v27 = vld [vmem:[%s4938_s23] sm:$0xff]  }
 0x71f   : > { %2246 = vmatpush1.bf16.msra.mxu1 %v3656_v29 }
 0x720   : > { %2247 = vmatprep.subr.bf16.mxu1 %v3664_v31  ;;  %v3724_v31 = vld [vmem:[%s4938_s23 + $0xc8] sm:$0xff]  }
 0x723   : > { %2248 = vmatpush1.bf16.msra.mxu1 %v3662_v33  ;;  %v3726_v33 = vld [vmem:[%s4938_s23 + $0x88] sm:$0xff]  }
 0x724   : > { %2249 = vmatprep.subr.bf16.mxu1 %v3670_v35  ;;  %v3728_v35 = vld [vmem:[%s4938_s23 + $0xd0] sm:$0xff]  }
 0x727   : > { %2250 = vmatpush1.bf16.msra.mxu1 %v3668_v37  ;;  %v3730_v37 = vld [vmem:[%s4938_s23 + $0x90] sm:$0xff]  }
 0x728   : > { %2251 = vmatprep.subr.bf16.mxu1 %v3676_v38  ;;  %v3732_v38 = vld [vmem:[%s4938_s23 + $0xd8] sm:$0xff]  }
 0x72b   : > { %2252 = vmatpush1.bf16.msra.mxu1 %v3674_v41  ;;  %v3734_v41 = vld [vmem:[%s4938_s23 + $0x98] sm:$0xff]  }
 0x72c   : > { %2253 = vmatprep.subr.bf16.mxu1 %v3682_v43  ;;  %v3736_v43 = vld [vmem:[%s4938_s23 + $0xe0] sm:$0xff]  }
 0x72f   : > { %2254 = vmatpush1.bf16.msra.mxu1 %v3680_v45  ;;  %v3738_v45 = vld [vmem:[%s4938_s23 + $0xa0] sm:$0xff]  }
 0x730   : > { %2255 = vmatprep.subr.bf16.mxu1 %v3688_v47  ;;  %v3740_v47 = vld [vmem:[%s4938_s23 + $0xe8] sm:$0xff]  }
 0x733   : > { %2256 = vmatpush1.bf16.msra.mxu1 %v3686_v49  ;;  %v3742_v49 = vld [vmem:[%s4938_s23 + $0xa8] sm:$0xff]  }
 0x734   : > { %2257 = vmatprep.subr.bf16.mxu1 %v3694_v51  ;;  %v3744_v51 = vld [vmem:[%s4938_s23 + $0xf0] sm:$0xff]  }
 0x737   : > { %2258 = vmatpush1.bf16.msra.mxu1 %v3692_v54  ;;  %v3746_v54 = vld [vmem:[%s4938_s23 + $0xb0] sm:$0xff]  }
 0x738   : > { %2259 = vmatprep.subr.bf16.mxu1 %v3700_v56  ;;  %v3748_v56 = vld [vmem:[%s4938_s23 + $0xf8] sm:$0xff]  }
 0x73b   : > { %2260 = vmatpush1.bf16.msra.mxu1 %v3698_v58  ;;  %v3750_v58 = vld [vmem:[%s4938_s23 + $0xb8] sm:$0xff]  }
 0x73c   : > { %2261 = vmatprep.subr.bf16.mxu1 %v3706_v60  ;;  %v1857_v60 = vrot.slane %v1852_v59, %v4491_v3 }
 0x73f   : > { %2262 = vmatpush1.bf16.msra.mxu1 %v3704_v62  ;;  %v1861_v62 = vrot.slane %v1852_v59, %v4499_v5 }
 0x740   : > { %2263 = vmatprep.subr.bf16.mxu1 %v3712_v4 }
 0x743   : > { %2264 = vmatpush1.bf16.msra.mxu1 %v3710_v7 }
 0x744   : > { %2265 = vmatprep.subr.bf16.mxu1 %v3718_v1 }
 0x747   : > { %2266 = vmatpush1.bf16.msra.mxu1 %v3716_v12 }
 0x748   : > { %3206 = vmatprep.subr.bf16.mxu1 %v3720_v14 }
 0x799   : > { %v1626_v15 = vpop.xlane.xlu1 %1625 }
 0x79a   : > { %v1631_v55 = vrot.slane %v1626_v15, %v4616_v40 }
 0x79c   : > { %1633 = vst.msk [vmem:[%s4902_s16] sm:$0x1] %vm1532_vm4, %v1631_v55  ;;  %s4748_s16 = scalar_lea.hbm %s4939_s12, %s4904_s30 }
 0x7dd   : > { %v1777_v19 = vpop.f32.mrb[12].mxu1 }
 0x7de   : > { %v1778_v20 = vadd.f32 %v1777_v19, %v1656_v17  ;;  %v1779_v21 = vpop.f32.mrb[13].mxu1 }
 0x7df   : > { %v1780_v22 = vadd.f32 %v1779_v21, %v1660_v18  ;;  %v1781_v23 = vpop.f32.mrb[14].mxu1 }
 0x7e0   : > { %v1784_v24 = vmax.f32 %v1778_v20, 0.0  ;;  %v1782_v25 = vpop.f32.mrb[15].mxu1 }
 0x7e1   : > { %v1785_v40 = vmax.f32 %v1780_v22, 0.0 }
 0x7e2   : > { %v1786_v29 = vpack.c.bf16 %v1784_v24, %v1784_v24 }
 0x7e3   : > { %v1787_v26 = vpack.c.bf16 %v1785_v40, %v1785_v40 }
 0x7e5   : > { %2226 = vmatprep.mubr.bf16.mxu0 %v1787_v26  ;;  %2267 = vmatprep.mubr.bf16.mxu1 %v1787_v26 }
 0x7e6   : > { %2227 = vmatmul.mubr.bf16.vlgmr.msra.gmra.mrb[8].mxu0 %v1786_v29  ;;  %2268 = vmatmul.mubr.bf16.vlgmr.msra.gmra.mrb[16].mxu1 %v1786_v29 }
 0x7e7   : > { %3185 = vmatpush3.bf16.msra.mxu0 %v3721_v27  ;;  %3207 = vmatpush3.bf16.msra.mxu1 %v3722_v28 }
 0x7e8   : > { %3186 = vmatprep.subr.bf16.mxu0 %v3723_v30  ;;  %3208 = vmatprep.subr.bf16.mxu1 %v3724_v31 }
 0x7eb   : > { %3187 = vmatpush3.bf16.msra.mxu0 %v3725_v32  ;;  %3209 = vmatpush3.bf16.msra.mxu1 %v3726_v33 }
 0x7ec   : > { %3188 = vmatprep.subr.bf16.mxu0 %v3727_v34  ;;  %3210 = vmatprep.subr.bf16.mxu1 %v3728_v35 }
 0x7ef   : > { %3189 = vmatpush3.bf16.msra.mxu0 %v3729_v36  ;;  %3211 = vmatpush3.bf16.msra.mxu1 %v3730_v37 }
 0x7f0   : > { %3190 = vmatprep.subr.bf16.mxu0 %v3731_v8  ;;  %3212 = vmatprep.subr.bf16.mxu1 %v3732_v38 }
 0x7f3   : > { %3191 = vmatpush3.bf16.msra.mxu0 %v3733_v39  ;;  %3213 = vmatpush3.bf16.msra.mxu1 %v3734_v41 }
 0x7f4   : > { %3192 = vmatprep.subr.bf16.mxu0 %v3735_v42  ;;  %3214 = vmatprep.subr.bf16.mxu1 %v3736_v43 }
 0x7f7   : > { %3193 = vmatpush3.bf16.msra.mxu0 %v3737_v44  ;;  %3215 = vmatpush3.bf16.msra.mxu1 %v3738_v45 }
 0x7f8   : > { %3194 = vmatprep.subr.bf16.mxu0 %v3739_v46  ;;  %3216 = vmatprep.subr.bf16.mxu1 %v3740_v47 }
 0x7fb   : > { %3195 = vmatpush3.bf16.msra.mxu0 %v3741_v48  ;;  %3217 = vmatpush3.bf16.msra.mxu1 %v3742_v49 }
 0x7fc   : > { %3196 = vmatprep.subr.bf16.mxu0 %v3743_v50  ;;  %3218 = vmatprep.subr.bf16.mxu1 %v3744_v51 }
 0x7ff   : > { %3197 = vmatpush3.bf16.msra.mxu0 %v3745_v53  ;;  %3219 = vmatpush3.bf16.msra.mxu1 %v3746_v54 }
 0x800   : > { %3198 = vmatprep.subr.bf16.mxu0 %v3747_v0  ;;  %3220 = vmatprep.subr.bf16.mxu1 %v3748_v56 }
 0x803   : > { %3199 = vmatpush3.bf16.msra.mxu0 %v3749_v57  ;;  %3221 = vmatpush3.bf16.msra.mxu1 %v3750_v58 }
 0x8b9   : > { %v2228_v4 = vpop.f32.mrb[8].mxu0  ;;  %v2269_v6 = vpop.f32.mrb[16].mxu1 }
 0x8ba   : > { %v2229_v7 = vadd.f32 %v2228_v4, %v1857_v60  ;;  %v2270_v10 = vadd.f32 %v2269_v6, %v1865_v61  ;;  %v2230_v1 = vpop.f32.mrb[9].mxu0  ;;  %v2271_v11 = vpop.f32.mrb[17].mxu1 }
 0x8bb   : > { %v2231_v12 = vadd.f32 %v2230_v1, %v1861_v62  ;;  %v2272_v13 = vadd.f32 %v2271_v11, %v1869_v63  ;;  %v2232_v14 = vpop.f32.mrb[10].mxu0  ;;  %v2273_v15 = vpop.f32.mrb[18].mxu1 }
 0x8bc   : > { %v2276_v3 = vmax.f32 %v2229_v7, 0.0  ;;  %v2278_v52 = vmax.f32 %v2270_v10, 0.0  ;;  %v2233_v5 = vpop.f32.mrb[11].mxu0  ;;  %v2274_v55 = vpop.f32.mrb[19].mxu1 }
 0x8bd   : > { %v2277_v2 = vmax.f32 %v2231_v12, 0.0  ;;  %v2279_v9 = vmax.f32 %v2272_v13, 0.0 }
 0x8be   : > { %v2280_v18 = vpack.c.bf16 %v2276_v3, %v2276_v3  ;;  %v2282_v19 = vpack.c.bf16 %v2278_v52, %v2278_v52 }
 0x8bf   : > { %v2281_v16 = vpack.c.bf16 %v2277_v2, %v2277_v2  ;;  %v2283_v17 = vpack.c.bf16 %v2279_v9, %v2279_v9 }
 0x8c1   : > { %2579 = vmatprep.mubr.bf16.mxu0 %v2281_v16  ;;  %2619 = vmatprep.mubr.bf16.mxu1 %v2283_v17 }
 0x8c2   : > { %2580 = vmatmul.mubr.bf16.vlgmr.msra.gmra.mrb[12].mxu0 %v2280_v18  ;;  %2620 = vmatmul.mubr.bf16.vlgmr.msra.gmra.mrb[20].mxu1 %v2282_v19 }
 0x8c3   : > { %3908 = shalt.err (!%p3905_p0)
}
 0x8c4   : > { %s3909_s15 = scalar_lea.hbm %s4748_s16, 128  ;;  %s3913_s20 = scalar_lea.hbm %s4939_s12, 256 }
 0x8c5   : > { %p3910_p2 = scmp.ne.s32.totalorder %s4748_s16, %s3909_s15  ;;  %p3914_p10 = scmp.lt.u32.totalorder %s4748_s16, %s4939_s12 }
 0x8c6   : > { %p3915_p11 = scmp.lt.u32.totalorder %s3913_s20, %s3909_s15  ;;  %p3917_p6 = scmp.lt.u32.totalorder %s3909_s15, %s4748_s16 }
 0x8c7   : > { %p3911_p8 = pnand %p3910_p2, %p4940_p5 }
 0x8c8   : > { %p3916_p1 = por %p3915_p11, %p3914_p10 }
 0x8c9   : > { %p3912_p4 = pneg %p3911_p8 }
 0x8ca   : > { %p3918_p7 = por %p3917_p6, %p3916_p1 }
 0x8cc   : > { %p3919_p9 = pnand %p3918_p7, %p3912_p4 }
 0x8ce   : > { %3922 = shalt.err (!%p3919_p9)
}
 0x8cf   : > { %3371 = dma.vmem_to_hbm [thread:$0]  (%p4940_p5), %s2670_s18, 128, %s4748_s16, %s4752_s8  }
 0x8d0   : > { %s3124_s1 = sshll.u32 %s4172_s14, 4  ;;  %s4941_s17 = sld [smem:[#allocation33_spill]] }
 0x8d1   : > { %s4942_s20 = scalar_lea.vmem [#allocation14], %s4378_s2  ;;  %s4943_s3 = sld [smem:[#allocation34_spill]] }
 0x8d2   : > { %s2682_s0 = sshll.u32 %s4942_s20, 4  ;;  %s4078_s16 = smov [#allocation14]   ;;  %s2683_s0 = int_to_ptr.vmem [resolvable:$true] %s2682_s0 }
 0x8d3   : > { %s3923_s5 = scalar_lea.vmem %s2683_s0, 16  ;;  %s3927_s18 = sshll.u32 %s4078_s16, 4  ;;  %s3928_s18 = int_to_ptr.vmem [resolvable:$false] %s3927_s18 }
 0x8d4   : > { %p3924_p12 = scmp.ne.s32.totalorder %s2683_s0, %s3923_s5  ;;  %s3929_s6 = scalar_lea.vmem %s3928_s18, 32 }
 0x8d5   : > { %p3930_p0 = scmp.lt.s32.totalorder %s2683_s0, %s3928_s18  ;;  %p3931_p2 = scmp.lt.s32.totalorder %s3929_s6, %s3923_s5 }
 0x8d6   : > { %s4776_s13 = scalar_lea.hbm %s4941_s17, %s3124_s1  ;;  %p3925_p3 = pnand %p3924_p12, %p4940_p5 }
 0x8d7   : > { %s4783_s4 = scalar_lea.hbm %s4943_s3, %s3124_s1  ;;  %p3932_p8 = por %p3931_p2, %p3930_p0 }
 0x8d8   : > { %p3926_p13 = pneg %p3925_p3 }
 0x8da   : > { %p3933_p4 = pnand %p3932_p8, %p3926_p13 }
 0x8dc   : > { %3936 = shalt.err (!%p3933_p4)
}
 0x8dd   : > { %s3937_s30 = scalar_lea.hbm %s4776_s13, 16  ;;  %s3941_s29 = scalar_lea.hbm %s4941_s17, 32 }
 0x8de   : > { %p3938_p10 = scmp.ne.s32.totalorder %s4776_s13, %s3937_s30  ;;  %p3942_p6 = scmp.lt.u32.totalorder %s4776_s13, %s4941_s17 }
 0x8df   : > { %p3943_p7 = scmp.lt.u32.totalorder %s3941_s29, %s3937_s30  ;;  %p3945_p12 = scmp.lt.u32.totalorder %s3937_s30, %s4776_s13 }
 0x8e0   : > { %p3939_p11 = pnand %p3938_p10, %p4940_p5 }
 0x8e1   : > { %p3944_p9 = por %p3943_p7, %p3942_p6 }
 0x8e2   : > { %p3940_p1 = pneg %p3939_p11 }
 0x8e3   : > { %p3946_p3 = por %p3945_p12, %p3944_p9 }
 0x8e5   : > { %p3947_p13 = pnand %p3946_p3, %p3940_p1 }
 0x8e7   : > { %3950 = shalt.err (!%p3947_p13)
}
 0x8e8   : > { %3372 = dma.vmem_to_hbm [thread:$0]  (%p4940_p5), %s2683_s0, 16, %s4776_s13, %s4752_s8  }
 0x8e9   : > { %s4944_s5 = scalar_lea.vmem [#allocation15], %s4378_s2  ;;  %s2644_s16 = scalar_lea.sflag [#allocation16], %s4378_s2 }
 0x8ea   : > { %s2695_s6 = sshll.u32 %s4944_s5, 4  ;;  %s4079_s30 = smov [#allocation15]   ;;  %s2696_s6 = int_to_ptr.vmem [resolvable:$true] %s2695_s6 }
 0x8eb   : > { %s3951_s18 = scalar_lea.vmem %s2696_s6, 16  ;;  %s3955_s1 = sshll.u32 %s4079_s30, 4  ;;  %s3956_s1 = int_to_ptr.vmem [resolvable:$false] %s3955_s1 }
 0x8ec   : > { %p3952_p0 = scmp.ne.s32.totalorder %s2696_s6, %s3951_s18  ;;  %s3957_s10 = scalar_lea.vmem %s3956_s1, 32 }
 0x8ed   : > { %p3958_p4 = scmp.lt.s32.totalorder %s2696_s6, %s3956_s1  ;;  %p3959_p10 = scmp.lt.s32.totalorder %s3957_s10, %s3951_s18 }
 0x8ee   : > { %p3953_p2 = pnand %p3952_p0, %p4940_p5 }
 0x8ef   : > { %p3960_p11 = por %p3959_p10, %p3958_p4 }
 0x8f0   : > { %p3954_p8 = pneg %p3953_p2 }
 0x8f2   : > { %p3961_p1 = pnand %p3960_p11, %p3954_p8 }
 0x8f4   : > { %3964 = shalt.err (!%p3961_p1)
}
 0x8f5   : > { %s3965_s8 = scalar_lea.hbm %s4783_s4, 16  ;;  %s3969_s29 = scalar_lea.hbm %s4943_s3, 32 }
 0x8f6   : > { %p3966_p6 = scmp.ne.s32.totalorder %s4783_s4, %s3965_s8  ;;  %p3970_p12 = scmp.lt.u32.totalorder %s4783_s4, %s4943_s3 }
 0x8f7   : > { %p3971_p3 = scmp.lt.u32.totalorder %s3969_s29, %s3965_s8  ;;  %p3973_p0 = scmp.lt.u32.totalorder %s3965_s8, %s4783_s4 }
 0x8f8   : > { %p3967_p7 = pnand %p3966_p6, %p4940_p5 }
 0x8f9   : > { %p3972_p13 = por %p3971_p3, %p3970_p12 }
 0x8fa   : > { %p3968_p9 = pneg %p3967_p7 }
 0x8fb   : > { %p3974_p2 = por %p3973_p0, %p3972_p13 }
 0x8fd   : > { %p3975_p8 = pnand %p3974_p2, %p3968_p9 }
 0x8ff   : > { %3978 = shalt.err (!%p3975_p8)
}
 0x900   : > { %3373 = dma.vmem_to_hbm [thread:$0]  (%p4940_p5), %s2696_s6, 16, %s4783_s4, %s2644_s16   ;;  %v3087_v22 = vld [vmem:[%s4888_s9 + $0xd] ss:$0 sm:$0xff] }
 0x901   : > { %s520_s4 = scalar_lea.vmem [#allocation11], %s4381_s22  ;;  %s4945_s16 = sshll.u32 %s4172_s14, 7 }
 0x902   : > { %s2656_s6 = sshll.u32 %s520_s4, 4  ;;  %s4946_s10 = sld [smem:[#allocation31_spill]]  ;;  %s4834_s6 = int_to_ptr.vmem [resolvable:$true] %s2656_s6 }
 0x903   : > { %s2630_s13 = scalar_lea.sflag [#allocation4], %s4378_s2  ;;  %s3979_s0 = scalar_lea.vmem %s4834_s6, 128 }
 0x904   : > { %p3980_p4 = scmp.ne.s32.totalorder %s4834_s6, %s3979_s0  ;;  %s4080_s14 = smov [#allocation11]  }
 0x905   : > { %s3983_s22 = sshll.u32 %s4080_s14, 4  ;;  %s3984_s22 = int_to_ptr.vmem [resolvable:$false] %s3983_s22 }
 0x906   : > { %p3981_p10 = pnand %p3980_p4, %p4940_p5  ;;  %s3985_s29 = scalar_lea.vmem %s3984_s22, 256 }
 0x907   : > { %p3986_p1 = scmp.lt.s32.totalorder %s4834_s6, %s3984_s22  ;;  %p3987_p6 = scmp.lt.s32.totalorder %s3985_s29, %s3979_s0 }
 0x908   : > { %s4832_s8 = scalar_lea.hbm %s4946_s10, %s4945_s16  ;;  %p3982_p11 = pneg %p3981_p10 }
 0x909   : > { %p3988_p7 = por %p3987_p6, %p3986_p1 }
 0x90b   : > { %p3989_p9 = pnand %p3988_p7, %p3982_p11 }
 0x995   : > { %v3200_v20 = vpop.f32.mrb[12].mxu0  ;;  %v3222_v21 = vpop.f32.mrb[20].mxu1 }
 0x996   : > { %v3201_v23 = vpop.f32.mrb[13].mxu0  ;;  %v3223_v24 = vpop.f32.mrb[21].mxu1 }
 0x997   : > { %v3202_v25 = vadd.f32 %v3201_v23, %v3200_v20  ;;  %v3224_v40 = vadd.f32 %v3223_v24, %v3222_v21  ;;  %v3203_v26 = vpop.f32.mrb[14].mxu0  ;;  %v3225_v27 = vpop.f32.mrb[22].mxu1 }
 0x998   : > { %v3204_v28 = vpop.f32.mrb[15].mxu0  ;;  %v3226_v29 = vpop.f32.mrb[23].mxu1 }
 0x999   : > { %v2582_v30 = vadd.f32 %v3202_v25, %v3087_v22 }
 0x99b   : > { %v2622_v31 = vadd.f32 %v3224_v40, %v2582_v30 }
 0x99d   : > { %3751 = vtanh.f32 %v2622_v31 }
 0x9a7   : > { %v3752_v32 = vpop.eup %3751 }
 0x9a8   : > { %2628 = vst.msk [vmem:[%s520_s4] sm:$0xff] %vm661_vm0, %v3752_v32 }
 0x9a9   : > { %3992 = shalt.err (!%p3989_p9)
}
 0x9aa   : > { %s3993_s2 = scalar_lea.hbm %s4832_s8, 128  ;;  %s3997_s5 = scalar_lea.hbm %s4946_s10, 256 }
 0x9ab   : > { %p3994_p12 = scmp.ne.s32.totalorder %s4832_s8, %s3993_s2  ;;  %p3998_p0 = scmp.lt.u32.totalorder %s4832_s8, %s4946_s10 }
 0x9ac   : > { %p3999_p2 = scmp.lt.u32.totalorder %s3997_s5, %s3993_s2  ;;  %p4001_p4 = scmp.lt.u32.totalorder %s3993_s2, %s4832_s8 }
 0x9ad   : > { %p3995_p3 = pnand %p3994_p12, %p4940_p5 }
 0x9ae   : > { %p4000_p8 = por %p3999_p2, %p3998_p0 }
 0x9af   : > { %p3996_p13 = pneg %p3995_p3 }
 0x9b0   : > { %p4002_p10 = por %p4001_p4, %p4000_p8 }
 0x9b2   : > { %p4003_p11 = pnand %p4002_p10, %p3996_p13 }
 0x9b4   : > { %4006 = shalt.err (!%p4003_p11)
}
 0x9b5   : > { %3370 = dma.vmem_to_hbm [thread:$0]  (%p4940_p5), %s4834_s6, 128, %s4832_s8, %s2630_s13  }
 0x9b6 PF: > { %s2707_s16 = sand.u32 1, %s4049_s25   ;;  %p4947_p1 = scmp.ne.s32.totalorder %s4927_s21, 0 }
 0x9b7   : > { %p4948_p6 = scmp.ge.s32.totalorder %s4061_s28, 2  ;;  %s2708_s30 = scalar_lea.sflag [#allocation4], %s2707_s16 }
 0x9b9   : > { %p3396_p7 = pnand %p4948_p6, %p4947_p1 }
 0x9bb   : > { %4036 = dma.done.wait (!%p3396_p7), %s2708_s30, 128  }
 0x9bc   : > { %4038 = vsyncadd (!%p3396_p7), %s2708_s30, 4294967168  ;;  %s4949_s1 = sadd.s32 4294967294, %s4061_s28  }
 0x9bd   : > { %s2716_s0 = sand.u32 1, %s4949_s1  }
 0x9be   : > { %s2717_s14 = scalar_lea.sflag [#allocation13], %s2716_s0 }
 0x9bf   : > { %4040 = dma.done.wait (!%p3396_p7), %s2717_s14, 144  }
 0x9c0   : > { %4042 = vsyncadd (!%p3396_p7), %s2717_s14, 4294967152  ;;  %s2734_s19 = scalar_lea.sflag [#allocation16], %s2707_s16 }
 0x9c1   : > { %4044 = dma.done.wait (!%p3396_p7), %s2734_s19, 16  }
 0x9c2   : > { %4046 = vsyncadd (!%p3396_p7), %s2734_s19, 4294967280  ;;  %p35_p5 = scmp.ge.s32.totalorder %s4300_s11, 4   ;;  %s4950_s25 = smov %s4053_s26 }
 0x9c3   : > { %s4951_s26 = smov %s4057_s27  ;;  %s4952_s27 = smov %s4311_s24 }
 0x9c4   : > { %s4953_s28 = smov %s4300_s11  ;;  %37 = sbr.rel (!%p35_p5) target bundleno = 24 (0x18), region = 170 }
 0x9cb   :  { %2738 = vsyncpa [#allocation3], 1 }
 0x9cc   :  { %2740 = vsyncpa [#allocation3 + $0x1], 1 }
 0x9cd   :  { %2741 = vsyncpa [#allocation6], 1 }
 0x9ce   :  { %2742 = vsyncpa [#allocation9], 1 }
 0x9cf   :  { %2743 = vsyncpa [#allocation4], 1 }
 0x9d0   :  { %2745 = vsyncpa [#allocation4 + $0x1], 1 }
 0x9d1   :  { %2746 = vsyncpa [#allocation13], 1 }
 0x9d2   :  { %2748 = vsyncpa [#allocation13 + $0x1], 1 }
 0x9d3   :  { %2749 = vsyncpa [#allocation16], 1 }
 0x9d4   :  { %2751 = vsyncpa [#allocation16 + $0x1], 1 }

// kernel: tpu_custom_call.1
= control target key start
LH: loop header
LB: loop body
LE: loop exit
PB: predicated region body
PF: predicated region fallthrough
CT: control target
= control target key end

     0   :  { %s4879_s0 = inlined_call_operand.hbm [shape: f32[16,64], index: 0, kind: input, shape index: {}]   ;;  %s4880_s1 = inlined_call_operand.vmem [shape: bf16[64,512], index: 1, kind: input, shape index: {}]   ;;  %s4881_s2 = inlined_call_operand.hbm [shape: bf16[512,256], index: 2, kind: input, shape index: {}]   ;;  %s4882_s3 = inlined_call_operand.vmem [shape: bf16[256,128], index: 3, kind: input, shape index: {}]   ;;  %s4883_s4 = inlined_call_operand.vmem [shape: f32[128,128], index: 4, kind: input, shape index: {}]   ;;  %s4884_s5 = inlined_call_operand.hbm [shape: f32[128,128], index: 5, kind: input, shape index: {}]   ;;  %s4885_s6 = inlined_call_operand.hbm [shape: bf16[128,256], index: 6, kind: input, shape index: {}]   ;;  %s4886_s7 = inlined_call_operand.hbm [shape: bf16[256,512], index: 7, kind: input, shape index: {}]   ;;  %s4887_s8 = inlined_call_operand.vmem [shape: bf16[512,64], index: 8, kind: input, shape index: {}]   ;;  %s4888_s9 = inlined_call_operand.vmem [shape: f32[1,1920], index: 9, kind: input, shape index: {}]   ;;  %s4889_s10 = inlined_call_operand.hbm [shape: f32[16,64], index: 10, kind: output, shape index: {0}]   ;;  %s4890_s11 = inlined_call_operand.hbm [shape: f32[16,128], index: 11, kind: output, shape index: {1}]   ;;  %s4891_s12 = inlined_call_operand.hbm [shape: s32[2,1,8], index: 12, kind: output, shape index: {2}]   ;;  %s4892_s13 = inlined_call_operand.hbm [shape: f32[2,1,8], index: 13, kind: output, shape index: {3}]  }
   0x1   :  { %4905 = sst [smem:[#allocation23_spill]] %s4879_s0 }
   0x2   :  { %4906 = sst [smem:[#allocation24_spill]] %s4880_s1 }
   0x3   :  { %4907 = sst [smem:[#allocation25_spill]] %s4881_s2 }
   0x4   :  { %4908 = sst [smem:[#allocation26_spill]] %s4882_s3 }
   0x5   :  { %4909 = sst [smem:[#allocation27_spill]] %s4883_s4 }
   0x6   :  { %4910 = sst [smem:[#allocation28_spill]] %s4884_s5 }
   0x7   :  { %4911 = sst [smem:[#allocation29_spill]] %s4885_s6 }
   0x8   :  { %4912 = sst [smem:[#allocation30_spill]] %s4887_s8 }
   0x9   :  { %4913 = sst [smem:[#allocation31_spill]] %s4889_s10 }
   0xa   :  { %4914 = sst [smem:[#allocation32_spill]] %s4890_s11 }
   0xb   :  { %4915 = sst [smem:[#allocation33_spill]] %s4891_s12 }
   0xc   :  { %4916 = sst [smem:[#allocation34_spill]] %s4892_s13 }
   0xd   :  { %19 = vsyncpa [#allocation3], 0 }
   0xe   :  { %21 = vsyncpa [#allocation3 + $0x1], 0 }
   0xf   :  { %22 = vsyncpa [#allocation6], 0 }
  0x10   :  { %23 = vsyncpa [#allocation9], 0 }
  0x11   :  { %24 = vsyncpa [#allocation4], 0 }
  0x12   :  { %26 = vsyncpa [#allocation4 + $0x1], 0 }
  0x13   :  { %27 = vsyncpa [#allocation13], 0 }
  0x14   :  { %29 = vsyncpa [#allocation13 + $0x1], 0 }
  0x15   :  { %30 = vsyncpa [#allocation16], 0 }
  0x16   :  { %32 = vsyncpa [#allocation16 + $0x1], 0  ;;  %s4151_s25 = smov 0   ;;  %s4153_s26 = smov 0  }
  0x17   :  { %s4155_s27 = smov 0   ;;  %s4157_s28 = smov 0  }
  0x18 LB: > { %s4063_s29 = smov [#allocation5]   ;;  %s4172_s14 = sadd.s32 4294967295, %s4061_s28   ;;  %s4061_s28 = sphi %s4157_s28, %s4953_s28   ;;  %s4057_s27 = sphi %s4155_s27, %s4952_s27   ;;  %s4053_s26 = sphi %s4153_s26, %s4951_s26   ;;  %s4049_s25 = sphi %s4151_s25, %s4950_s25  }
  0x19   : > { %s377_s30 = sshll.u32 %s4063_s29, 4  ;;  %p2889_p0 = scmp.ge.s32.totalorder %s4061_s28, 1  ;;  %s4177_s30 = int_to_ptr.vmem [resolvable:$true] %s377_s30 }
  0x1a   : > { %p4898_p1 = scmp.eq.s32.totalorder %s4172_s14, 0  ;;  %p362_p2 = scmp.lt.s32.totalorder %s4061_s28, 3 }
  0x1b   : > { %s4064_s16 = smov [#allocation8]   ;;  %s4065_s19 = smov [#allocation7]  }
  0x1c   : > { %p4179_p3 = pnand %p2889_p0, %p362_p2  ;;  %s409_s17 = sshll.u32 %s4064_s16, 4  ;;  %s4192_s17 = int_to_ptr.vmem [resolvable:$true] %s409_s17 }
  0x1d   : > { %s396_s20 = sshll.u32 %s4065_s19, 4  ;;  %s4919_s2 = sld [smem:[#allocation25_spill]]  ;;  %s4194_s20 = int_to_ptr.vmem [resolvable:$true] %s396_s20 }
  0x1e   : > { %s4917_s15 = scalar_select %p4179_p3, 1, 0 }
  0x1f   : > { %p3378_p5 = pneg %p4179_p3 }
  0x21   : > { %p4188_p6 = pnand %p3378_p5, %p4898_p1 }
  0x23   : > { %s3753_s23 = scalar_lea.hbm %s4919_s2, 8192  ;;  %p4204_p8 = pneg %p4188_p6 }
  0x24   : > { %p3754_p7 = scmp.ne.s32.totalorder %s4919_s2, %s3753_s23  ;;  %p3760_p11 = scmp.lt.u32.totalorder %s3753_s23, %s4919_s2 }
  0x26   : > { %p3756_p9 = pnand %p4204_p8, %p3754_p7 }
  0x28   : > { %p3757_p10 = pneg %p3756_p9 }
  0x2a   : > { %p3762_p12 = pnand %p3760_p11, %p3757_p10 }
  0x2c   : > { %3765 = shalt.err (!%p3762_p12)
}
  0x2d   : > { %s3766_s21 = scalar_lea.vmem %s4177_s30, 8192  ;;  %p3774_p5 = scmp.lt.s32.totalorder %s4177_s30, %s4177_s30 }
  0x2e   : > { %p3767_p13 = scmp.ne.s32.totalorder %s4177_s30, %s3766_s21  ;;  %p3775_p4 = scmp.lt.s32.totalorder %s3766_s21, %s3766_s21 }
  0x30   : > { %p3769_p0 = pnand %p3767_p13, %p4204_p8  ;;  %p3776_p7 = por %p3775_p4, %p3774_p5 }
  0x32   : > { %p3770_p2 = pneg %p3769_p0 }
  0x34   : > { %p3777_p9 = pnand %p3776_p7, %p3770_p2 }
  0x36   : > { %3780 = shalt.err (!%p3777_p9)
}
  0x37   : > { %s4066_s22 = smov 128   ;;  %s4067_s10 = smov 8  }
  0x38   : > { %3381 = dma.hbm_to_vmem [thread:$0]  (!%p4188_p6), %s4919_s2, 8192, %s4177_s30, [#allocation6], %s4066_s22, %s4066_s22, %s4067_s10  }
  0x39   : > { %s4921_s6 = sld [smem:[#allocation29_spill]] }
  0x3f   : > { %s3781_s21 = scalar_lea.hbm %s4921_s6, 2048 }
  0x40   : > { %p3782_p4 = scmp.ne.s32.totalorder %s4921_s6, %s3781_s21  ;;  %p3788_p12 = scmp.lt.u32.totalorder %s3781_s21, %s4921_s6 }
  0x42   : > { %p3784_p10 = pnand %p3782_p4, %p4204_p8 }
  0x44   : > { %p3785_p11 = pneg %p3784_p10 }
  0x46   : > { %p3790_p13 = pnand %p3788_p12, %p3785_p11 }
  0x48   : > { %3793 = shalt.err (!%p3790_p13)
}
  0x49   : > { %s3794_s30 = scalar_lea.vmem %s4192_s17, 2048  ;;  %p3802_p7 = scmp.lt.s32.totalorder %s4192_s17, %s4192_s17 }
  0x4a   : > { %p3795_p0 = scmp.ne.s32.totalorder %s4192_s17, %s3794_s30  ;;  %p3803_p9 = scmp.lt.s32.totalorder %s3794_s30, %s3794_s30 }
  0x4c   : > { %p3797_p2 = pnand %p3795_p0, %p4204_p8  ;;  %p3804_p4 = por %p3803_p9, %p3802_p7 }
  0x4e   : > { %p3798_p5 = pneg %p3797_p2 }
  0x50   : > { %p3805_p10 = pnand %p3804_p4, %p3798_p5 }
  0x52   : > { %3808 = shalt.err (!%p3805_p10)
}
  0x53   : > { %3387 = dma.hbm_to_vmem [thread:$0]  (!%p4188_p6), %s4921_s6, 2048, %s4192_s17, [#allocation9], %s4066_s22, %s4066_s22, %s4067_s10  }
  0x54   : > { %s4922_s5 = sld [smem:[#allocation28_spill]] }
  0x5a   : > { %s3809_s23 = scalar_lea.hbm %s4922_s5, 2048 }
  0x5b   : > { %p3810_p11 = scmp.ne.s32.totalorder %s4922_s5, %s3809_s23  ;;  %p3816_p0 = scmp.lt.u32.totalorder %s3809_s23, %s4922_s5 }
  0x5d   : > { %p3812_p12 = pnand %p3810_p11, %p4204_p8 }
  0x5f   : > { %p3813_p13 = pneg %p3812_p12 }
  0x61   : > { %p3818_p2 = pnand %p3816_p0, %p3813_p13 }
  0x63   : > { %3821 = shalt.err (!%p3818_p2)
}
  0x64   : > { %s3822_s17 = scalar_lea.vmem %s4194_s20, 2048  ;;  %p3830_p4 = scmp.lt.s32.totalorder %s4194_s20, %s4194_s20 }
  0x65   : > { %p3823_p5 = scmp.ne.s32.totalorder %s4194_s20, %s3822_s17  ;;  %p3831_p10 = scmp.lt.s32.totalorder %s3822_s17, %s3822_s17 }
  0x67   : > { %p3825_p7 = pnand %p3823_p5, %p4204_p8  ;;  %p3832_p11 = por %p3831_p10, %p3830_p4 }
  0x69   : > { %p3826_p9 = pneg %p3825_p7 }
  0x6b   : > { %p3833_p12 = pnand %p3832_p11, %p3826_p9 }
  0x6d   : > { %3836 = shalt.err (!%p3833_p12)
}
  0x6e   : > { %3384 = dma.hbm_to_vmem [thread:$0]  (!%p4188_p6), %s4922_s5, 2048, %s4194_s20, [#allocation6], %s4066_s22, %s4066_s22, %s4067_s10  }
  0x6f   : > { %s4068_s11 = smov [#allocation10]   ;;  %s3837_s24 = scalar_lea.hbm %s4886_s7, 8192 }
  0x70   : > { %s422_s12 = sshll.u32 %s4068_s11, 4  ;;  %p3838_p13 = scmp.ne.s32.totalorder %s4886_s7, %s3837_s24  ;;  %s423_s12 = int_to_ptr.vmem [resolvable:$true] %s422_s12 }
  0x71   : > { %p3844_p5 = scmp.lt.u32.totalorder %s3837_s24, %s4886_s7 }
  0x72   : > { %p3840_p0 = pnand %p3838_p13, %p4204_p8 }
  0x74   : > { %p3841_p2 = pneg %p3840_p0 }
  0x76   : > { %p3846_p7 = pnand %p3844_p5, %p3841_p2 }
  0x78   : > { %3849 = shalt.err (!%p3846_p7)
}
  0x79   : > { %s3850_s20 = scalar_lea.vmem %s423_s12, 8192  ;;  %p3858_p11 = scmp.lt.s32.totalorder %s423_s12, %s423_s12 }
  0x7a   : > { %p3851_p9 = scmp.ne.s32.totalorder %s423_s12, %s3850_s20  ;;  %p3859_p12 = scmp.lt.s32.totalorder %s3850_s20, %s3850_s20 }
  0x7c   : > { %p3853_p4 = pnand %p3851_p9, %p4204_p8  ;;  %p3860_p1 = por %p3859_p12, %p3858_p11 }
  0x7e   : > { %p3854_p10 = pneg %p3853_p4 }
  0x80   : > { %p3861_p3 = pnand %p3860_p1, %p3854_p10 }
  0x82   : > { %3864 = shalt.err (!%p3861_p3)
}
  0x83   : > { %s4069_s22 = smov 256   ;;  %s4070_s16 = smov 16  }
  0x84   : > { %3390 = dma.hbm_to_vmem [thread:$0]  (!%p4188_p6), %s4886_s7, 8192, %s423_s12, [#allocation9], %s4069_s22, %s4069_s22, %s4070_s16  }
  0x85   : > { %s4900_s8 = sadd.s32 4294967294, %s4061_s28   ;;  %s4300_s11 = sadd.s32 1, %s4061_s28  }
  0x86   : > { %s42_s13 = ssub.s32 %s4061_s28, %s4300_s11  ;;  %s45_s23 = sadd.s32 1, %s4057_s27 }
  0x87   : > { %p43_p1 = scmp.eq.s32.totalorder %s42_s13, 0  ;;  %p52_p3 = scmp.ne.s32.totalorder %s4057_s27, %s4053_s26 }
  0x88   : > { %p53_p8 = scmp.eq.s32.totalorder %s4061_s28, 0  ;;  %p58_p13 = scmp.ne.s32.totalorder %s4053_s26, %s4049_s25 }
  0x89   : > { %s4311_s24 = scalar_select %p43_p1, %s4057_s27, %s45_s23  }
  0x8a   : > { %p4313_p0 = por %p53_p8, %p52_p3  ;;  %p4924_p2 = scmp.eq.s32.totalorder %s4172_s14, 0 }
  0x8b   : > { %p271_p5 = scmp.eq.s32.totalorder %s4172_s14, 1  ;;  %p277_p7 = scmp.eq.s32.totalorder %s4900_s8, 1 }
  0x8c   : > { %p4319_p6 = por %p4924_p2, %p58_p13  ;;  %p3412_p9 = scmp.lt.s32.totalorder %s4061_s28, 2 }
  0x8d   : > { %s442_s29 = sand.u32 1, %s4057_s27   ;;  %p4328_p4 = por %p271_p5, %p52_p3 }
  0x8e   : > { %p4332_p10 = por %p277_p7, %p58_p13  ;;  %s2895_s17 = sshll.u32 %s442_s29, 3 }
  0x8f   : > { %s4926_s19 = scalar_select %p4328_p4, 1, 0 }
  0x90   : > { %s4927_s21 = scalar_select %p4332_p10, 1, 0 }
  0x91   : > { %s2896_s20 = sshll.u32 %s4061_s28, 7  ;;  %s4928_s0 = sld [smem:[#allocation23_spill]] }
  0x92   : > { %s446_s30 = scalar_lea.vmem [#allocation2], %s2895_s17  ;;  %p4346_p11 = pnand %p3412_p9, %p4313_p0 }
  0x93   : > { %s453_s13 = sshll.u32 %s446_s30, 4  ;;  %s443_s8 = scalar_lea.sflag [#allocation3], %s442_s29  ;;  %s4342_s13 = int_to_ptr.vmem [resolvable:$true] %s453_s13 }
  0x94   : > { %p3867_p1 = pneg %p4346_p11 }
  0x97   : > { %s4340_s10 = scalar_lea.hbm %s4928_s0, %s2896_s20  ;;  %s3870_s22 = scalar_lea.hbm %s4928_s0, 256 }
  0x98   : > { %s3865_s2 = scalar_lea.hbm %s4340_s10, 128  ;;  %p3871_p13 = scmp.lt.u32.totalorder %s4340_s10, %s4928_s0 }
  0x99   : > { %p3866_p12 = scmp.ne.s32.totalorder %s4340_s10, %s3865_s2  ;;  %p3872_p0 = scmp.lt.u32.totalorder %s3870_s22, %s3865_s2 }
  0x9a   : > { %p3874_p5 = scmp.lt.u32.totalorder %s3865_s2, %s4340_s10 }
  0x9b   : > { %p3868_p3 = pnand %p3867_p1, %p3866_p12  ;;  %p3873_p2 = por %p3872_p0, %p3871_p13 }
  0x9d   : > { %p3869_p8 = pneg %p3868_p3  ;;  %p3875_p7 = por %p3874_p5, %p3873_p2 }
  0x9f   : > { %p3876_p9 = pnand %p3875_p7, %p3869_p8 }
  0xa1   : > { %3879 = shalt.err (!%p3876_p9)
}
  0xa2   : > { %s3880_s29 = scalar_lea.vmem %s4342_s13, 128  ;;  %s4071_s30 = smov [#allocation2]  }
  0xa3   : > { %p3881_p12 = scmp.ne.s32.totalorder %s4342_s13, %s3880_s29  ;;  %s3885_s17 = sshll.u32 %s4071_s30, 4  ;;  %s3886_s17 = int_to_ptr.vmem [resolvable:$false] %s3885_s17 }
  0xa4   : > { %s3887_s20 = scalar_lea.vmem %s3886_s17, 256  ;;  %p3888_p4 = scmp.lt.s32.totalorder %s4342_s13, %s3886_s17 }
  0xa5   : > { %p3883_p3 = pnand %p3881_p12, %p3867_p1  ;;  %p3889_p13 = scmp.lt.s32.totalorder %s3887_s20, %s3880_s29 }
  0xa7   : > { %p3884_p10 = pneg %p3883_p3  ;;  %p3890_p0 = por %p3889_p13, %p3888_p4 }
  0xa9   : > { %p3891_p2 = pnand %p3890_p0, %p3884_p10 }
  0xab   : > { %3894 = shalt.err (!%p3891_p2)
}
  0xac   : > { %3394 = dma.hbm_to_vmem [thread:$0]  (!%p4346_p11), %s4340_s10, 128, %s4342_s13, %s443_s8  }
  0xad   : > { %p4930_p8 = scmp.ne.s32.totalorder %s4917_s15, 0 }
  0xae   : > { %s4378_s2 = sand.u32 (!%p4930_p8), 1, %s4053_s26  }
  0xaf   : > { %462 = sbr.rel (%p4930_p8) target bundleno = 2486 (0x9b6), region = 60  ;;  %s4381_s22 = sshll.u32 (!%p4930_p8), %s4378_s2, 3 }
  0xb0   : > { %s465_s18 = scalar_lea.sflag (!%p4930_p8), [#allocation3], %s4378_s2  ;;  %s468_s16 = scalar_lea.vmem (!%p4930_p8), [#allocation2], %s4381_s22 }
  0xb6   : > { %4024 = dma.done.wait (%p4319_p6), %s465_s18, 128  }
  0xb7   : > { %4026 = vsyncadd (%p4319_p6), %s465_s18, 4294967168  ;;  %p4931_p4 = scmp.eq.s32.totalorder %s4172_s14, 0 }
  0xb9   : > { %4028 = dma.done.wait (%p4931_p4), [#allocation6], 10240   ;;  %p4932_p10 = pmov %p4931_p4 }
  0xba   : > { %p4933_p11 = pmov %p4931_p4 }
  0xbb   : > { %4030 = vsyncadd (%p4932_p10), [#allocation6], 4294957056 }
  0xbc   : > { %4032 = dma.done.wait (%p4933_p11), [#allocation9], 10240   ;;  %p4934_p1 = pmov %p4931_p4 }
  0xbd   : > { %v4072_v0 = vmov 0   ;;  %s4935_s1 = sld [smem:[#allocation24_spill]]  ;;  %v541_v14 = vld [vmem:[%s468_s16] sm:$0xff]  ;;  %v3489_v15 = vld [vmem:[#allocation5 + $0x4] ss:$8 sps:$4 sm:$0xff]   ;;  %vm661_vm0 = vcmask 523264  }
  0xbe   : > { %4034 = vsyncadd (%p4934_p1), [#allocation9], 4294957056  ;;  %697 = vmatprep.mubr.bf16.mxu0 %v4072_v0  ;;  %738 = vmatprep.mubr.bf16.mxu1 %v4072_v0  ;;  %v542_v17 = vpack.c.bf16 %v541_v14, %v541_v14  ;;  %v3487_v19 = vld [vmem:[#allocation5] ss:$8 sps:$4 sm:$0xff]   ;;  %v3492_v20 = vld [vmem:[#allocation5 + $0x14] ss:$8 sps:$4 sm:$0xff]  }
  0xbf   : > { %v3490_v22 = vld [vmem:[#allocation5 + $0x10] ss:$8 sps:$4 sm:$0xff]   ;;  %v3495_v23 = vld [vmem:[#allocation5 + $0x24] ss:$8 sps:$4 sm:$0xff]   ;;  %v3493_v24 = vld [vmem:[#allocation5 + $0x20] ss:$8 sps:$4 sm:$0xff]  }
  0xc0   : > { %v3498_v25 = vld [vmem:[#allocation5 + $0x34] ss:$8 sps:$4 sm:$0xff]   ;;  %v3496_v26 = vld [vmem:[#allocation5 + $0x30] ss:$8 sps:$4 sm:$0xff]   ;;  %v3501_v27 = vld [vmem:[#allocation5 + $0x44] ss:$8 sps:$4 sm:$0xff]  }
  0xc1   : > { %v3499_v28 = vld [vmem:[#allocation5 + $0x40] ss:$8 sps:$4 sm:$0xff]   ;;  %v3504_v29 = vld [vmem:[#allocation5 + $0x54] ss:$8 sps:$4 sm:$0xff]   ;;  %v3502_v30 = vld [vmem:[#allocation5 + $0x50] ss:$8 sps:$4 sm:$0xff]  }
  0xc2   : > { %v3507_v31 = vld [vmem:[#allocation5 + $0x64] ss:$8 sps:$4 sm:$0xff]   ;;  %v3505_v32 = vld [vmem:[#allocation5 + $0x60] ss:$8 sps:$4 sm:$0xff]   ;;  %v3510_v33 = vld [vmem:[#allocation5 + $0x74] ss:$8 sps:$4 sm:$0xff]  }
  0xc3   : > { %v3463_v1 = vld [vmem:[%s4935_s1 + $0x4] ss:$16 sps:$4 sm:$0xff]   ;;  %v3465_v2 = vld [vmem:[%s4935_s1] ss:$16 sps:$4 sm:$0xff]   ;;  %v3475_v7 = vld [vmem:[%s4935_s1 + $0xc] ss:$16 sps:$4 sm:$0xff]  }
  0xc4   : > { %665 = vmatprep.subr.bf16.mxu0 %v3463_v1  ;;  %v3466_v3 = vld [vmem:[%s4935_s1 + $0x24] ss:$16 sps:$4 sm:$0xff]   ;;  %v3468_v4 = vld [vmem:[%s4935_s1 + $0x20] ss:$16 sps:$4 sm:$0xff]   ;;  %v3477_v8 = vld [vmem:[%s4935_s1 + $0x8] ss:$16 sps:$4 sm:$0xff]   ;;  %706 = vmatprep.subr.bf16.mxu1 %v3475_v7  ;;  %v561_v1 = vlaneseq }
  0xc5   : > { %666 = vmatpush1.bf16.msra.mxu0 %v3465_v2  ;;  %v3469_v5 = vld [vmem:[%s4935_s1 + $0x44] ss:$16 sps:$4 sm:$0xff]   ;;  %v3471_v6 = vld [vmem:[%s4935_s1 + $0x40] ss:$16 sps:$4 sm:$0xff]   ;;  %v3478_v9 = vld [vmem:[%s4935_s1 + $0x2c] ss:$16 sps:$4 sm:$0xff]   ;;  %707 = vmatpush1.bf16.msra.mxu1 %v3477_v8 }
  0xc6   : > { %667 = vmatprep.subr.bf16.mxu0 %v3466_v3  ;;  %v3472_v10 = vld [vmem:[%s4935_s1 + $0x64] ss:$16 sps:$4 sm:$0xff]   ;;  %v3480_v11 = vld [vmem:[%s4935_s1 + $0x28] ss:$16 sps:$4 sm:$0xff]   ;;  %v3474_v12 = vld [vmem:[%s4935_s1 + $0x60] ss:$16 sps:$4 sm:$0xff]   ;;  %708 = vmatprep.subr.bf16.mxu1 %v3478_v9 }
  0xc7   : > { %v3481_v13 = vld [vmem:[%s4935_s1 + $0x4c] ss:$16 sps:$4 sm:$0xff]   ;;  %v3483_v16 = vld [vmem:[%s4935_s1 + $0x48] ss:$16 sps:$4 sm:$0xff]   ;;  %s4936_s3 = sld [smem:[#allocation26_spill]]  ;;  %v4488_v2 = vshrl.u32 %v561_v1, 7 }
  0xc8   : > { %v3484_v18 = vld [vmem:[%s4935_s1 + $0x6c] ss:$16 sps:$4 sm:$0xff]   ;;  %v3486_v21 = vld [vmem:[%s4935_s1 + $0x68] ss:$16 sps:$4 sm:$0xff]   ;;  %vm4074_vm1 = vmmov 0   ;;  %s527_s15 = scalar_lea.vmem [#allocation12], %s4381_s22 }
  0xc9   : > { %668 = vmatpush1.bf16.msra.mxu0 %v3468_v4  ;;  %709 = vmatpush1.bf16.msra.mxu1 %v3480_v11  ;;  %v3508_v34 = vld [vmem:[#allocation5 + $0x70] ss:$8 sps:$4 sm:$0xff]   ;;  %v3513_v35 = vld [vmem:[#allocation5 + $0x84] ss:$8 sps:$4 sm:$0xff]   ;;  %v3511_v36 = vld [vmem:[#allocation5 + $0x80] ss:$8 sps:$4 sm:$0xff]  }
  0xca   : > { %669 = vmatprep.subr.bf16.mxu0 %v3469_v5  ;;  %710 = vmatprep.subr.bf16.mxu1 %v3481_v13  ;;  %v3516_v37 = vld [vmem:[#allocation5 + $0x94] ss:$8 sps:$4 sm:$0xff]   ;;  %v3514_v38 = vld [vmem:[#allocation5 + $0x90] ss:$8 sps:$4 sm:$0xff]   ;;  %v3519_v39 = vld [vmem:[#allocation5 + $0xa4] ss:$8 sps:$4 sm:$0xff]  }
  0xcb   : > { %v3517_v40 = vld [vmem:[#allocation5 + $0xa0] ss:$8 sps:$4 sm:$0xff]   ;;  %v3522_v41 = vld [vmem:[#allocation5 + $0xb4] ss:$8 sps:$4 sm:$0xff]   ;;  %v3520_v42 = vld [vmem:[#allocation5 + $0xb0] ss:$8 sps:$4 sm:$0xff]  }
  0xcc   : > { %v3525_v43 = vld [vmem:[#allocation5 + $0xc4] ss:$8 sps:$4 sm:$0xff]   ;;  %v3523_v44 = vld [vmem:[#allocation5 + $0xc0] ss:$8 sps:$4 sm:$0xff]   ;;  %v3528_v45 = vld [vmem:[#allocation5 + $0xd4] ss:$8 sps:$4 sm:$0xff]  }
  0xcd   : > { %670 = vmatpush1.bf16.msra.mxu0 %v3471_v6  ;;  %711 = vmatpush1.bf16.msra.mxu1 %v3483_v16  ;;  %v3526_v46 = vld [vmem:[#allocation5 + $0xd0] ss:$8 sps:$4 sm:$0xff]   ;;  %v3531_v47 = vld [vmem:[#allocation5 + $0xe4] ss:$8 sps:$4 sm:$0xff]   ;;  %v3529_v48 = vld [vmem:[#allocation5 + $0xe0] ss:$8 sps:$4 sm:$0xff]  }
  0xce   : > { %671 = vmatprep.subr.bf16.mxu0 %v3472_v10  ;;  %712 = vmatprep.subr.bf16.mxu1 %v3484_v18  ;;  %v3534_v49 = vld [vmem:[#allocation5 + $0xf4] ss:$8 sps:$4 sm:$0xff]   ;;  %v3532_v50 = vld [vmem:[#allocation5 + $0xf0] ss:$8 sps:$4 sm:$0xff]   ;;  %v3537_v51 = vld [vmem:[#allocation5 + $0x104] ss:$8 sps:$4 sm:$0xff]  }
  0xcf   : > { %v3583_v52 = vld [vmem:[%s4936_s3 + $0x40] sm:$0xff]   ;;  %v3585_v54 = vld [vmem:[%s4936_s3 + $0x48] sm:$0xff]   ;;  %v3587_v56 = vld [vmem:[%s4936_s3 + $0x50] sm:$0xff]   ;;  %v4491_v3 = vsub.s32 0, %v4488_v2  ;;  %v4499_v5 = vsub.s32 1, %v4488_v2  ;;  %v575_v9 = vsub.s32 3, %v4488_v2 }
  0xd0   : > { %v3584_v53 = vld [vmem:[%s4936_s3] sm:$0xff]   ;;  %v3586_v55 = vld [vmem:[%s4936_s3 + $0x8] sm:$0xff]   ;;  %v3588_v57 = vld [vmem:[%s4936_s3 + $0x10] sm:$0xff]   ;;  %s4937_s4 = sld [smem:[#allocation27_spill]]  ;;  %vm1532_vm4 = vcmask 57344   ;;  %s4903_s12 = scalar_lea.vmem [#allocation14], %s4378_s2 }
  0xd1   : > { %672 = vmatpush1.bf16.msra.mxu0 %v3474_v12  ;;  %713 = vmatpush1.bf16.msra.mxu1 %v3486_v21  ;;  %v3589_v58 = vld [vmem:[%s4936_s3 + $0x58] sm:$0xff]   ;;  %v3591_v60 = vld [vmem:[%s4936_s3 + $0x60] sm:$0xff]   ;;  %v3593_v62 = vld [vmem:[%s4936_s3 + $0x68] sm:$0xff]   ;;  %s4938_s23 = sld [smem:[#allocation30_spill]]  ;;  %s4902_s16 = scalar_lea.vmem [#allocation15], %s4378_s2 }
  0xd2   : > { %1151 = vmatprep.subr.bf16.mxu0 %v3489_v15  ;;  %3128 = vmatprep.subr.bf16.mxu1 %v3583_v52  ;;  %v3590_v59 = vld [vmem:[%s4936_s3 + $0x18] sm:$0xff]   ;;  %v3592_v61 = vld [vmem:[%s4936_s3 + $0x20] sm:$0xff]   ;;  %v3594_v63 = vld [vmem:[%s4936_s3 + $0x28] sm:$0xff]   ;;  %v571_v52 = vsub.s32 2, %v4488_v2  ;;  %s2634_s29 = sand.u32 1, %s4172_s14   ;;  %s4904_s30 = sshll.u32 %s4172_s14, 7 }
  0xd3   : > { %v4496_v4 = vld [vmem:[%s4888_s9] sm:$0xf]  ;;  %s2669_s18 = sshll.u32 %s527_s15, 4  ;;  %s4752_s8 = scalar_lea.sflag [#allocation13], %s2634_s29  ;;  %s2670_s18 = int_to_ptr.vmem [resolvable:$true] %s2669_s18 }
  0xd4   : > { %2921 = vmatmul.mubr.msk.bf16.vlgmr.msra.gmra.mrb[0].mxu0 %vm661_vm0, %v542_v17  ;;  %2922 = vmatmul.mubr.msk.bf16.vlgmr.msra.gmra.mrb[0].mxu1 %vm661_vm0, %v542_v17  ;;  %v564_v6 = vrot.slane %v4496_v4, %v4491_v3  ;;  %v568_v7 = vrot.slane %v4496_v4, %v4499_v5  ;;  %v576_v17 = vrot.slane %v4496_v4, %v575_v9  ;;  %s3895_s10 = scalar_lea.vmem %s2670_s18, 128  ;;  %p4940_p5 = scmp.ne.s32.totalorder %s4926_s19, 0 }
  0xd5   : > { %1152 = vmatpush1.bf16.msra.mxu0 %v3487_v19  ;;  %3129 = vmatpush3.bf16.msra.mxu1 %v3584_v53  ;;  %v3535_v19 = vld [vmem:[#allocation5 + $0x100] ss:$8 sps:$4 sm:$0xff]   ;;  %v3576_v53 = vld [vmem:[#allocation5 + $0x1d4] ss:$8 sps:$4 sm:$0xff]   ;;  %p3896_p6 = scmp.ne.s32.totalorder %s2670_s18, %s3895_s10  ;;  %s4077_s13 = smov [#allocation12]  }
  0xd6   : > { %1153 = vmatprep.subr.bf16.mxu0 %v3492_v20  ;;  %3130 = vmatprep.subr.bf16.mxu1 %v3585_v54  ;;  %v3574_v54 = vld [vmem:[#allocation5 + $0x1d0] ss:$8 sps:$4 sm:$0xff]   ;;  %s3899_s0 = sshll.u32 %s4077_s13, 4  ;;  %s3900_s0 = int_to_ptr.vmem [resolvable:$false] %s3899_s0 }
  0xd7   : > { %p3897_p7 = pnand %p3896_p6, %p4940_p5  ;;  %s3901_s1 = scalar_lea.vmem %s3900_s0, 256 }
  0xd8   : > { %p3902_p12 = scmp.lt.s32.totalorder %s2670_s18, %s3900_s0  ;;  %p3903_p3 = scmp.lt.s32.totalorder %s3901_s1, %s3895_s10 }
  0xd9   : > { %1154 = vmatpush1.bf16.msra.mxu0 %v3490_v22  ;;  %3131 = vmatpush3.bf16.msra.mxu1 %v3586_v55  ;;  %v3540_v22 = vld [vmem:[#allocation5 + $0x114] ss:$8 sps:$4 sm:$0xff]   ;;  %v572_v55 = vrot.slane %v4496_v4, %v571_v52  ;;  %v3596_v4 = vld [vmem:[%s4936_s3 + $0x30] sm:$0xff]   ;;  %p3898_p9 = pneg %p3897_p7 }
  0xda   : > { %1155 = vmatprep.subr.bf16.mxu0 %v3495_v23  ;;  %3132 = vmatprep.subr.bf16.mxu1 %v3587_v56  ;;  %v3579_v56 = vld [vmem:[#allocation5 + $0x1e4] ss:$8 sps:$4 sm:$0xff]   ;;  %p3904_p13 = por %p3903_p3, %p3902_p12 }
  0xdc   : > { %p3905_p0 = pnand %p3904_p13, %p3898_p9 }
  0xdd   : > { %1156 = vmatpush1.bf16.msra.mxu0 %v3493_v24  ;;  %3133 = vmatpush3.bf16.msra.mxu1 %v3588_v57  ;;  %v3577_v57 = vld [vmem:[#allocation5 + $0x1e0] ss:$8 sps:$4 sm:$0xff]  }
  0xde   : > { %1157 = vmatprep.subr.bf16.mxu0 %v3498_v25  ;;  %3134 = vmatprep.subr.bf16.mxu1 %v3589_v58 }
  0xe1   : > { %1158 = vmatpush1.bf16.msra.mxu0 %v3496_v26  ;;  %3135 = vmatpush3.bf16.msra.mxu1 %v3590_v59  ;;  %v3582_v59 = vld [vmem:[#allocation5 + $0x1f4] ss:$8 sps:$4 sm:$0xff]  }
  0xe2   : > { %1159 = vmatprep.subr.bf16.mxu0 %v3501_v27  ;;  %3136 = vmatprep.subr.bf16.mxu1 %v3591_v60  ;;  %v3538_v27 = vld [vmem:[#allocation5 + $0x110] ss:$8 sps:$4 sm:$0xff]  }
  0xe3   : > { %v3580_v60 = vld [vmem:[#allocation5 + $0x1f0] ss:$8 sps:$4 sm:$0xff]  }
  0xe5   : > { %1160 = vmatpush1.bf16.msra.mxu0 %v3499_v28  ;;  %3137 = vmatpush3.bf16.msra.mxu1 %v3592_v61 }
  0xe6   : > { %1161 = vmatprep.subr.bf16.mxu0 %v3504_v29  ;;  %3138 = vmatprep.subr.bf16.mxu1 %v3593_v62  ;;  %v3543_v29 = vld [vmem:[#allocation5 + $0x124] ss:$8 sps:$4 sm:$0xff]  }
  0xe9   : > { %1162 = vmatpush1.bf16.msra.mxu0 %v3502_v30  ;;  %3139 = vmatpush3.bf16.msra.mxu1 %v3594_v63  ;;  %v3595_v63 = vld [vmem:[%s4936_s3 + $0x70] sm:$0xff]  }
  0xea   : > { %1163 = vmatprep.subr.bf16.mxu0 %v3507_v31  ;;  %v3541_v31 = vld [vmem:[#allocation5 + $0x120] ss:$8 sps:$4 sm:$0xff]   ;;  %3140 = vmatprep.subr.bf16.mxu1 %v3595_v63 }
  0xed   : > { %1164 = vmatpush1.bf16.msra.mxu0 %v3505_v32  ;;  %v3546_v32 = vld [vmem:[#allocation5 + $0x134] ss:$8 sps:$4 sm:$0xff]   ;;  %3141 = vmatpush3.bf16.msra.mxu1 %v3596_v4 }
  0xee   : > { %1165 = vmatprep.subr.bf16.mxu0 %v3510_v33  ;;  %v3544_v33 = vld [vmem:[#allocation5 + $0x130] ss:$8 sps:$4 sm:$0xff]  }
  0xf1   : > { %1166 = vmatpush1.bf16.msra.mxu0 %v3508_v34  ;;  %v3549_v34 = vld [vmem:[#allocation5 + $0x144] ss:$8 sps:$4 sm:$0xff]  }
  0xf2   : > { %1167 = vmatprep.subr.bf16.mxu0 %v3513_v35  ;;  %v3547_v35 = vld [vmem:[#allocation5 + $0x140] ss:$8 sps:$4 sm:$0xff]  }
  0xf5   : > { %1168 = vmatpush1.bf16.msra.mxu0 %v3511_v36  ;;  %v3552_v36 = vld [vmem:[#allocation5 + $0x154] ss:$8 sps:$4 sm:$0xff]  }
  0xf6   : > { %1169 = vmatprep.subr.bf16.mxu0 %v3516_v37  ;;  %v3550_v37 = vld [vmem:[#allocation5 + $0x150] ss:$8 sps:$4 sm:$0xff]  }
  0xf9   : > { %1170 = vmatpush1.bf16.msra.mxu0 %v3514_v38  ;;  %v3555_v38 = vld [vmem:[#allocation5 + $0x164] ss:$8 sps:$4 sm:$0xff]  }
  0xfa   : > { %1171 = vmatprep.subr.bf16.mxu0 %v3519_v39  ;;  %v3553_v39 = vld [vmem:[#allocation5 + $0x160] ss:$8 sps:$4 sm:$0xff]  }
  0xfd   : > { %1172 = vmatpush1.bf16.msra.mxu0 %v3517_v40  ;;  %v3558_v40 = vld [vmem:[#allocation5 + $0x174] ss:$8 sps:$4 sm:$0xff]  }
  0xfe   : > { %1173 = vmatprep.subr.bf16.mxu0 %v3522_v41  ;;  %v3556_v41 = vld [vmem:[#allocation5 + $0x170] ss:$8 sps:$4 sm:$0xff]  }
 0x101   : > { %1174 = vmatpush1.bf16.msra.mxu0 %v3520_v42  ;;  %v3561_v42 = vld [vmem:[#allocation5 + $0x184] ss:$8 sps:$4 sm:$0xff]  }
 0x102   : > { %1175 = vmatprep.subr.bf16.mxu0 %v3525_v43  ;;  %v3559_v43 = vld [vmem:[#allocation5 + $0x180] ss:$8 sps:$4 sm:$0xff]  }
 0x105   : > { %1176 = vmatpush1.bf16.msra.mxu0 %v3523_v44  ;;  %v3564_v44 = vld [vmem:[#allocation5 + $0x194] ss:$8 sps:$4 sm:$0xff]  }
 0x106   : > { %1177 = vmatprep.subr.bf16.mxu0 %v3528_v45  ;;  %v3562_v45 = vld [vmem:[#allocation5 + $0x190] ss:$8 sps:$4 sm:$0xff]  }
 0x109   : > { %1178 = vmatpush1.bf16.msra.mxu0 %v3526_v46  ;;  %v3567_v46 = vld [vmem:[#allocation5 + $0x1a4] ss:$8 sps:$4 sm:$0xff]  }
 0x10a   : > { %1179 = vmatprep.subr.bf16.mxu0 %v3531_v47  ;;  %v3565_v47 = vld [vmem:[#allocation5 + $0x1a0] ss:$8 sps:$4 sm:$0xff]  }
 0x10d   : > { %1180 = vmatpush1.bf16.msra.mxu0 %v3529_v48  ;;  %v3570_v48 = vld [vmem:[#allocation5 + $0x1b4] ss:$8 sps:$4 sm:$0xff]  }
 0x10e   : > { %1181 = vmatprep.subr.bf16.mxu0 %v3534_v49  ;;  %v3568_v49 = vld [vmem:[#allocation5 + $0x1b0] ss:$8 sps:$4 sm:$0xff]  }
 0x111   : > { %1182 = vmatpush1.bf16.msra.mxu0 %v3532_v50  ;;  %v3573_v50 = vld [vmem:[#allocation5 + $0x1c4] ss:$8 sps:$4 sm:$0xff]  }
 0x112   : > { %1192 = vmatprep.subr.bf16.mxu0 %v3537_v51  ;;  %v3571_v51 = vld [vmem:[#allocation5 + $0x1c0] ss:$8 sps:$4 sm:$0xff]  }
 0x1a7   : > { %v699_v8 = vpop.f32.mrb[0].mxu0  ;;  %v4509_v20 = vpop.f32.mrb[0].mxu1 }
 0x1a8   : > { %v700_v10 = vadd.f32 %v699_v8, %v564_v6  ;;  %v701_v11 = vpop.f32.mrb[1].mxu0  ;;  %v742_v23 = vpop.f32.mrb[1].mxu1  ;;  %v741_v58 = vadd.f32 %v4509_v20, %v572_v55  ;;  %v3597_v6 = vld [vmem:[%s4936_s3 + $0x78] sm:$0xff]   ;;  %v4073_v8 = vmov 0.0|0.0   ;;  %v1414_v20 = vld [vmem:[#allocation7] sm:$0xff] }
 0x1a9   : > { %v702_v12 = vadd.f32 %v701_v11, %v568_v7  ;;  %v703_v13 = vpop.f32.mrb[2].mxu0  ;;  %v743_v24 = vadd.f32 %v742_v23, %v576_v17  ;;  %v744_v25 = vpop.f32.mrb[2].mxu1  ;;  %v3598_v7 = vld [vmem:[%s4936_s3 + $0x38] sm:$0xff]   ;;  %3142 = vmatprep.subr.bf16.mxu1 %v3597_v6 }
 0x1aa   : > { %v747_v14 = vmax.f32 %v700_v10, 0.0  ;;  %v704_v15 = vpop.f32.mrb[3].mxu0  ;;  %v745_v26 = vpop.f32.mrb[3].mxu1  ;;  %v749_v61 = vmax.f32 %v741_v58, 0.0  ;;  %3143 = vmatpush3.bf16.msra.mxu1 %v3598_v7  ;;  %v819_v10 = vld [vmem:[%s4888_s9 + $0x4] sm:$0x3] }
 0x1ab   : > { %v748_v16 = vmax.f32 %v702_v12, 0.0  ;;  %v750_v28 = vmax.f32 %v743_v24, 0.0  ;;  %3298 = vmatprep.subr.bf16.mxu1 %v4073_v8  ;;  %v824_v11 = vrot.slane %v819_v10, %v4491_v3  ;;  %v828_v12 = vrot.slane %v819_v10, %v4499_v5  ;;  %v1416_v26 = vld [vmem:[#allocation7 + $0x10] sm:$0xff]  ;;  %v1538_v10 = vld [vmem:[%s4937_s4 + $0x8] sm:$0xff] }
 0x1ac   : > { %v751_v21 = vpack.c.bf16 %v747_v14, %v747_v14  ;;  %v753_v62 = vpack.c.bf16 %v749_v61, %v749_v61  ;;  %v4556_v61 = vand.u32 127, %v561_v1  ;;  %v1537_v7 = vld [vmem:[%s4937_s4] sm:$0xff]  ;;  %v1539_v1 = vld [vmem:[%s4937_s4 + $0x10] sm:$0xff] }
 0x1ad   : > { %v752_v18 = vpack.c.bf16 %v748_v16, %v748_v16  ;;  %v754_v30 = vpack.c.bf16 %v750_v28, %v750_v28 }
 0x1af   : > { %1183 = vmatprep.mubr.bf16.mxu0 %v752_v18 }
 0x1b0   : > { %1184 = vmatmul.mubr.bf16.vlgmr.msra.gmra.mrb[4].mxu0 %v751_v21  ;;  %v1415_v21 = vld [vmem:[#allocation7 + $0x8] sm:$0xff] }
 0x1b1   : > { %1193 = vmatpush1.bf16.msra.mxu0 %v3535_v19  ;;  %1224 = vmatprep.mubr.bf16.mxu0 %v754_v30  ;;  %v3299_v24 = vpack.c.bf16 %v1415_v21, %v1414_v20  ;;  %v1419_v30 = vld [vmem:[#allocation7 + $0x28] sm:$0xff]  ;;  %v1545_v20 = vld [vmem:[%s4937_s4 + $0x40] sm:$0xff]  ;;  %v1546_v21 = vld [vmem:[%s4937_s4 + $0x48] sm:$0xff] }
 0x1b2   : > { %1194 = vmatprep.subr.bf16.mxu0 %v3540_v22 }
 0x1b5   : > { %1195 = vmatpush1.bf16.msra.mxu0 %v3538_v27  ;;  %v1417_v27 = vld [vmem:[#allocation7 + $0x18] sm:$0xff] }
 0x1b6   : > { %1196 = vmatprep.subr.bf16.mxu0 %v3543_v29  ;;  %v3302_v28 = vpack.c.bf16 %v1417_v27, %v1416_v26  ;;  %v1418_v29 = vld [vmem:[#allocation7 + $0x20] sm:$0xff]  ;;  %v1549_v26 = vld [vmem:[%s4937_s4 + $0x60] sm:$0xff]  ;;  %v1550_v27 = vld [vmem:[%s4937_s4 + $0x68] sm:$0xff] }
 0x1b9   : > { %1197 = vmatpush1.bf16.msra.mxu0 %v3541_v31  ;;  %v3305_v31 = vpack.c.bf16 %v1419_v30, %v1418_v29 }
 0x1ba   : > { %1198 = vmatprep.subr.bf16.mxu0 %v3546_v32  ;;  %v1420_v32 = vld [vmem:[#allocation7 + $0x30] sm:$0xff] }
 0x1bd   : > { %1199 = vmatpush1.bf16.msra.mxu0 %v3544_v33  ;;  %v1421_v33 = vld [vmem:[#allocation7 + $0x38] sm:$0xff] }
 0x1be   : > { %1200 = vmatprep.subr.bf16.mxu0 %v3549_v34  ;;  %v3308_v34 = vpack.c.bf16 %v1421_v33, %v1420_v32  ;;  %v1551_v33 = vld [vmem:[%s4937_s4 + $0x70] sm:$0xff] }
 0x1c1   : > { %1201 = vmatpush1.bf16.msra.mxu0 %v3547_v35  ;;  %v1422_v35 = vld [vmem:[#allocation7 + $0x40] sm:$0xff] }
 0x1c2   : > { %1202 = vmatprep.subr.bf16.mxu0 %v3552_v36  ;;  %v1423_v36 = vld [vmem:[#allocation7 + $0x48] sm:$0xff] }
 0x1c5   : > { %1203 = vmatpush1.bf16.msra.mxu0 %v3550_v37  ;;  %v3311_v37 = vpack.c.bf16 %v1423_v36, %v1422_v35  ;;  %v3601_v36 = vld [vmem:[#allocation8 + $0x4] ss:$8 sps:$4 sm:$0xff]  }
 0x1c6   : > { %1204 = vmatprep.subr.bf16.mxu0 %v3555_v38  ;;  %v1424_v38 = vld [vmem:[#allocation7 + $0x50] sm:$0xff] }
 0x1c9   : > { %1205 = vmatpush1.bf16.msra.mxu0 %v3553_v39  ;;  %v1425_v39 = vld [vmem:[#allocation7 + $0x58] sm:$0xff] }
 0x1ca   : > { %1206 = vmatprep.subr.bf16.mxu0 %v3558_v40  ;;  %v3314_v40 = vpack.c.bf16 %v1425_v39, %v1424_v38 }
 0x1cd   : > { %1207 = vmatpush1.bf16.msra.mxu0 %v3556_v41  ;;  %v1426_v41 = vld [vmem:[#allocation7 + $0x60] sm:$0xff] }
 0x1ce   : > { %1208 = vmatprep.subr.bf16.mxu0 %v3561_v42  ;;  %v1427_v42 = vld [vmem:[#allocation7 + $0x68] sm:$0xff] }
 0x1d1   : > { %1209 = vmatpush1.bf16.msra.mxu0 %v3559_v43  ;;  %v3317_v43 = vpack.c.bf16 %v1427_v42, %v1426_v41  ;;  %v3599_v42 = vld [vmem:[#allocation8] ss:$8 sps:$4 sm:$0xff]  }
 0x1d2   : > { %1210 = vmatprep.subr.bf16.mxu0 %v3564_v44  ;;  %v1428_v44 = vld [vmem:[#allocation7 + $0x70] sm:$0xff] }
 0x1d5   : > { %1211 = vmatpush1.bf16.msra.mxu0 %v3562_v45  ;;  %v1429_v45 = vld [vmem:[#allocation7 + $0x78] sm:$0xff] }
 0x1d6   : > { %1212 = vmatprep.subr.bf16.mxu0 %v3567_v46  ;;  %v3320_v46 = vpack.c.bf16 %v1429_v45, %v1428_v44  ;;  %v4076_v45 = vmov 1.0  }
 0x1d9   : > { %1213 = vmatpush1.bf16.msra.mxu0 %v3565_v47  ;;  %v4075_v47 = vmov 0.0  }
 0x1da   : > { %1214 = vmatprep.subr.bf16.mxu0 %v3570_v48 }
 0x1dd   : > { %1215 = vmatpush1.bf16.msra.mxu0 %v3568_v49  ;;  %v2987_v49 = vld [vmem:[%s4888_s9 + $0x6] ss:$0 sm:$0xff] }
 0x1de   : > { %1216 = vmatprep.subr.bf16.mxu0 %v3573_v50 }
 0x1e1   : > { %1217 = vmatpush1.bf16.msra.mxu0 %v3571_v51 }
 0x1e2   : > { %1218 = vmatprep.subr.bf16.mxu0 %v3576_v53 }
 0x1e5   : > { %1219 = vmatpush1.bf16.msra.mxu0 %v3574_v54 }
 0x1e6   : > { %1220 = vmatprep.subr.bf16.mxu0 %v3579_v56 }
 0x1e9   : > { %1221 = vmatpush1.bf16.msra.mxu0 %v3577_v57  ;;  %v3004_v57 = vld [vmem:[%s4888_s9 + $0xe] ss:$0 sm:$0xff] }
 0x1ea   : > { %1222 = vmatprep.subr.bf16.mxu0 %v3582_v59 }
 0x1ed   : > { %1223 = vmatpush1.bf16.msra.mxu0 %v3580_v60 }
 0x1f0   : > { %1225 = vmatmul.mubr.bf16.vlgmr.msra.gmra.mrb[4].mxu0 %v753_v62 }
 0x2c3   : > { %v1226_v13 = vpop.f32.mrb[4].mxu0 }
 0x2c4   : > { %v3346_v14 = vadd.f32 %v1226_v13, %v824_v11  ;;  %v1228_v15 = vpop.f32.mrb[5].mxu0  ;;  %v3323_v11 = vpack.c.bf16 %v1538_v10, %v1537_v7  ;;  %v3625_v7 = vld [vmem:[#allocation10 + $0x4] ss:$16 sps:$4 sm:$0xff]   ;;  %v3626_v10 = vld [vmem:[#allocation10 + $0x8] ss:$16 sps:$4 sm:$0xff]  }
 0x2c5   : > { %v3347_v16 = vadd.f32 %v1228_v15, %v828_v12  ;;  %v1230_v17 = vpop.f32.mrb[6].mxu0  ;;  %v1540_v12 = vld [vmem:[%s4937_s4 + $0x18] sm:$0xff]  ;;  %v1542_v15 = vld [vmem:[%s4937_s4 + $0x28] sm:$0xff]  ;;  %2194 = vmatprep.subr.bf16.mxu0 %v3625_v7 }
 0x2c6   : > { %v1233_v18 = vmax.f32 %v3346_v14, 0.0  ;;  %v1231_v19 = vpop.f32.mrb[7].mxu0  ;;  %v3326_v13 = vpack.c.bf16 %v1540_v12, %v1539_v1  ;;  %v1541_v14 = vld [vmem:[%s4937_s4 + $0x20] sm:$0xff]  ;;  %v1543_v17 = vld [vmem:[%s4937_s4 + $0x30] sm:$0xff]  ;;  %v3628_v1 = vld [vmem:[#allocation10 + $0xc] ss:$16 sps:$4 sm:$0xff]  }
 0x2c7   : > { %v1234_v22 = vmax.f32 %v3347_v16, 0.0  ;;  %v3329_v16 = vpack.c.bf16 %v1542_v15, %v1541_v14  ;;  %v3634_v12 = vld [vmem:[#allocation10 + $0x2c] ss:$16 sps:$4 sm:$0xff]   ;;  %v3632_v14 = vld [vmem:[#allocation10 + $0x28] ss:$16 sps:$4 sm:$0xff]  }
 0x2c8   : > { %v1235_v25 = vpack.c.bf16 %v1233_v18, %v1233_v18  ;;  %v1544_v18 = vld [vmem:[%s4937_s4 + $0x38] sm:$0xff]  ;;  %v3637_v15 = vld [vmem:[#allocation10 + $0x44] ss:$16 sps:$4 sm:$0xff]  }
 0x2c9   : > { %v1236_v23 = vpack.c.bf16 %v1234_v22, %v1234_v22  ;;  %v3332_v19 = vpack.c.bf16 %v1544_v18, %v1543_v17  ;;  %v3335_v22 = vpack.c.bf16 %v1546_v21, %v1545_v20  ;;  %v3638_v17 = vld [vmem:[#allocation10 + $0x48] ss:$16 sps:$4 sm:$0xff]   ;;  %v3643_v18 = vld [vmem:[#allocation10 + $0x64] ss:$16 sps:$4 sm:$0xff]   ;;  %v3641_v20 = vld [vmem:[#allocation10 + $0x60] ss:$16 sps:$4 sm:$0xff]  }
 0x2ca   : > { %v3644_v21 = vld [vmem:[#allocation10 + $0x68] ss:$16 sps:$4 sm:$0xff]  }
 0x2cb   : > { %1404 = vmatprep.mubr.bf16.mxu1 %v1236_v23  ;;  %v1547_v23 = vld [vmem:[%s4937_s4 + $0x50] sm:$0xff]  ;;  %v3710_v7 = vld [vmem:[#allocation10 + $0x1c8] ss:$16 sps:$4 sm:$0xff]  }
 0x2cc   : > { %1405 = vmatmul.mubr.bf16.vlgmr.msra.gmra.mrb[4].mxu1 %v1235_v25 }
 0x2cd   : > { %3300 = vmatpush3.bf16.msra.mxu1 %v3299_v24  ;;  %3260 = vmatprep.mubr.msk.f32.mxu1 %vm4074_vm1, %v4075_v47  ;;  %v1548_v24 = vld [vmem:[%s4937_s4 + $0x58] sm:$0xff] }
 0x2ce   : > { %3301 = vmatprep.subr.bf16.mxu1 %v4073_v8  ;;  %v3338_v25 = vpack.c.bf16 %v1548_v24, %v1547_v23  ;;  %v3652_v23 = vld [vmem:[#allocation10 + $0x8c] ss:$16 sps:$4 sm:$0xff]   ;;  %v3647_v24 = vld [vmem:[#allocation10 + $0x80] ss:$16 sps:$4 sm:$0xff]  }
 0x2d1   : > { %3303 = vmatpush3.bf16.msra.mxu1 %v3302_v28  ;;  %v3341_v28 = vpack.c.bf16 %v1550_v27, %v1549_v26  ;;  %v3655_v26 = vld [vmem:[#allocation10 + $0xa4] ss:$16 sps:$4 sm:$0xff]   ;;  %v3658_v27 = vld [vmem:[#allocation10 + $0xac] ss:$16 sps:$4 sm:$0xff]  }
 0x2d2   : > { %3304 = vmatprep.subr.bf16.mxu1 %v4073_v8 }
 0x2d5   : > { %3306 = vmatpush3.bf16.msra.mxu1 %v3305_v31 }
 0x2d6   : > { %3307 = vmatprep.subr.bf16.mxu1 %v4073_v8 }
 0x2d9   : > { %3309 = vmatpush3.bf16.msra.mxu1 %v3308_v34  ;;  %v1552_v34 = vld [vmem:[%s4937_s4 + $0x78] sm:$0xff] }
 0x2da   : > { %3310 = vmatprep.subr.bf16.mxu1 %v4073_v8  ;;  %v3344_v35 = vpack.c.bf16 %v1552_v34, %v1551_v33  ;;  %v3662_v33 = vld [vmem:[#allocation10 + $0xc8] ss:$16 sps:$4 sm:$0xff]   ;;  %v3667_v34 = vld [vmem:[#allocation10 + $0xe4] ss:$16 sps:$4 sm:$0xff]  }
 0x2dd   : > { %3312 = vmatpush3.bf16.msra.mxu1 %v3311_v37 }
 0x2de   : > { %3313 = vmatprep.subr.bf16.mxu1 %v4073_v8 }
 0x2e1   : > { %3315 = vmatpush3.bf16.msra.mxu1 %v3314_v40  ;;  %v4616_v40 = vsub.s32 %v4556_v61, %v4488_v2 }
 0x2e2   : > { %3316 = vmatprep.subr.bf16.mxu1 %v4073_v8 }
 0x2e5   : > { %3318 = vmatpush3.bf16.msra.mxu1 %v3317_v43  ;;  %v3604_v43 = vld [vmem:[#allocation8 + $0x14] ss:$8 sps:$4 sm:$0xff]  }
 0x2e6   : > { %3319 = vmatprep.subr.bf16.mxu1 %v4073_v8 }
 0x2e9   : > { %3321 = vmatpush3.bf16.msra.mxu1 %v3320_v46  ;;  %v3602_v46 = vld [vmem:[#allocation8 + $0x10] ss:$8 sps:$4 sm:$0xff]  }
 0x2ea   : > { %3322 = vmatprep.subr.bf16.mxu1 %v4073_v8 }
 0x39f   : > { %v3144_v48 = vpop.f32.mrb[4].mxu1 }
 0x3a0   : > { %v3145_v50 = vpop.f32.mrb[5].mxu1 }
 0x3a1   : > { %v3146_v51 = vadd.f32 %v3145_v50, %v3144_v48  ;;  %v3147_v53 = vpop.f32.mrb[6].mxu1  ;;  %v3605_v48 = vld [vmem:[#allocation8 + $0x20] ss:$8 sps:$4 sm:$0xff]   ;;  %v3608_v50 = vld [vmem:[#allocation8 + $0x30] ss:$8 sps:$4 sm:$0xff]  }
 0x3a2   : > { %v3148_v54 = vpop.f32.mrb[7].mxu1  ;;  %v3611_v53 = vld [vmem:[#allocation8 + $0x40] ss:$8 sps:$4 sm:$0xff]  }
 0x3a3   : > { %v4545_v55 = vadd.f32 %v3146_v51, %v2987_v49  ;;  %v3610_v49 = vld [vmem:[#allocation8 + $0x34] ss:$8 sps:$4 sm:$0xff]   ;;  %v3613_v51 = vld [vmem:[#allocation8 + $0x44] ss:$8 sps:$4 sm:$0xff]  }
 0x3a4   : > { %v3616_v54 = vld [vmem:[#allocation8 + $0x54] ss:$8 sps:$4 sm:$0xff]  }
 0x3a5   : > { %3261 = vmatmul.mubr.f32.vlgmr.msra.gmra.mrb[8].mxu1 %v4545_v55  ;;  %1412 = vst [vmem:[%s527_s15] sm:$0xff] %v4545_v55 }
 0x3a6   : > { %3295 = vmatprep.mubr.msk.f32.mxu1 %vm4074_vm1, %v4075_v47  ;;  %3324 = vmatpush3.bf16.msra.mxu1 %v3323_v11  ;;  %v3607_v47 = vld [vmem:[#allocation8 + $0x24] ss:$8 sps:$4 sm:$0xff]  }
 0x3a7   : > { %3325 = vmatprep.subr.bf16.mxu1 %v4073_v8  ;;  %v3631_v11 = vld [vmem:[#allocation10 + $0x24] ss:$16 sps:$4 sm:$0xff]  }
 0x3aa   : > { %3327 = vmatpush3.bf16.msra.mxu1 %v3326_v13  ;;  %v3629_v13 = vld [vmem:[#allocation10 + $0x20] ss:$16 sps:$4 sm:$0xff]  }
 0x3ab   : > { %3328 = vmatprep.subr.bf16.mxu1 %v4073_v8 }
 0x3ae   : > { %3330 = vmatpush3.bf16.msra.mxu1 %v3329_v16  ;;  %v3635_v16 = vld [vmem:[#allocation10 + $0x40] ss:$16 sps:$4 sm:$0xff]  }
 0x3af   : > { %3331 = vmatprep.subr.bf16.mxu1 %v4073_v8 }
 0x3b2   : > { %3333 = vmatpush3.bf16.msra.mxu1 %v3332_v19  ;;  %v3646_v19 = vld [vmem:[#allocation10 + $0x6c] ss:$16 sps:$4 sm:$0xff]  }
 0x3b3   : > { %3334 = vmatprep.subr.bf16.mxu1 %v4073_v8 }
 0x3b6   : > { %3336 = vmatpush3.bf16.msra.mxu1 %v3335_v22  ;;  %v3649_v22 = vld [vmem:[#allocation10 + $0x84] ss:$16 sps:$4 sm:$0xff]  }
 0x3b7   : > { %3337 = vmatprep.subr.bf16.mxu1 %v4073_v8 }
 0x3ba   : > { %3339 = vmatpush3.bf16.msra.mxu1 %v3338_v25  ;;  %v3650_v25 = vld [vmem:[#allocation10 + $0x88] ss:$16 sps:$4 sm:$0xff]  }
 0x3bb   : > { %3340 = vmatprep.subr.bf16.mxu1 %v4073_v8 }
 0x3be   : > { %3342 = vmatpush3.bf16.msra.mxu1 %v3341_v28  ;;  %v3653_v28 = vld [vmem:[#allocation10 + $0xa0] ss:$16 sps:$4 sm:$0xff]  }
 0x3bf   : > { %3343 = vmatprep.subr.bf16.mxu1 %v4073_v8 }
 0x3c2   : > { %3345 = vmatpush3.bf16.msra.mxu1 %v3344_v35  ;;  %v3670_v35 = vld [vmem:[#allocation10 + $0xec] ss:$16 sps:$4 sm:$0xff]  }
 0x3c3   : > { %1743 = vmatprep.subr.bf16.mxu1 %v3601_v36  ;;  %v3665_v36 = vld [vmem:[#allocation10 + $0xe0] ss:$16 sps:$4 sm:$0xff]  }
 0x478   : > { %v1496_v56 = vpop.f32.mrb[8].mxu1 }
 0x479   : > { %v1500_v58 = vmul.f32 2.0, %v1496_v56  ;;  %v3262_v59 = vpop.f32.mrb[9].mxu1  ;;  %v3619_v56 = vld [vmem:[#allocation8 + $0x64] ss:$8 sps:$4 sm:$0xff]  }
 0x47a   : > { %v3620_v59 = vld [vmem:[#allocation8 + $0x70] ss:$8 sps:$4 sm:$0xff]  }
 0x47b   : > { %v1507_v60 = vsub.f32 %v3004_v57, %v1500_v58  ;;  %v3617_v57 = vld [vmem:[#allocation8 + $0x60] ss:$8 sps:$4 sm:$0xff]   ;;  %v3622_v58 = vld [vmem:[#allocation8 + $0x74] ss:$8 sps:$4 sm:$0xff]  }
 0x47d   : > { %1508 = vmin.xlane.f32.xlu0 %v1507_v60 }
 0x50a   : > { %v1509_v62 = vpop.xlane.xlu0 %1508 }
 0x50b   : > { %vm1512_vm2 = vcmp.eq.f32.partialorder %v1507_v60, %v1509_v62 }
 0x50c   : > { %v1513_v63 = vsel %vm1512_vm2, %v4556_v61, 128 }
 0x50d   : > { %v1515_v4 = vshra.s32 %v1513_v63, 16  ;;  %v1514_v29 = vand.u32 65535, %v1513_v63 }
 0x50f   : > { %v1517_v6 = vcvt.s32.f32 %v1515_v4  ;;  %v1516_v31 = vcvt.s32.f32 %v1514_v29  ;;  %v3656_v29 = vld [vmem:[#allocation10 + $0xa8] ss:$16 sps:$4 sm:$0xff]  }
 0x511   : > { %1518 = vmin.xlane.f32.xlu0 %v1517_v6 }
 0x59e   : > { %v1519_v30 = vpop.xlane.xlu0 %1518 }
 0x59f   : > { %vm1520_vm3 = vcmp.eq.f32.partialorder %v1517_v6, %v1519_v30  ;;  %v1525_v37 = vcvt.f32.s32 %v1519_v30  ;;  %v3623_v6 = vld [vmem:[#allocation10] ss:$16 sps:$4 sm:$0xff]   ;;  %v3661_v30 = vld [vmem:[#allocation10 + $0xc4] ss:$16 sps:$4 sm:$0xff]  }
 0x5a0   : > { %v1521_v32 = vsel %vm1520_vm3, %v1516_v31, inf  ;;  %2195 = vmatpush1.bf16.msra.mxu0 %v3623_v6  ;;  %v3664_v31 = vld [vmem:[#allocation10 + $0xcc] ss:$16 sps:$4 sm:$0xff]   ;;  %v3707_v6 = vld [vmem:[#allocation10 + $0x1c0] ss:$16 sps:$4 sm:$0xff]  }
 0x5a1   : > { %1522 = vmin.xlane.f32.xlu1 %v1521_v32  ;;  %v1526_v38 = vshll.u32 %v1525_v37, 16  ;;  %2196 = vmatprep.subr.bf16.mxu0 %v3631_v11  ;;  %v3659_v32 = vld [vmem:[#allocation10 + $0xc0] ss:$16 sps:$4 sm:$0xff]   ;;  %v3668_v37 = vld [vmem:[#allocation10 + $0xe8] ss:$16 sps:$4 sm:$0xff]  }
 0x5a2   : > { %v3713_v11 = vld [vmem:[#allocation10 + $0x1e0] ss:$16 sps:$4 sm:$0xff]  }
 0x5a4   : > { %2197 = vmatpush1.bf16.msra.mxu0 %v3629_v13  ;;  %v3719_v13 = vld [vmem:[%s4938_s23 + $0x40] sm:$0xff]  }
 0x5a5   : > { %2198 = vmatprep.subr.bf16.mxu0 %v3637_v15 }
 0x5a8   : > { %2199 = vmatpush1.bf16.msra.mxu0 %v3635_v16  ;;  %v1651_v16 = vld [vmem:[%s4888_s9 + $0x7] sm:$0x3] }
 0x5a9   : > { %2200 = vmatprep.subr.bf16.mxu0 %v3643_v18  ;;  %v1660_v18 = vrot.slane %v1651_v16, %v4499_v5 }
 0x5ac   : > { %2201 = vmatpush1.bf16.msra.mxu0 %v3641_v20 }
 0x5ad   : > { %2202 = vmatprep.subr.bf16.mxu0 %v3649_v22 }
 0x5b0   : > { %2203 = vmatpush1.bf16.msra.mxu0 %v3647_v24 }
 0x5b1   : > { %2204 = vmatprep.subr.bf16.mxu0 %v3655_v26 }
 0x5b4   : > { %2205 = vmatpush1.bf16.msra.mxu0 %v3653_v28  ;;  %v3722_v28 = vld [vmem:[%s4938_s23 + $0x80] sm:$0xff]  }
 0x5b5   : > { %2206 = vmatprep.subr.bf16.mxu0 %v3661_v30  ;;  %v3723_v30 = vld [vmem:[%s4938_s23 + $0x48] sm:$0xff]  }
 0x5b8   : > { %2207 = vmatpush1.bf16.msra.mxu0 %v3659_v32  ;;  %v3725_v32 = vld [vmem:[%s4938_s23 + $0x8] sm:$0xff]  }
 0x5b9   : > { %2208 = vmatprep.subr.bf16.mxu0 %v3667_v34  ;;  %v3727_v34 = vld [vmem:[%s4938_s23 + $0x50] sm:$0xff]  }
 0x5bc   : > { %2209 = vmatpush1.bf16.msra.mxu0 %v3665_v36  ;;  %v3729_v36 = vld [vmem:[%s4938_s23 + $0x10] sm:$0xff]  }
 0x62e   : > { %v1523_v8 = vpop.xlane.xlu1 %1522 }
 0x62f   : > { %v1524_v39 = vcvt.f32.s32 %v1523_v8  ;;  %v3673_v8 = vld [vmem:[#allocation10 + $0x104] ss:$16 sps:$4 sm:$0xff]  }
 0x630   : > { %2210 = vmatprep.subr.bf16.mxu0 %v3673_v8  ;;  %v3731_v8 = vld [vmem:[%s4938_s23 + $0x58] sm:$0xff]  }
 0x631   : > { %v1527_v41 = vadd.s32 %v1526_v38, %v1524_v39  ;;  %v3676_v38 = vld [vmem:[#allocation10 + $0x10c] ss:$16 sps:$4 sm:$0xff]   ;;  %v3671_v39 = vld [vmem:[#allocation10 + $0x100] ss:$16 sps:$4 sm:$0xff]  }
 0x632   : > { %2211 = vmatpush1.bf16.msra.mxu0 %v3671_v39  ;;  %v3733_v39 = vld [vmem:[%s4938_s23 + $0x18] sm:$0xff]  }
 0x633   : > { %vm1534_vm5 = vcmp.eq.s32.totalorder %v4556_v61, %v1527_v41  ;;  %v1531_v44 = vrot.slane %v1527_v41, %v4616_v40  ;;  %v3674_v41 = vld [vmem:[#allocation10 + $0x108] ss:$16 sps:$4 sm:$0xff]  }
 0x634   : > { %3296 = vmatmul.mubr.msk.f32.vlgmr.msra.gmra.mrb[10].mxu1 %vm1534_vm5, %v4076_v45  ;;  %v3680_v45 = vld [vmem:[#allocation10 + $0x128] ss:$16 sps:$4 sm:$0xff]  }
 0x635   : > { %1744 = vmatpush1.bf16.msra.mxu1 %v3599_v42  ;;  %1775 = vmatprep.mubr.bf16.mxu1 %v4072_v0  ;;  %1533 = vst.msk [vmem:[%s4903_s12] sm:$0x1] %vm1532_vm4, %v1531_v44  ;;  %v3614_v0 = vld [vmem:[#allocation8 + $0x50] ss:$8 sps:$4 sm:$0xff]   ;;  %v3679_v42 = vld [vmem:[#allocation10 + $0x124] ss:$16 sps:$4 sm:$0xff]  }
 0x636   : > { %1745 = vmatprep.subr.bf16.mxu1 %v3604_v43  ;;  %v3682_v43 = vld [vmem:[#allocation10 + $0x12c] ss:$16 sps:$4 sm:$0xff]   ;;  %v3677_v44 = vld [vmem:[#allocation10 + $0x120] ss:$16 sps:$4 sm:$0xff]   ;;  %2212 = vmatprep.subr.bf16.mxu0 %v3679_v42  ;;  %s4939_s12 = sld [smem:[#allocation32_spill]] }
 0x637   : > { %2213 = vmatpush1.bf16.msra.mxu0 %v3677_v44  ;;  %v3735_v42 = vld [vmem:[%s4938_s23 + $0x60] sm:$0xff]  }
 0x638   : > { %v3737_v44 = vld [vmem:[%s4938_s23 + $0x20] sm:$0xff]  }
 0x639   : > { %1746 = vmatpush1.bf16.msra.mxu1 %v3602_v46  ;;  %v3685_v46 = vld [vmem:[#allocation10 + $0x144] ss:$16 sps:$4 sm:$0xff]  }
 0x63a   : > { %1747 = vmatprep.subr.bf16.mxu1 %v3607_v47  ;;  %v3688_v47 = vld [vmem:[#allocation10 + $0x14c] ss:$16 sps:$4 sm:$0xff]   ;;  %2214 = vmatprep.subr.bf16.mxu0 %v3685_v46 }
 0x63b   : > { %v3739_v46 = vld [vmem:[%s4938_s23 + $0x68] sm:$0xff]  }
 0x63d   : > { %1748 = vmatpush1.bf16.msra.mxu1 %v3605_v48  ;;  %v3683_v48 = vld [vmem:[#allocation10 + $0x140] ss:$16 sps:$4 sm:$0xff]  }
 0x63e   : > { %1749 = vmatprep.subr.bf16.mxu1 %v3610_v49  ;;  %v3686_v49 = vld [vmem:[#allocation10 + $0x148] ss:$16 sps:$4 sm:$0xff]   ;;  %2215 = vmatpush1.bf16.msra.mxu0 %v3683_v48 }
 0x63f   : > { %v3741_v48 = vld [vmem:[%s4938_s23 + $0x28] sm:$0xff]  }
 0x641   : > { %1750 = vmatpush1.bf16.msra.mxu1 %v3608_v50  ;;  %v3691_v50 = vld [vmem:[#allocation10 + $0x164] ss:$16 sps:$4 sm:$0xff]  }
 0x642   : > { %1751 = vmatprep.subr.bf16.mxu1 %v3613_v51  ;;  %v3694_v51 = vld [vmem:[#allocation10 + $0x16c] ss:$16 sps:$4 sm:$0xff]   ;;  %2216 = vmatprep.subr.bf16.mxu0 %v3691_v50  ;;  %v3743_v50 = vld [vmem:[%s4938_s23 + $0x70] sm:$0xff]  }
 0x645   : > { %1752 = vmatpush1.bf16.msra.mxu1 %v3611_v53  ;;  %v3689_v53 = vld [vmem:[#allocation10 + $0x160] ss:$16 sps:$4 sm:$0xff]  }
 0x646   : > { %1753 = vmatprep.subr.bf16.mxu1 %v3616_v54  ;;  %v3692_v54 = vld [vmem:[#allocation10 + $0x168] ss:$16 sps:$4 sm:$0xff]   ;;  %2217 = vmatpush1.bf16.msra.mxu0 %v3689_v53  ;;  %v3745_v53 = vld [vmem:[%s4938_s23 + $0x30] sm:$0xff]  }
 0x649   : > { %1754 = vmatpush1.bf16.msra.mxu1 %v3614_v0  ;;  %v3697_v0 = vld [vmem:[#allocation10 + $0x184] ss:$16 sps:$4 sm:$0xff]  }
 0x64a   : > { %1755 = vmatprep.subr.bf16.mxu1 %v3619_v56  ;;  %v3700_v56 = vld [vmem:[#allocation10 + $0x18c] ss:$16 sps:$4 sm:$0xff]   ;;  %2218 = vmatprep.subr.bf16.mxu0 %v3697_v0 }
 0x64b   : > { %v3747_v0 = vld [vmem:[%s4938_s23 + $0x78] sm:$0xff]  }
 0x64d   : > { %1756 = vmatpush1.bf16.msra.mxu1 %v3617_v57  ;;  %v3695_v57 = vld [vmem:[#allocation10 + $0x180] ss:$16 sps:$4 sm:$0xff]  }
 0x64e   : > { %1757 = vmatprep.subr.bf16.mxu1 %v3622_v58  ;;  %v3698_v58 = vld [vmem:[#allocation10 + $0x188] ss:$16 sps:$4 sm:$0xff]   ;;  %2219 = vmatpush1.bf16.msra.mxu0 %v3695_v57 }
 0x64f   : > { %v3749_v57 = vld [vmem:[%s4938_s23 + $0x38] sm:$0xff]  }
 0x651   : > { %1758 = vmatpush1.bf16.msra.mxu1 %v3620_v59  ;;  %v3703_v59 = vld [vmem:[#allocation10 + $0x1a4] ss:$16 sps:$4 sm:$0xff]  }
 0x652   : > { %2235 = vmatprep.subr.bf16.mxu1 %v3628_v1  ;;  %2220 = vmatprep.subr.bf16.mxu0 %v3703_v59  ;;  %v3718_v1 = vld [vmem:[#allocation10 + $0x1ec] ss:$16 sps:$4 sm:$0xff]  }
 0x653   : > { %v1852_v59 = vld [vmem:[%s4888_s9 + $0x9] sm:$0xf] }
 0x707   : > { %v1619_v60 = vpop.f32.mrb[10].mxu1 }
 0x708   : > { %v1623_v61 = vsub.f32 %v1619_v60, %v4545_v55  ;;  %v1634_v62 = vpack.c.bf16 %v1619_v60, %v1619_v60  ;;  %v3297_v63 = vpop.f32.mrb[11].mxu1  ;;  %v3640_v55 = vld [vmem:[#allocation10 + $0x4c] ss:$16 sps:$4 sm:$0xff]  }
 0x709   : > { %v3706_v60 = vld [vmem:[#allocation10 + $0x1ac] ss:$16 sps:$4 sm:$0xff]   ;;  %v3709_v63 = vld [vmem:[#allocation10 + $0x1c4] ss:$16 sps:$4 sm:$0xff]  }
 0x70a   : > { %1776 = vmatmul.mubr.bf16.vlgmr.msra.gmra.mrb[12].mxu1 %v1634_v62  ;;  %v1624_v4 = vmul.f32 %v1623_v61, %v1623_v61  ;;  %v3701_v61 = vld [vmem:[#allocation10 + $0x1a0] ss:$16 sps:$4 sm:$0xff]   ;;  %v3704_v62 = vld [vmem:[#allocation10 + $0x1a8] ss:$16 sps:$4 sm:$0xff]  }
 0x70b   : > { %2236 = vmatpush1.bf16.msra.mxu1 %v3626_v10  ;;  %2221 = vmatpush1.bf16.msra.mxu0 %v3701_v61  ;;  %v3715_v10 = vld [vmem:[#allocation10 + $0x1e4] ss:$16 sps:$4 sm:$0xff]   ;;  %v1865_v61 = vrot.slane %v1852_v59, %v571_v52 }
 0x70c   : > { %1625 = vadd.xlane.f32.xlu1 %v1624_v4  ;;  %2237 = vmatprep.subr.bf16.mxu1 %v3634_v12  ;;  %v3712_v4 = vld [vmem:[#allocation10 + $0x1cc] ss:$16 sps:$4 sm:$0xff]   ;;  %v3716_v12 = vld [vmem:[#allocation10 + $0x1e8] ss:$16 sps:$4 sm:$0xff]  }
 0x70d   : > { %2222 = vmatprep.subr.bf16.mxu0 %v3709_v63  ;;  %v1869_v63 = vrot.slane %v1852_v59, %v575_v9 }
 0x70f   : > { %2238 = vmatpush1.bf16.msra.mxu1 %v3632_v14  ;;  %2223 = vmatpush1.bf16.msra.mxu0 %v3707_v6  ;;  %v3720_v14 = vld [vmem:[%s4938_s23 + $0xc0] sm:$0xff]  }
 0x710   : > { %2239 = vmatprep.subr.bf16.mxu1 %v3640_v55  ;;  %2224 = vmatprep.subr.bf16.mxu0 %v3715_v10 }
 0x713   : > { %2240 = vmatpush1.bf16.msra.mxu1 %v3638_v17  ;;  %2225 = vmatpush1.bf16.msra.mxu0 %v3713_v11  ;;  %v1656_v17 = vrot.slane %v1651_v16, %v4491_v3 }
 0x714   : > { %2241 = vmatprep.subr.bf16.mxu1 %v3646_v19  ;;  %3184 = vmatprep.subr.bf16.mxu0 %v3719_v13 }
 0x717   : > { %2242 = vmatpush1.bf16.msra.mxu1 %v3644_v21 }
 0x718   : > { %2243 = vmatprep.subr.bf16.mxu1 %v3652_v23 }
 0x71b   : > { %2244 = vmatpush1.bf16.msra.mxu1 %v3650_v25 }
 0x71c   : > { %2245 = vmatprep.subr.bf16.mxu1 %v3658_v27  ;;  %v3721_v27 = vld [vmem:[%s4938_s23] sm:$0xff]  }
 0x71f   : > { %2246 = vmatpush1.bf16.msra.mxu1 %v3656_v29 }
 0x720   : > { %2247 = vmatprep.subr.bf16.mxu1 %v3664_v31  ;;  %v3724_v31 = vld [vmem:[%s4938_s23 + $0xc8] sm:$0xff]  }
 0x723   : > { %2248 = vmatpush1.bf16.msra.mxu1 %v3662_v33  ;;  %v3726_v33 = vld [vmem:[%s4938_s23 + $0x88] sm:$0xff]  }
 0x724   : > { %2249 = vmatprep.subr.bf16.mxu1 %v3670_v35  ;;  %v3728_v35 = vld [vmem:[%s4938_s23 + $0xd0] sm:$0xff]  }
 0x727   : > { %2250 = vmatpush1.bf16.msra.mxu1 %v3668_v37  ;;  %v3730_v37 = vld [vmem:[%s4938_s23 + $0x90] sm:$0xff]  }
 0x728   : > { %2251 = vmatprep.subr.bf16.mxu1 %v3676_v38  ;;  %v3732_v38 = vld [vmem:[%s4938_s23 + $0xd8] sm:$0xff]  }
 0x72b   : > { %2252 = vmatpush1.bf16.msra.mxu1 %v3674_v41  ;;  %v3734_v41 = vld [vmem:[%s4938_s23 + $0x98] sm:$0xff]  }
 0x72c   : > { %2253 = vmatprep.subr.bf16.mxu1 %v3682_v43  ;;  %v3736_v43 = vld [vmem:[%s4938_s23 + $0xe0] sm:$0xff]  }
 0x72f   : > { %2254 = vmatpush1.bf16.msra.mxu1 %v3680_v45  ;;  %v3738_v45 = vld [vmem:[%s4938_s23 + $0xa0] sm:$0xff]  }
 0x730   : > { %2255 = vmatprep.subr.bf16.mxu1 %v3688_v47  ;;  %v3740_v47 = vld [vmem:[%s4938_s23 + $0xe8] sm:$0xff]  }
 0x733   : > { %2256 = vmatpush1.bf16.msra.mxu1 %v3686_v49  ;;  %v3742_v49 = vld [vmem:[%s4938_s23 + $0xa8] sm:$0xff]  }
 0x734   : > { %2257 = vmatprep.subr.bf16.mxu1 %v3694_v51  ;;  %v3744_v51 = vld [vmem:[%s4938_s23 + $0xf0] sm:$0xff]  }
 0x737   : > { %2258 = vmatpush1.bf16.msra.mxu1 %v3692_v54  ;;  %v3746_v54 = vld [vmem:[%s4938_s23 + $0xb0] sm:$0xff]  }
 0x738   : > { %2259 = vmatprep.subr.bf16.mxu1 %v3700_v56  ;;  %v3748_v56 = vld [vmem:[%s4938_s23 + $0xf8] sm:$0xff]  }
 0x73b   : > { %2260 = vmatpush1.bf16.msra.mxu1 %v3698_v58  ;;  %v3750_v58 = vld [vmem:[%s4938_s23 + $0xb8] sm:$0xff]  }
 0x73c   : > { %2261 = vmatprep.subr.bf16.mxu1 %v3706_v60  ;;  %v1857_v60 = vrot.slane %v1852_v59, %v4491_v3 }
 0x73f   : > { %2262 = vmatpush1.bf16.msra.mxu1 %v3704_v62  ;;  %v1861_v62 = vrot.slane %v1852_v59, %v4499_v5 }
 0x740   : > { %2263 = vmatprep.subr.bf16.mxu1 %v3712_v4 }
 0x743   : > { %2264 = vmatpush1.bf16.msra.mxu1 %v3710_v7 }
 0x744   : > { %2265 = vmatprep.subr.bf16.mxu1 %v3718_v1 }
 0x747   : > { %2266 = vmatpush1.bf16.msra.mxu1 %v3716_v12 }
 0x748   : > { %3206 = vmatprep.subr.bf16.mxu1 %v3720_v14 }
 0x799   : > { %v1626_v15 = vpop.xlane.xlu1 %1625 }
 0x79a   : > { %v1631_v55 = vrot.slane %v1626_v15, %v4616_v40 }
 0x79c   : > { %1633 = vst.msk [vmem:[%s4902_s16] sm:$0x1] %vm1532_vm4, %v1631_v55  ;;  %s4748_s16 = scalar_lea.hbm %s4939_s12, %s4904_s30 }
 0x7dd   : > { %v1777_v19 = vpop.f32.mrb[12].mxu1 }
 0x7de   : > { %v1778_v20 = vadd.f32 %v1777_v19, %v1656_v17  ;;  %v1779_v21 = vpop.f32.mrb[13].mxu1 }
 0x7df   : > { %v1780_v22 = vadd.f32 %v1779_v21, %v1660_v18  ;;  %v1781_v23 = vpop.f32.mrb[14].mxu1 }
 0x7e0   : > { %v1784_v24 = vmax.f32 %v1778_v20, 0.0  ;;  %v1782_v25 = vpop.f32.mrb[15].mxu1 }
 0x7e1   : > { %v1785_v40 = vmax.f32 %v1780_v22, 0.0 }
 0x7e2   : > { %v1786_v29 = vpack.c.bf16 %v1784_v24, %v1784_v24 }
 0x7e3   : > { %v1787_v26 = vpack.c.bf16 %v1785_v40, %v1785_v40 }
 0x7e5   : > { %2226 = vmatprep.mubr.bf16.mxu0 %v1787_v26  ;;  %2267 = vmatprep.mubr.bf16.mxu1 %v1787_v26 }
 0x7e6   : > { %2227 = vmatmul.mubr.bf16.vlgmr.msra.gmra.mrb[8].mxu0 %v1786_v29  ;;  %2268 = vmatmul.mubr.bf16.vlgmr.msra.gmra.mrb[16].mxu1 %v1786_v29 }
 0x7e7   : > { %3185 = vmatpush3.bf16.msra.mxu0 %v3721_v27  ;;  %3207 = vmatpush3.bf16.msra.mxu1 %v3722_v28 }
 0x7e8   : > { %3186 = vmatprep.subr.bf16.mxu0 %v3723_v30  ;;  %3208 = vmatprep.subr.bf16.mxu1 %v3724_v31 }
 0x7eb   : > { %3187 = vmatpush3.bf16.msra.mxu0 %v3725_v32  ;;  %3209 = vmatpush3.bf16.msra.mxu1 %v3726_v33 }
 0x7ec   : > { %3188 = vmatprep.subr.bf16.mxu0 %v3727_v34  ;;  %3210 = vmatprep.subr.bf16.mxu1 %v3728_v35 }
 0x7ef   : > { %3189 = vmatpush3.bf16.msra.mxu0 %v3729_v36  ;;  %3211 = vmatpush3.bf16.msra.mxu1 %v3730_v37 }
 0x7f0   : > { %3190 = vmatprep.subr.bf16.mxu0 %v3731_v8  ;;  %3212 = vmatprep.subr.bf16.mxu1 %v3732_v38 }
 0x7f3   : > { %3191 = vmatpush3.bf16.msra.mxu0 %v3733_v39  ;;  %3213 = vmatpush3.bf16.msra.mxu1 %v3734_v41 }
 0x7f4   : > { %3192 = vmatprep.subr.bf16.mxu0 %v3735_v42  ;;  %3214 = vmatprep.subr.bf16.mxu1 %v3736_v43 }
 0x7f7   : > { %3193 = vmatpush3.bf16.msra.mxu0 %v3737_v44  ;;  %3215 = vmatpush3.bf16.msra.mxu1 %v3738_v45 }
 0x7f8   : > { %3194 = vmatprep.subr.bf16.mxu0 %v3739_v46  ;;  %3216 = vmatprep.subr.bf16.mxu1 %v3740_v47 }
 0x7fb   : > { %3195 = vmatpush3.bf16.msra.mxu0 %v3741_v48  ;;  %3217 = vmatpush3.bf16.msra.mxu1 %v3742_v49 }
 0x7fc   : > { %3196 = vmatprep.subr.bf16.mxu0 %v3743_v50  ;;  %3218 = vmatprep.subr.bf16.mxu1 %v3744_v51 }
 0x7ff   : > { %3197 = vmatpush3.bf16.msra.mxu0 %v3745_v53  ;;  %3219 = vmatpush3.bf16.msra.mxu1 %v3746_v54 }
 0x800   : > { %3198 = vmatprep.subr.bf16.mxu0 %v3747_v0  ;;  %3220 = vmatprep.subr.bf16.mxu1 %v3748_v56 }
 0x803   : > { %3199 = vmatpush3.bf16.msra.mxu0 %v3749_v57  ;;  %3221 = vmatpush3.bf16.msra.mxu1 %v3750_v58 }
 0x8b9   : > { %v2228_v4 = vpop.f32.mrb[8].mxu0  ;;  %v2269_v6 = vpop.f32.mrb[16].mxu1 }
 0x8ba   : > { %v2229_v7 = vadd.f32 %v2228_v4, %v1857_v60  ;;  %v2270_v10 = vadd.f32 %v2269_v6, %v1865_v61  ;;  %v2230_v1 = vpop.f32.mrb[9].mxu0  ;;  %v2271_v11 = vpop.f32.mrb[17].mxu1 }
 0x8bb   : > { %v2231_v12 = vadd.f32 %v2230_v1, %v1861_v62  ;;  %v2272_v13 = vadd.f32 %v2271_v11, %v1869_v63  ;;  %v2232_v14 = vpop.f32.mrb[10].mxu0  ;;  %v2273_v15 = vpop.f32.mrb[18].mxu1 }
 0x8bc   : > { %v2276_v3 = vmax.f32 %v2229_v7, 0.0  ;;  %v2278_v52 = vmax.f32 %v2270_v10, 0.0  ;;  %v2233_v5 = vpop.f32.mrb[11].mxu0  ;;  %v2274_v55 = vpop.f32.mrb[19].mxu1 }
 0x8bd   : > { %v2277_v2 = vmax.f32 %v2231_v12, 0.0  ;;  %v2279_v9 = vmax.f32 %v2272_v13, 0.0 }
 0x8be   : > { %v2280_v18 = vpack.c.bf16 %v2276_v3, %v2276_v3  ;;  %v2282_v19 = vpack.c.bf16 %v2278_v52, %v2278_v52 }
 0x8bf   : > { %v2281_v16 = vpack.c.bf16 %v2277_v2, %v2277_v2  ;;  %v2283_v17 = vpack.c.bf16 %v2279_v9, %v2279_v9 }
 0x8c1   : > { %2579 = vmatprep.mubr.bf16.mxu0 %v2281_v16  ;;  %2619 = vmatprep.mubr.bf16.mxu1 %v2283_v17 }
 0x8c2   : > { %2580 = vmatmul.mubr.bf16.vlgmr.msra.gmra.mrb[12].mxu0 %v2280_v18  ;;  %2620 = vmatmul.mubr.bf16.vlgmr.msra.gmra.mrb[20].mxu1 %v2282_v19 }
 0x8c3   : > { %3908 = shalt.err (!%p3905_p0)
}
 0x8c4   : > { %s3909_s15 = scalar_lea.hbm %s4748_s16, 128  ;;  %s3913_s20 = scalar_lea.hbm %s4939_s12, 256 }
 0x8c5   : > { %p3910_p2 = scmp.ne.s32.totalorder %s4748_s16, %s3909_s15  ;;  %p3914_p10 = scmp.lt.u32.totalorder %s4748_s16, %s4939_s12 }
 0x8c6   : > { %p3915_p11 = scmp.lt.u32.totalorder %s3913_s20, %s3909_s15  ;;  %p3917_p6 = scmp.lt.u32.totalorder %s3909_s15, %s4748_s16 }
 0x8c7   : > { %p3911_p8 = pnand %p3910_p2, %p4940_p5 }
 0x8c8   : > { %p3916_p1 = por %p3915_p11, %p3914_p10 }
 0x8c9   : > { %p3912_p4 = pneg %p3911_p8 }
 0x8ca   : > { %p3918_p7 = por %p3917_p6, %p3916_p1 }
 0x8cc   : > { %p3919_p9 = pnand %p3918_p7, %p3912_p4 }
 0x8ce   : > { %3922 = shalt.err (!%p3919_p9)
}
 0x8cf   : > { %3371 = dma.vmem_to_hbm [thread:$0]  (%p4940_p5), %s2670_s18, 128, %s4748_s16, %s4752_s8  }
 0x8d0   : > { %s3124_s1 = sshll.u32 %s4172_s14, 4  ;;  %s4941_s17 = sld [smem:[#allocation33_spill]] }
 0x8d1   : > { %s4942_s20 = scalar_lea.vmem [#allocation14], %s4378_s2  ;;  %s4943_s3 = sld [smem:[#allocation34_spill]] }
 0x8d2   : > { %s2682_s0 = sshll.u32 %s4942_s20, 4  ;;  %s4078_s16 = smov [#allocation14]   ;;  %s2683_s0 = int_to_ptr.vmem [resolvable:$true] %s2682_s0 }
 0x8d3   : > { %s3923_s5 = scalar_lea.vmem %s2683_s0, 16  ;;  %s3927_s18 = sshll.u32 %s4078_s16, 4  ;;  %s3928_s18 = int_to_ptr.vmem [resolvable:$false] %s3927_s18 }
 0x8d4   : > { %p3924_p12 = scmp.ne.s32.totalorder %s2683_s0, %s3923_s5  ;;  %s3929_s6 = scalar_lea.vmem %s3928_s18, 32 }
 0x8d5   : > { %p3930_p0 = scmp.lt.s32.totalorder %s2683_s0, %s3928_s18  ;;  %p3931_p2 = scmp.lt.s32.totalorder %s3929_s6, %s3923_s5 }
 0x8d6   : > { %s4776_s13 = scalar_lea.hbm %s4941_s17, %s3124_s1  ;;  %p3925_p3 = pnand %p3924_p12, %p4940_p5 }
 0x8d7   : > { %s4783_s4 = scalar_lea.hbm %s4943_s3, %s3124_s1  ;;  %p3932_p8 = por %p3931_p2, %p3930_p0 }
 0x8d8   : > { %p3926_p13 = pneg %p3925_p3 }
 0x8da   : > { %p3933_p4 = pnand %p3932_p8, %p3926_p13 }
 0x8dc   : > { %3936 = shalt.err (!%p3933_p4)
}
 0x8dd   : > { %s3937_s30 = scalar_lea.hbm %s4776_s13, 16  ;;  %s3941_s29 = scalar_lea.hbm %s4941_s17, 32 }
 0x8de   : > { %p3938_p10 = scmp.ne.s32.totalorder %s4776_s13, %s3937_s30  ;;  %p3942_p6 = scmp.lt.u32.totalorder %s4776_s13, %s4941_s17 }
 0x8df   : > { %p3943_p7 = scmp.lt.u32.totalorder %s3941_s29, %s3937_s30  ;;  %p3945_p12 = scmp.lt.u32.totalorder %s3937_s30, %s4776_s13 }
 0x8e0   : > { %p3939_p11 = pnand %p3938_p10, %p4940_p5 }
 0x8e1   : > { %p3944_p9 = por %p3943_p7, %p3942_p6 }
 0x8e2   : > { %p3940_p1 = pneg %p3939_p11 }
 0x8e3   : > { %p3946_p3 = por %p3945_p12, %p3944_p9 }
 0x8e5   : > { %p3947_p13 = pnand %p3946_p3, %p3940_p1 }
 0x8e7   : > { %3950 = shalt.err (!%p3947_p13)
}
 0x8e8   : > { %3372 = dma.vmem_to_hbm [thread:$0]  (%p4940_p5), %s2683_s0, 16, %s4776_s13, %s4752_s8  }
 0x8e9   : > { %s4944_s5 = scalar_lea.vmem [#allocation15], %s4378_s2  ;;  %s2644_s16 = scalar_lea.sflag [#allocation16], %s4378_s2 }
 0x8ea   : > { %s2695_s6 = sshll.u32 %s4944_s5, 4  ;;  %s4079_s30 = smov [#allocation15]   ;;  %s2696_s6 = int_to_ptr.vmem [resolvable:$true] %s2695_s6 }
 0x8eb   : > { %s3951_s18 = scalar_lea.vmem %s2696_s6, 16  ;;  %s3955_s1 = sshll.u32 %s4079_s30, 4  ;;  %s3956_s1 = int_to_ptr.vmem [resolvable:$false] %s3955_s1 }
 0x8ec   : > { %p3952_p0 = scmp.ne.s32.totalorder %s2696_s6, %s3951_s18  ;;  %s3957_s10 = scalar_lea.vmem %s3956_s1, 32 }
 0x8ed   : > { %p3958_p4 = scmp.lt.s32.totalorder %s2696_s6, %s3956_s1  ;;  %p3959_p10 = scmp.lt.s32.totalorder %s3957_s10, %s3951_s18 }
 0x8ee   : > { %p3953_p2 = pnand %p3952_p0, %p4940_p5 }
 0x8ef   : > { %p3960_p11 = por %p3959_p10, %p3958_p4 }
 0x8f0   : > { %p3954_p8 = pneg %p3953_p2 }
 0x8f2   : > { %p3961_p1 = pnand %p3960_p11, %p3954_p8 }
 0x8f4   : > { %3964 = shalt.err (!%p3961_p1)
}
 0x8f5   : > { %s3965_s8 = scalar_lea.hbm %s4783_s4, 16  ;;  %s3969_s29 = scalar_lea.hbm %s4943_s3, 32 }
 0x8f6   : > { %p3966_p6 = scmp.ne.s32.totalorder %s4783_s4, %s3965_s8  ;;  %p3970_p12 = scmp.lt.u32.totalorder %s4783_s4, %s4943_s3 }
 0x8f7   : > { %p3971_p3 = scmp.lt.u32.totalorder %s3969_s29, %s3965_s8  ;;  %p3973_p0 = scmp.lt.u32.totalorder %s3965_s8, %s4783_s4 }
 0x8f8   : > { %p3967_p7 = pnand %p3966_p6, %p4940_p5 }
 0x8f9   : > { %p3972_p13 = por %p3971_p3, %p3970_p12 }
 0x8fa   : > { %p3968_p9 = pneg %p3967_p7 }
 0x8fb   : > { %p3974_p2 = por %p3973_p0, %p3972_p13 }
 0x8fd   : > { %p3975_p8 = pnand %p3974_p2, %p3968_p9 }
 0x8ff   : > { %3978 = shalt.err (!%p3975_p8)
}
 0x900   : > { %3373 = dma.vmem_to_hbm [thread:$0]  (%p4940_p5), %s2696_s6, 16, %s4783_s4, %s2644_s16   ;;  %v3087_v22 = vld [vmem:[%s4888_s9 + $0xd] ss:$0 sm:$0xff] }
 0x901   : > { %s520_s4 = scalar_lea.vmem [#allocation11], %s4381_s22  ;;  %s4945_s16 = sshll.u32 %s4172_s14, 7 }
 0x902   : > { %s2656_s6 = sshll.u32 %s520_s4, 4  ;;  %s4946_s10 = sld [smem:[#allocation31_spill]]  ;;  %s4834_s6 = int_to_ptr.vmem [resolvable:$true] %s2656_s6 }
 0x903   : > { %s2630_s13 = scalar_lea.sflag [#allocation4], %s4378_s2  ;;  %s3979_s0 = scalar_lea.vmem %s4834_s6, 128 }
 0x904   : > { %p3980_p4 = scmp.ne.s32.totalorder %s4834_s6, %s3979_s0  ;;  %s4080_s14 = smov [#allocation11]  }
 0x905   : > { %s3983_s22 = sshll.u32 %s4080_s14, 4  ;;  %s3984_s22 = int_to_ptr.vmem [resolvable:$false] %s3983_s22 }
 0x906   : > { %p3981_p10 = pnand %p3980_p4, %p4940_p5  ;;  %s3985_s29 = scalar_lea.vmem %s3984_s22, 256 }
 0x907   : > { %p3986_p1 = scmp.lt.s32.totalorder %s4834_s6, %s3984_s22  ;;  %p3987_p6 = scmp.lt.s32.totalorder %s3985_s29, %s3979_s0 }
 0x908   : > { %s4832_s8 = scalar_lea.hbm %s4946_s10, %s4945_s16  ;;  %p3982_p11 = pneg %p3981_p10 }
 0x909   : > { %p3988_p7 = por %p3987_p6, %p3986_p1 }
 0x90b   : > { %p3989_p9 = pnand %p3988_p7, %p3982_p11 }
 0x995   : > { %v3200_v20 = vpop.f32.mrb[12].mxu0  ;;  %v3222_v21 = vpop.f32.mrb[20].mxu1 }
 0x996   : > { %v3201_v23 = vpop.f32.mrb[13].mxu0  ;;  %v3223_v24 = vpop.f32.mrb[21].mxu1 }
 0x997   : > { %v3202_v25 = vadd.f32 %v3201_v23, %v3200_v20  ;;  %v3224_v40 = vadd.f32 %v3223_v24, %v3222_v21  ;;  %v3203_v26 = vpop.f32.mrb[14].mxu0  ;;  %v3225_v27 = vpop.f32.mrb[22].mxu1 }
 0x998   : > { %v3204_v28 = vpop.f32.mrb[15].mxu0  ;;  %v3226_v29 = vpop.f32.mrb[23].mxu1 }
 0x999   : > { %v2582_v30 = vadd.f32 %v3202_v25, %v3087_v22 }
 0x99b   : > { %v2622_v31 = vadd.f32 %v3224_v40, %v2582_v30 }
 0x99d   : > { %3751 = vtanh.f32 %v2622_v31 }
 0x9a7   : > { %v3752_v32 = vpop.eup %3751 }
 0x9a8   : > { %2628 = vst.msk [vmem:[%s520_s4] sm:$0xff] %vm661_vm0, %v3752_v32 }
 0x9a9   : > { %3992 = shalt.err (!%p3989_p9)
}
 0x9aa   : > { %s3993_s2 = scalar_lea.hbm %s4832_s8, 128  ;;  %s3997_s5 = scalar_lea.hbm %s4946_s10, 256 }
 0x9ab   : > { %p3994_p12 = scmp.ne.s32.totalorder %s4832_s8, %s3993_s2  ;;  %p3998_p0 = scmp.lt.u32.totalorder %s4832_s8, %s4946_s10 }
 0x9ac   : > { %p3999_p2 = scmp.lt.u32.totalorder %s3997_s5, %s3993_s2  ;;  %p4001_p4 = scmp.lt.u32.totalorder %s3993_s2, %s4832_s8 }
 0x9ad   : > { %p3995_p3 = pnand %p3994_p12, %p4940_p5 }
 0x9ae   : > { %p4000_p8 = por %p3999_p2, %p3998_p0 }
 0x9af   : > { %p3996_p13 = pneg %p3995_p3 }
 0x9b0   : > { %p4002_p10 = por %p4001_p4, %p4000_p8 }
 0x9b2   : > { %p4003_p11 = pnand %p4002_p10, %p3996_p13 }
 0x9b4   : > { %4006 = shalt.err (!%p4003_p11)
}
 0x9b5   : > { %3370 = dma.vmem_to_hbm [thread:$0]  (%p4940_p5), %s4834_s6, 128, %s4832_s8, %s2630_s13  }
 0x9b6 PF: > { %s2707_s16 = sand.u32 1, %s4049_s25   ;;  %p4947_p1 = scmp.ne.s32.totalorder %s4927_s21, 0 }
 0x9b7   : > { %p4948_p6 = scmp.ge.s32.totalorder %s4061_s28, 2  ;;  %s2708_s30 = scalar_lea.sflag [#allocation4], %s2707_s16 }
 0x9b9   : > { %p3396_p7 = pnand %p4948_p6, %p4947_p1 }
 0x9bb   : > { %4036 = dma.done.wait (!%p3396_p7), %s2708_s30, 128  }
 0x9bc   : > { %4038 = vsyncadd (!%p3396_p7), %s2708_s30, 4294967168  ;;  %s4949_s1 = sadd.s32 4294967294, %s4061_s28  }
 0x9bd   : > { %s2716_s0 = sand.u32 1, %s4949_s1  }
 0x9be   : > { %s2717_s14 = scalar_lea.sflag [#allocation13], %s2716_s0 }
 0x9bf   : > { %4040 = dma.done.wait (!%p3396_p7), %s2717_s14, 144  }
 0x9c0   : > { %4042 = vsyncadd (!%p3396_p7), %s2717_s14, 4294967152  ;;  %s2734_s19 = scalar_lea.sflag [#allocation16], %s2707_s16 }
 0x9c1   : > { %4044 = dma.done.wait (!%p3396_p7), %s2734_s19, 16  }
 0x9c2   : > { %4046 = vsyncadd (!%p3396_p7), %s2734_s19, 4294967280  ;;  %p35_p5 = scmp.ge.s32.totalorder %s4300_s11, 4   ;;  %s4950_s25 = smov %s4053_s26 }
 0x9c3   : > { %s4951_s26 = smov %s4057_s27  ;;  %s4952_s27 = smov %s4311_s24 }
 0x9c4   : > { %s4953_s28 = smov %s4300_s11  ;;  %37 = sbr.rel (!%p35_p5) target bundleno = 24 (0x18), region = 170 }
 0x9cb   :  { %2738 = vsyncpa [#allocation3], 1 }
 0x9cc   :  { %2740 = vsyncpa [#allocation3 + $0x1], 1 }
 0x9cd   :  { %2741 = vsyncpa [#allocation6], 1 }
 0x9ce   :  { %2742 = vsyncpa [#allocation9], 1 }
 0x9cf   :  { %2743 = vsyncpa [#allocation4], 1 }
 0x9d0   :  { %2745 = vsyncpa [#allocation4 + $0x1], 1 }
 0x9d1   :  { %2746 = vsyncpa [#allocation13], 1 }
 0x9d2   :  { %2748 = vsyncpa [#allocation13 + $0x1], 1 }
 0x9d3   :  { %2749 = vsyncpa [#allocation16], 1 }
 0x9d4   :  { %2751 = vsyncpa [#allocation16 + $0x1], 1 }

</bundles_post_ra>
